<compile_context>
chip_gen: v5e
topology: v5e:2x2
jax: 0.10.0
libtpu: 0.0.40
codegen_flags: <defaults>
</compile_context>

<pallas_src>
import functools

import jax
import jax.numpy as jnp
from jax.experimental import pallas as pl
from jax.experimental.pallas import tpu as pltpu

OUT_PAD = 128  # lane-dense padded output width (real out_dim = 2)


def _mlp_kernel(x_ref,
                w1_ref, b1_ref,
                w2_ref, b2_ref,
                w3_ref, b3_ref,
                w4_ref, b4_ref,
                o_ref):
    # bf16 MXU inputs, f32 accumulation; elementwise math stays f32.
    x = x_ref[...].astype(jnp.bfloat16)

    h = jnp.dot(x, w1_ref[...], preferred_element_type=jnp.float32) + b1_ref[...]
    h = jnp.maximum(h, 0.0)

    h = jnp.dot(h.astype(jnp.bfloat16), w2_ref[...],
                preferred_element_type=jnp.float32) + b2_ref[...]
    h = jnp.maximum(h, 0.0)

    h = jnp.dot(h.astype(jnp.bfloat16), w3_ref[...],
                preferred_element_type=jnp.float32) + b3_ref[...]
    h = jnp.maximum(h, 0.0)

    h = jnp.dot(h.astype(jnp.bfloat16), w4_ref[...],
                preferred_element_type=jnp.float32) + b4_ref[...]

    o_ref[...] = h.astype(o_ref.dtype)  # full (TB, 128) lane-dense store


@functools.partial(jax.jit, static_argnames=("tb",))
def deep_nn_forward(x_nchw, params, *, tb=128):
    """x_nchw: (B, C, H, W). params: bf16 (in,out) weights + f32 (1,out) biases."""
    B = x_nchw.shape[0]
    x_flat = x_nchw.reshape(B, -1).astype(jnp.float32)  # same as torch .view(B, -1)
    D = x_flat.shape[1]

    w1, b1 = params["w1"], params["b1"]
    w2, b2 = params["w2"], params["b2"]
    w3, b3 = params["w3"], params["b3"]
    w4, b4 = params["w4"], params["b4"]
    out_dim = w4.shape[1]

    # Pad the final layer out to 128 lanes (zeros) for an unmasked, lane-dense store.
    w4p = jnp.zeros((w4.shape[0], OUT_PAD), w4.dtype).at[:, :out_dim].set(w4)
    b4p = jnp.zeros((1, OUT_PAD), b4.dtype).at[:, :out_dim].set(b4)

    # Pad batch up to a multiple of the batch tile (full MXU rows / vreg sublanes).
    n_tiles = pl.cdiv(B, tb)
    b_pad = n_tiles * tb
    if b_pad != B:
        x_flat = jnp.pad(x_flat, ((0, b_pad - B), (0, 0)))

    def resident(arr):
        # Whole array as one block, same block index every grid step ->
        # DMA'd once, stays VMEM-resident across all batch tiles.
        return pl.BlockSpec(arr.shape, lambda i: (0,) * arr.ndim)

    out = pl.pallas_call(
        _mlp_kernel,
        out_shape=jax.ShapeDtypeStruct((b_pad, OUT_PAD), jnp.float32),
        grid=(n_tiles,),
        in_specs=[
            pl.BlockSpec((tb, D), lambda i: (i, 0)),   # activations, pipelined
            resident(w1), resident(b1),
            resident(w2), resident(b2),
            resident(w3), resident(b3),
            resident(w4p), resident(b4p),
        ],
        out_specs=pl.BlockSpec((tb, OUT_PAD), lambda i: (i, 0)),
        compiler_params=pltpu.CompilerParams(
            dimension_semantics=("parallel",)),
    )(x_flat, w1, b1, w2, b2, w3, b3, w4p, b4p)

    return out[:B, :out_dim]


def init_params(key, input_dim):
    """nn.Linear-shaped init; weights pre-transposed (in, out) and stored bf16."""
    dims = [input_dim, 512, 256, 128, 2]
    params = {}
    for i in range(4):
        key, kw, kb = jax.random.split(key, 3)
        fan_in, fan_out = dims[i], dims[i + 1]
        bound = 1.0 / jnp.sqrt(fan_in)
        w = jax.random.uniform(kw, (fan_in, fan_out), jnp.float32, -bound, bound)
        b = jax.random.uniform(kb, (1, fan_out), jnp.float32, -bound, bound)
        params[f"w{i+1}"] = w.astype(jnp.bfloat16)   # bf16 MXU input format
        params[f"b{i+1}"] = b                        # bias stays f32
    return params


def ref_forward(x_flat, params):
    """Plain-JAX reference with the same bf16-input / f32-accumulation math."""
    def lin(h, w, b):
        return jnp.dot(h.astype(jnp.bfloat16), w,
                       preferred_element_type=jnp.float32) + b
    h = jnp.maximum(lin(x_flat, params["w1"], params["b1"]), 0.0)
    h = jnp.maximum(lin(h, params["w2"], params["b2"]), 0.0)
    h = jnp.maximum(lin(h, params["w3"], params["b3"]), 0.0)
    return lin(h, params["w4"], params["b4"])


if __name__ == "__main__":
    # Small shapes consistent with the module: NCHW image, flattened in forward.
    B, C, H, W = 2, 3, 16, 16
    input_dim = C * H * W  # 768

    key = jax.random.PRNGKey(0)
    key, kx = jax.random.split(key)
    x = jax.random.normal(kx, (B, C, H, W), jnp.float32)

    params = init_params(key, input_dim)

    out = deep_nn_forward(x, params)
    out = jax.block_until_ready(out)

    ref = ref_forward(x.reshape(B, -1), params)

    assert out.shape == (B, 2), out.shape
    assert jnp.allclose(out, ref, atol=1e-2, rtol=1e-2), "mismatch vs reference"

    print("KERNEL_OK")
</pallas_src>

<mosaic_0001>
module attributes {stable_mosaic.version = 11 : i64} {
  func.func @_mlp_kernel(%arg0: i32, %arg1: memref<128x768xf32, #tpu.memory_space<vmem>>, %arg2: memref<768x512xbf16, #tpu.memory_space<vmem>>, %arg3: memref<1x512xf32, #tpu.memory_space<vmem>>, %arg4: memref<512x256xbf16, #tpu.memory_space<vmem>>, %arg5: memref<1x256xf32, #tpu.memory_space<vmem>>, %arg6: memref<256x128xbf16, #tpu.memory_space<vmem>>, %arg7: memref<1x128xf32, #tpu.memory_space<vmem>>, %arg8: memref<128x128xbf16, #tpu.memory_space<vmem>>, %arg9: memref<1x128xf32, #tpu.memory_space<vmem>>, %arg10: memref<128x128xf32, #tpu.memory_space<vmem>>) attributes {dimension_semantics = [#tpu.dimension_semantics<parallel>], iteration_bounds = array<i64: 1>, scalar_prefetch = 0 : i64, scratch_operands = 0 : i64, tpu.core_type = #tpu.core_type<tc>, window_params = [{transform_indices = @transform_0, window_bounds = array<i64: 128, 768>}, {pipeline_mode = #tpu.pipeline_mode<synchronous>, transform_indices = @transform_1, window_bounds = array<i64: 768, 512>}, {pipeline_mode = #tpu.pipeline_mode<synchronous>, transform_indices = @transform_2, window_bounds = array<i64: 1, 512>}, {pipeline_mode = #tpu.pipeline_mode<synchronous>, transform_indices = @transform_3, window_bounds = array<i64: 512, 256>}, {pipeline_mode = #tpu.pipeline_mode<synchronous>, transform_indices = @transform_4, window_bounds = array<i64: 1, 256>}, {pipeline_mode = #tpu.pipeline_mode<synchronous>, transform_indices = @transform_5, window_bounds = array<i64: 256, 128>}, {pipeline_mode = #tpu.pipeline_mode<synchronous>, transform_indices = @transform_6, window_bounds = array<i64: 1, 128>}, {pipeline_mode = #tpu.pipeline_mode<synchronous>, transform_indices = @transform_7, window_bounds = array<i64: 128, 128>}, {pipeline_mode = #tpu.pipeline_mode<synchronous>, transform_indices = @transform_8, window_bounds = array<i64: 1, 128>}, {transform_indices = @transform_9, window_bounds = array<i64: 128, 128>}]} {
    %c0 = arith.constant 0 : index
    %c0_0 = arith.constant 0 : index
    %0 = vector.load %arg1[%c0, %c0_0] : memref<128x768xf32, #tpu.memory_space<vmem>>, vector<128x768xf32>
    %1 = arith.truncf %0 : vector<128x768xf32> to vector<128x768xbf16>
    %c0_1 = arith.constant 0 : index
    %c0_2 = arith.constant 0 : index
    %2 = vector.load %arg2[%c0_1, %c0_2] : memref<768x512xbf16, #tpu.memory_space<vmem>>, vector<768x512xbf16>
    %cst = arith.constant dense<0.000000e+00> : vector<128x512xf32>
    %3 = tpu.matmul %1, %2, %cst {dimension_numbers = #tpu.dot_dimension_numbers<[1], [0], [0], [1], [0, 0, 1, 1], [], []>} : vector<128x768xbf16>, vector<768x512xbf16>, vector<128x512xf32> -> vector<128x512xf32>
    %c0_3 = arith.constant 0 : index
    %c0_4 = arith.constant 0 : index
    %4 = vector.load %arg3[%c0_3, %c0_4] : memref<1x512xf32, #tpu.memory_space<vmem>>, vector<1x512xf32>
    %5 = vector.broadcast %4 : vector<1x512xf32> to vector<128x512xf32>
    %6 = arith.addf %3, %5 : vector<128x512xf32>
    %cst_5 = arith.constant 0.000000e+00 : f32
    %7 = vector.broadcast %cst_5 : f32 to vector<128x512xf32>
    %8 = arith.maximumf %6, %7 : vector<128x512xf32>
    %9 = arith.truncf %8 : vector<128x512xf32> to vector<128x512xbf16>
    %c0_6 = arith.constant 0 : index
    %c0_7 = arith.constant 0 : index
    %10 = vector.load %arg4[%c0_6, %c0_7] : memref<512x256xbf16, #tpu.memory_space<vmem>>, vector<512x256xbf16>
    %cst_8 = arith.constant dense<0.000000e+00> : vector<128x256xf32>
    %11 = tpu.matmul %9, %10, %cst_8 {dimension_numbers = #tpu.dot_dimension_numbers<[1], [0], [0], [1], [0, 0, 1, 1], [], []>} : vector<128x512xbf16>, vector<512x256xbf16>, vector<128x256xf32> -> vector<128x256xf32>
    %c0_9 = arith.constant 0 : index
    %c0_10 = arith.constant 0 : index
    %12 = vector.load %arg5[%c0_9, %c0_10] : memref<1x256xf32, #tpu.memory_space<vmem>>, vector<1x256xf32>
    %13 = vector.broadcast %12 : vector<1x256xf32> to vector<128x256xf32>
    %14 = arith.addf %11, %13 : vector<128x256xf32>
    %cst_11 = arith.constant 0.000000e+00 : f32
    %15 = vector.broadcast %cst_11 : f32 to vector<128x256xf32>
    %16 = arith.maximumf %14, %15 : vector<128x256xf32>
    %17 = arith.truncf %16 : vector<128x256xf32> to vector<128x256xbf16>
    %c0_12 = arith.constant 0 : index
    %c0_13 = arith.constant 0 : index
    %18 = vector.load %arg6[%c0_12, %c0_13] : memref<256x128xbf16, #tpu.memory_space<vmem>>, vector<256x128xbf16>
    %cst_14 = arith.constant dense<0.000000e+00> : vector<128x128xf32>
    %19 = tpu.matmul %17, %18, %cst_14 {dimension_numbers = #tpu.dot_dimension_numbers<[1], [0], [0], [1], [0, 0, 1, 1], [], []>} : vector<128x256xbf16>, vector<256x128xbf16>, vector<128x128xf32> -> vector<128x128xf32>
    %c0_15 = arith.constant 0 : index
    %c0_16 = arith.constant 0 : index
    %20 = vector.load %arg7[%c0_15, %c0_16] : memref<1x128xf32, #tpu.memory_space<vmem>>, vector<1x128xf32>
    %21 = vector.broadcast %20 : vector<1x128xf32> to vector<128x128xf32>
    %22 = arith.addf %19, %21 : vector<128x128xf32>
    %cst_17 = arith.constant 0.000000e+00 : f32
    %23 = vector.broadcast %cst_17 : f32 to vector<128x128xf32>
    %24 = arith.maximumf %22, %23 : vector<128x128xf32>
    %25 = arith.truncf %24 : vector<128x128xf32> to vector<128x128xbf16>
    %c0_18 = arith.constant 0 : index
    %c0_19 = arith.constant 0 : index
    %26 = vector.load %arg8[%c0_18, %c0_19] : memref<128x128xbf16, #tpu.memory_space<vmem>>, vector<128x128xbf16>
    %cst_20 = arith.constant dense<0.000000e+00> : vector<128x128xf32>
    %27 = tpu.matmul %25, %26, %cst_20 {dimension_numbers = #tpu.dot_dimension_numbers<[1], [0], [0], [1], [0, 0, 1, 1], [], []>} : vector<128x128xbf16>, vector<128x128xbf16>, vector<128x128xf32> -> vector<128x128xf32>
    %c0_21 = arith.constant 0 : index
    %c0_22 = arith.constant 0 : index
    %28 = vector.load %arg9[%c0_21, %c0_22] : memref<1x128xf32, #tpu.memory_space<vmem>>, vector<1x128xf32>
    %29 = vector.broadcast %28 : vector<1x128xf32> to vector<128x128xf32>
    %30 = arith.addf %27, %29 : vector<128x128xf32>
    %c0_23 = arith.constant 0 : index
    %c0_24 = arith.constant 0 : index
    %31 = vector.load %arg10[%c0_23, %c0_24] : memref<128x128xf32, #tpu.memory_space<vmem>>, vector<128x128xf32>
    tpu.vector_store %arg10[%c0_23, %c0_24], %30 {strides = array<i32>} : memref<128x128xf32, #tpu.memory_space<vmem>>, vector<128x128xf32>,
    return
  }
  func.func @transform_0(%arg0: i32) -> (i32, i32) {
    %c0_i32 = arith.constant 0 : i32
    %c0_i32_0 = arith.constant 0 : i32
    return %arg0, %c0_i32 : i32, i32
  }
  func.func @transform_1(%arg0: i32) -> (i32, i32) {
    %c0_i32 = arith.constant 0 : i32
    %c0_i32_0 = arith.constant 0 : i32
    %c0_i32_1 = arith.constant 0 : i32
    return %c0_i32, %c0_i32_0 : i32, i32
  }
  func.func @transform_2(%arg0: i32) -> (i32, i32) {
    %c0_i32 = arith.constant 0 : i32
    %c0_i32_0 = arith.constant 0 : i32
    %c0_i32_1 = arith.constant 0 : i32
    return %c0_i32, %c0_i32_0 : i32, i32
  }
  func.func @transform_3(%arg0: i32) -> (i32, i32) {
    %c0_i32 = arith.constant 0 : i32
    %c0_i32_0 = arith.constant 0 : i32
    %c0_i32_1 = arith.constant 0 : i32
    return %c0_i32, %c0_i32_0 : i32, i32
  }
  func.func @transform_4(%arg0: i32) -> (i32, i32) {
    %c0_i32 = arith.constant 0 : i32
    %c0_i32_0 = arith.constant 0 : i32
    %c0_i32_1 = arith.constant 0 : i32
    return %c0_i32, %c0_i32_0 : i32, i32
  }
  func.func @transform_5(%arg0: i32) -> (i32, i32) {
    %c0_i32 = arith.constant 0 : i32
    %c0_i32_0 = arith.constant 0 : i32
    %c0_i32_1 = arith.constant 0 : i32
    return %c0_i32, %c0_i32_0 : i32, i32
  }
  func.func @transform_6(%arg0: i32) -> (i32, i32) {
    %c0_i32 = arith.constant 0 : i32
    %c0_i32_0 = arith.constant 0 : i32
    %c0_i32_1 = arith.constant 0 : i32
    return %c0_i32, %c0_i32_0 : i32, i32
  }
  func.func @transform_7(%arg0: i32) -> (i32, i32) {
    %c0_i32 = arith.constant 0 : i32
    %c0_i32_0 = arith.constant 0 : i32
    %c0_i32_1 = arith.constant 0 : i32
    return %c0_i32, %c0_i32_0 : i32, i32
  }
  func.func @transform_8(%arg0: i32) -> (i32, i32) {
    %c0_i32 = arith.constant 0 : i32
    %c0_i32_0 = arith.constant 0 : i32
    %c0_i32_1 = arith.constant 0 : i32
    return %c0_i32, %c0_i32_0 : i32, i32
  }
  func.func @transform_9(%arg0: i32) -> (i32, i32) {
    %c0_i32 = arith.constant 0 : i32
    %c0_i32_0 = arith.constant 0 : i32
    return %arg0, %c0_i32 : i32, i32
  }
}

</mosaic_0001>

<bundles_post_ra>
// kernel: deep_nn_forward.1
= control target key start
LH: loop header
LB: loop body
LE: loop exit
PB: predicated region body
PF: predicated region fallthrough
CT: control target
= control target key end

     0   :  { %14 = vsyncpa [#allocation3], 0  ;;  %s5305_s12 = smov [#allocation2]   ;;  %s5306_s14 = smov 256   ;;  %s7157_s0 = inlined_call_operand.vmem [shape: f32[128,768], index: 0, kind: input, shape index: {}]   ;;  %s7158_s1 = inlined_call_operand.hbm [shape: bf16[768,512], index: 1, kind: input, shape index: {}]   ;;  %s7159_s2 = inlined_call_operand.vmem [shape: f32[1,512], index: 2, kind: input, shape index: {}]   ;;  %s7160_s3 = inlined_call_operand.vmem [shape: bf16[512,256], index: 3, kind: input, shape index: {}]   ;;  %s7161_s4 = inlined_call_operand.vmem [shape: f32[1,256], index: 4, kind: input, shape index: {}]   ;;  %s7162_s5 = inlined_call_operand.vmem [shape: bf16[256,128], index: 5, kind: input, shape index: {}]   ;;  %s7163_s6 = inlined_call_operand.vmem [shape: f32[1,128], index: 6, kind: input, shape index: {}]   ;;  %s7164_s7 = inlined_call_operand.vmem [shape: bf16[128,128], index: 7, kind: input, shape index: {}]   ;;  %s7165_s8 = inlined_call_operand.vmem [shape: f32[1,128], index: 8, kind: input, shape index: {}]   ;;  %s7166_s9 = inlined_call_operand.vmem [shape: f32[128,128], index: 9, kind: output, shape index: {}]  }
   0x1   :  { %s21_s11 = sshll.u32 %s7158_s1, 4  ;;  %s23_s13 = sshll.u32 %s5305_s12, 4  ;;  %s22_s11 = int_to_ptr.hbm [resolvable:$true] %s21_s11  ;;  %s24_s13 = int_to_ptr.vmem [resolvable:$true] %s23_s13 }
   0x2   :  { %s5307_s15 = smov 16  }
   0x3   :  { %29 = dma.hbm_to_vmem [thread:$0]  %s22_s11, 24576, %s24_s13, [#allocation3], %s5306_s14, %s5306_s14, %s5307_s15  }
   0x4   :  { %5303 = dma.done.wait [#allocation3], 24576  }
   0x5   :  { %5304 = vsyncadd [#allocation3], 4294942720  ;;  %v3962_v0 = vld [vmem:[#allocation2 + $0xe0] sm:$0xf]  ;;  %v4998_v1 = vld [vmem:[#allocation2 + $0xec] sm:$0xf0] }
   0x6   :  { %v4090_v2 = vld [vmem:[#allocation2 + $0x1e0] sm:$0xf]  ;;  %v3963_v3 = vor.u32 %v4998_v1, %v3962_v0  ;;  %v5030_v4 = vld [vmem:[#allocation2 + $0x1ec] sm:$0xf0] }
   0x7   :  { %v4218_v5 = vld [vmem:[#allocation2 + $0x2e0] sm:$0xf]  ;;  %v5062_v6 = vld [vmem:[#allocation2 + $0x2ec] sm:$0xf0]  ;;  %v5361_v7 = vor.u32 %v5030_v4, %v4090_v2 }
   0x8   :  { %v5363_v8 = vor.u32 %v5062_v6, %v4218_v5  ;;  %v3946_v9 = vld [vmem:[#allocation2 + $0xc0] sm:$0xf]  ;;  %v4994_v10 = vld [vmem:[#allocation2 + $0xcc] sm:$0xf0]  ;;  %1354 = vmatpush.bf16.msra.mxu0 %v3963_v3  ;;  %5248 = vmatpush.bf16.msra.mxu3 %v3963_v3 }
   0x9   :  { %v4074_v11 = vld [vmem:[#allocation2 + $0x1c0] sm:$0xf]  ;;  %v3947_v12 = vor.u32 %v4994_v10, %v3946_v9  ;;  %v5026_v13 = vld [vmem:[#allocation2 + $0x1cc] sm:$0xf0]  ;;  %5256 = vmatpush.bf16.msra.mxu1 %v5361_v7 }
   0xa   :  { %v4202_v14 = vld [vmem:[#allocation2 + $0x2c0] sm:$0xf]  ;;  %v5058_v15 = vld [vmem:[#allocation2 + $0x2cc] sm:$0xf0]  ;;  %5264 = vmatpush.bf16.msra.mxu2 %v5363_v8  ;;  %v5367_v16 = vor.u32 %v5026_v13, %v4074_v11 }
   0xb   :  { %v5369_v17 = vor.u32 %v5058_v15, %v4202_v14  ;;  %v3930_v18 = vld [vmem:[#allocation2 + $0xa0] sm:$0xf]  ;;  %v4990_v19 = vld [vmem:[#allocation2 + $0xac] sm:$0xf0]  ;;  %v73_v14 = vld [vmem:[%s7157_s0 + $0xc8] sm:$0xff] }
   0xc   :  { %v4058_v20 = vld [vmem:[#allocation2 + $0x1a0] sm:$0xf]  ;;  %v5022_v21 = vld [vmem:[#allocation2 + $0x1ac] sm:$0xf0]  ;;  %1355 = vmatpush.bf16.msra.mxu0 %v3947_v12  ;;  %5249 = vmatpush.bf16.msra.mxu3 %v3947_v12  ;;  %v3931_v24 = vor.u32 %v4990_v19, %v3930_v18  ;;  %v79_v19 = vld [vmem:[%s7157_s0 + $0xf8] sm:$0xff] }
   0xd   :  { %v4186_v22 = vld [vmem:[#allocation2 + $0x2a0] sm:$0xf]  ;;  %v5054_v23 = vld [vmem:[#allocation2 + $0x2ac] sm:$0xf0]  ;;  %5257 = vmatpush.bf16.msra.mxu1 %v5367_v16  ;;  %v5373_v25 = vor.u32 %v5022_v21, %v4058_v20 }
   0xe   :  { %5265 = vmatpush.bf16.msra.mxu2 %v5369_v17  ;;  %v5375_v26 = vor.u32 %v5054_v23, %v4186_v22  ;;  %v3914_v27 = vld [vmem:[#allocation2 + $0x80] sm:$0xf]  ;;  %v4986_v28 = vld [vmem:[#allocation2 + $0x8c] sm:$0xf0] }
   0xf   :  { %v4042_v29 = vld [vmem:[#allocation2 + $0x180] sm:$0xf]  ;;  %v5018_v30 = vld [vmem:[#allocation2 + $0x18c] sm:$0xf0]  ;;  %v3915_v33 = vor.u32 %v4986_v28, %v3914_v27 }
  0x10   :  { %v4170_v31 = vld [vmem:[#allocation2 + $0x280] sm:$0xf]  ;;  %v5050_v32 = vld [vmem:[#allocation2 + $0x28c] sm:$0xf0]  ;;  %1356 = vmatpush.bf16.msra.mxu0 %v3931_v24  ;;  %5250 = vmatpush.bf16.msra.mxu3 %v3931_v24  ;;  %v5379_v34 = vor.u32 %v5018_v30, %v4042_v29  ;;  %v5435_v29 = vpack.c.bf16 %v79_v19, %v73_v14  ;;  %v4992_v14 = vld [vmem:[#allocation2 + $0xc4] sm:$0xf] }
  0x11   :  { %5258 = vmatpush.bf16.msra.mxu1 %v5373_v25  ;;  %v5381_v35 = vor.u32 %v5050_v32, %v4170_v31  ;;  %v3898_v36 = vld [vmem:[#allocation2 + $0x60] sm:$0xf]  ;;  %v4982_v37 = vld [vmem:[#allocation2 + $0x6c] sm:$0xf0] }
  0x12   :  { %5266 = vmatpush.bf16.msra.mxu2 %v5375_v26  ;;  %v4026_v38 = vld [vmem:[#allocation2 + $0x160] sm:$0xf]  ;;  %v5014_v39 = vld [vmem:[#allocation2 + $0x16c] sm:$0xf0]  ;;  %v3899_v42 = vor.u32 %v4982_v37, %v3898_v36  ;;  %7256 = vst [vmem:[#allocation7_spill] sm:$0xff] %v5435_v29 }
  0x13   :  { %v4154_v40 = vld [vmem:[#allocation2 + $0x260] sm:$0xf]  ;;  %v5046_v41 = vld [vmem:[#allocation2 + $0x26c] sm:$0xf0]  ;;  %v5385_v43 = vor.u32 %v5014_v39, %v4026_v38 }
  0x14   :  { %1357 = vmatpush.bf16.msra.mxu0 %v3915_v33  ;;  %5251 = vmatpush.bf16.msra.mxu3 %v3915_v33  ;;  %v5387_v44 = vor.u32 %v5046_v41, %v4154_v40  ;;  %v3882_v45 = vld [vmem:[#allocation2 + $0x40] sm:$0xf]  ;;  %v4978_v46 = vld [vmem:[#allocation2 + $0x4c] sm:$0xf0] }
  0x15   :  { %5259 = vmatpush.bf16.msra.mxu1 %v5379_v34  ;;  %v4010_v47 = vld [vmem:[#allocation2 + $0x140] sm:$0xf]  ;;  %v5010_v48 = vld [vmem:[#allocation2 + $0x14c] sm:$0xf0]  ;;  %v3883_v51 = vor.u32 %v4978_v46, %v3882_v45 }
  0x16   :  { %5267 = vmatpush.bf16.msra.mxu2 %v5381_v35  ;;  %v4138_v49 = vld [vmem:[#allocation2 + $0x240] sm:$0xf]  ;;  %v5042_v50 = vld [vmem:[#allocation2 + $0x24c] sm:$0xf0]  ;;  %v5391_v52 = vor.u32 %v5010_v48, %v4010_v47 }
  0x17   :  { %v5393_v53 = vor.u32 %v5042_v50, %v4138_v49  ;;  %v3866_v54 = vld [vmem:[#allocation2 + $0x20] sm:$0xf]  ;;  %v4974_v55 = vld [vmem:[#allocation2 + $0x2c] sm:$0xf0] }
  0x18   :  { %1358 = vmatpush.bf16.msra.mxu0 %v3899_v42  ;;  %5252 = vmatpush.bf16.msra.mxu3 %v3899_v42  ;;  %v3994_v56 = vld [vmem:[#allocation2 + $0x120] sm:$0xf]  ;;  %v5006_v57 = vld [vmem:[#allocation2 + $0x12c] sm:$0xf0]  ;;  %v3867_v60 = vor.u32 %v4974_v55, %v3866_v54  ;;  %v91_v42 = vld [vmem:[%s7157_s0 + $0x158] sm:$0xff] }
  0x19   :  { %5260 = vmatpush.bf16.msra.mxu1 %v5385_v43  ;;  %v4122_v58 = vld [vmem:[#allocation2 + $0x220] sm:$0xf]  ;;  %v5038_v59 = vld [vmem:[#allocation2 + $0x22c] sm:$0xf0]  ;;  %v5397_v62 = vor.u32 %v5006_v57, %v3994_v56 }
  0x1a   :  { %5268 = vmatpush.bf16.msra.mxu2 %v5387_v44  ;;  %v3850_v61 = vld [vmem:[#allocation2] sm:$0xf]  ;;  %v5399_v63 = vor.u32 %v5038_v59, %v4122_v58  ;;  %v4970_v0 = vld [vmem:[#allocation2 + $0xc] sm:$0xf0]  ;;  %v49_v59 = vld [vmem:[%s7157_s0 + $0x8] sm:$0xff] }
  0x1b   :  { %v3978_v1 = vld [vmem:[#allocation2 + $0x100] sm:$0xf]  ;;  %v5002_v2 = vld [vmem:[#allocation2 + $0x10c] sm:$0xf0]  ;;  %v3851_v11 = vor.u32 %v4970_v0, %v3850_v61  ;;  %v103_v61 = vld [vmem:[%s7157_s0 + $0x1b8] sm:$0xff] }
  0x1c   :  { %1359 = vmatpush.bf16.msra.mxu0 %v3883_v51  ;;  %5253 = vmatpush.bf16.msra.mxu3 %v3883_v51  ;;  %v4106_v3 = vld [vmem:[#allocation2 + $0x200] sm:$0xf]  ;;  %v5034_v4 = vld [vmem:[#allocation2 + $0x20c] sm:$0xf0]  ;;  %v5418_v15 = vor.u32 %v5002_v2, %v3978_v1 }
  0x1d   :  { %5261 = vmatpush.bf16.msra.mxu1 %v5391_v52  ;;  %v48_v5 = vld [vmem:[%s7157_s0] sm:$0xff]  ;;  %v54_v6 = vld [vmem:[%s7157_s0 + $0x30] sm:$0xff]  ;;  %v5420_v18 = vor.u32 %v5034_v4, %v4106_v3 }
  0x1e   :  { %5269 = vmatpush.bf16.msra.mxu2 %v5393_v53  ;;  %v4346_v9 = vld [vmem:[#allocation2 + $0x3e0] sm:$0xf]  ;;  %v5094_v10 = vld [vmem:[#allocation2 + $0x3ec] sm:$0xf0]  ;;  %v5431_v23 = vpack.c.bf16 %v54_v6, %v48_v5 }
  0x1f   :  { %v72_v12 = vld [vmem:[%s7157_s0 + $0xc0] sm:$0xff]  ;;  %v78_v13 = vld [vmem:[%s7157_s0 + $0xf0] sm:$0xff]  ;;  %v4347_v22 = vor.u32 %v5094_v10, %v4346_v9 }
  0x20   :  { %1360 = vmatpush.bf16.msra.mxu0 %v3867_v60  ;;  %5254 = vmatpush.bf16.msra.mxu3 %v3867_v60  ;;  %v74_v20 = vld [vmem:[%s7157_s0 + $0xd0] sm:$0xff]  ;;  %v80_v21 = vld [vmem:[%s7157_s0 + $0x100] sm:$0xff]  ;;  %7254 = vst [vmem:[#allocation5_spill] sm:$0xff] %v5431_v23  ;;  %v5433_v24 = vpack.c.bf16 %v78_v13, %v72_v12  ;;  %v97_v60 = vld [vmem:[%s7157_s0 + $0x188] sm:$0xff] }
  0x21   :  { %5262 = vmatpush.bf16.msra.mxu1 %v5397_v62  ;;  %v4330_v27 = vld [vmem:[#allocation2 + $0x3c0] sm:$0xf]  ;;  %v5090_v28 = vld [vmem:[#allocation2 + $0x3cc] sm:$0xf0]  ;;  %v5437_v30 = vpack.c.bf16 %v80_v21, %v74_v20  ;;  %v5518_v3 = vpack.c.bf16 %v103_v61, %v97_v60  ;;  %v4996_v9 = vld [vmem:[#allocation2 + $0xe4] sm:$0xf] }
  0x22   :  { %5270 = vmatpush.bf16.msra.mxu2 %v5399_v63  ;;  %7255 = vst [vmem:[#allocation6_spill] sm:$0xff] %v5433_v24  ;;  %v4331_v31 = vor.u32 %v5090_v28, %v4330_v27  ;;  %v4314_v32 = vld [vmem:[#allocation2 + $0x3a0] sm:$0xf]  ;;  %v5086_v33 = vld [vmem:[#allocation2 + $0x3ac] sm:$0xf0] }
  0x23   :  { %7257 = vst [vmem:[#allocation8_spill] sm:$0xff] %v5437_v30  ;;  %v4315_v36 = vor.u32 %v5086_v33, %v4314_v32  ;;  %v4298_v37 = vld [vmem:[#allocation2 + $0x380] sm:$0xf]  ;;  %v5082_v38 = vld [vmem:[#allocation2 + $0x38c] sm:$0xf0] }
  0x24   :  { %1361 = vmatpush.bf16.msra.mxu0 %v3851_v11  ;;  %5255 = vmatpush.bf16.msra.mxu3 %v3851_v11  ;;  %v60_v39 = vld [vmem:[%s7157_s0 + $0x60] sm:$0xff]  ;;  %v66_v40 = vld [vmem:[%s7157_s0 + $0x90] sm:$0xff]  ;;  %7264 = vst [vmem:[#allocation15_spill] sm:$0xff] %v5518_v3 }
  0x25   :  { %5263 = vmatpush.bf16.msra.mxu1 %v5418_v15  ;;  %v90_v41 = vld [vmem:[%s7157_s0 + $0x150] sm:$0xff]  ;;  %v92_v46 = vld [vmem:[%s7157_s0 + $0x160] sm:$0xff]  ;;  %v5473_v47 = vpack.c.bf16 %v66_v40, %v60_v39  ;;  %v109_v39 = vld [vmem:[%s7157_s0 + $0x1e8] sm:$0xff] }
  0x26   :  { %5271 = vmatpush.bf16.msra.mxu2 %v5420_v18  ;;  %v86_v45 = vld [vmem:[%s7157_s0 + $0x130] sm:$0xff]  ;;  %v4266_v55 = vld [vmem:[#allocation2 + $0x340] sm:$0xf]  ;;  %v4988_v32 = vld [vmem:[#allocation2 + $0xa4] sm:$0xf] }
  0x27   :  { %1362 = vmatmul.bf16.vlgmr.msra.gmra.mxu0 %v5431_v23  ;;  %1372 = vmatmul.bf16.vlgmr.msra.gmra.mxu3 %v5433_v24  ;;  %7258 = vst [vmem:[#allocation9_spill] sm:$0xff] %v5473_v47  ;;  %v5479_v50 = vpack.c.bf16 %v92_v46, %v86_v45  ;;  %v5078_v51 = vld [vmem:[#allocation2 + $0x36c] sm:$0xf0]  ;;  %v104_v0 = vld [vmem:[%s7157_s0 + $0x1c0] sm:$0xff]  ;;  %v3964_v10 = vld [vmem:[#allocation2 + $0xf0] sm:$0xf0] }
  0x28   :  { %1501 = vmatpush.bf16.msrb.mxu3 %v4347_v22  ;;  %1403 = vmatpush.bf16.msrb.mxu0 %v5361_v7  ;;  %v4299_v7 = vor.u32 %v5082_v38, %v4298_v37  ;;  %v5074_v56 = vld [vmem:[#allocation2 + $0x34c] sm:$0xf0]  ;;  %v4602_v5 = vld [vmem:[#allocation2 + $0x5e0] sm:$0xf]  ;;  %v3932_v33 = vld [vmem:[#allocation2 + $0xb0] sm:$0xf0] }
  0x29   :  { %1421 = vmatmul.bf16.vlgmr.msra.gmra.mxu1 %v5435_v29  ;;  %1470 = vmatmul.bf16.vlgmr.msra.gmra.mxu2 %v5437_v30  ;;  %7261 = vst [vmem:[#allocation12_spill] sm:$0xff] %v5479_v50  ;;  %v4267_v57 = vor.u32 %v5074_v56, %v4266_v55  ;;  %v102_v58 = vld [vmem:[%s7157_s0 + $0x1b0] sm:$0xff]  ;;  %v4586_v12 = vld [vmem:[#allocation2 + $0x5c0] sm:$0xf]  ;;  %v3935_v38 = vor.u32 %v4988_v32, %v3932_v33  ;;  %v115_v40 = vld [vmem:[%s7157_s0 + $0x218] sm:$0xff] }
  0x2a   :  { %v5158_v6 = vld [vmem:[#allocation2 + $0x5ec] sm:$0xf0]  ;;  %v4250_v21 = vld [vmem:[#allocation2 + $0x320] sm:$0xf]  ;;  %v127_v32 = vld [vmem:[%s7157_s0 + $0x278] sm:$0xff] }
  0x2b   :  { %v4603_v11 = vor.u32 %v5158_v6, %v4602_v5  ;;  %v5154_v13 = vld [vmem:[#allocation2 + $0x5cc] sm:$0xf0]  ;;  %v4570_v28 = vld [vmem:[#allocation2 + $0x5a0] sm:$0xf] }
  0x2c   :  { %1404 = vmatpush.bf16.msrb.mxu0 %v5367_v16  ;;  %1502 = vmatpush.bf16.msrb.mxu3 %v4331_v31  ;;  %v84_v16 = vld [vmem:[%s7157_s0 + $0x120] sm:$0xff]  ;;  %v4587_v19 = vor.u32 %v5154_v13, %v4586_v12  ;;  %v5070_v22 = vld [vmem:[#allocation2 + $0x32c] sm:$0xf0] }
  0x2d   :  { %v5475_v48 = vpack.c.bf16 %v90_v41, %v84_v16  ;;  %1599 = vmatpush.bf16.msrb.mxu1 %v4603_v11  ;;  %v4251_v27 = vor.u32 %v5070_v22, %v4250_v21  ;;  %v5150_v31 = vld [vmem:[#allocation2 + $0x5ac] sm:$0xf0]  ;;  %v116_v41 = vld [vmem:[%s7157_s0 + $0x220] sm:$0xff]  ;;  %v3884_v11 = vld [vmem:[#allocation2 + $0x50] sm:$0xf0] }
  0x2e   :  { %v4571_v37 = vor.u32 %v5150_v31, %v4570_v28  ;;  %v110_v16 = vld [vmem:[%s7157_s0 + $0x1f0] sm:$0xff]  ;;  %v4234_v60 = vld [vmem:[#allocation2 + $0x300] sm:$0xf]  ;;  %v4972_v22 = vld [vmem:[#allocation2 + $0x24] sm:$0xf] }
  0x2f   :  { %7259 = vst [vmem:[#allocation10_spill] sm:$0xff] %v5475_v48  ;;  %v4474_v61 = vld [vmem:[#allocation2 + $0x4e0] sm:$0xf]  ;;  %v5138_v6 = vld [vmem:[#allocation2 + $0x54c] sm:$0xf0] }
  0x30   :  { %1405 = vmatpush.bf16.msrb.mxu0 %v5373_v25  ;;  %1503 = vmatpush.bf16.msrb.mxu3 %v4315_v36  ;;  %v85_v25 = vld [vmem:[%s7157_s0 + $0x128] sm:$0xff]  ;;  %v114_v36 = vld [vmem:[%s7157_s0 + $0x210] sm:$0xff]  ;;  %v4522_v5 = vld [vmem:[#allocation2 + $0x540] sm:$0xf] }
  0x31   :  { %v5477_v49 = vpack.c.bf16 %v91_v42, %v85_v25  ;;  %1600 = vmatpush.bf16.msrb.mxu1 %v4587_v19  ;;  %v4554_v25 = vld [vmem:[#allocation2 + $0x580] sm:$0xf]  ;;  %v5146_v42 = vld [vmem:[#allocation2 + $0x58c] sm:$0xf0] }
  0x32   :  { %v4555_v55 = vor.u32 %v5146_v42, %v4554_v25  ;;  %v126_v12 = vld [vmem:[%s7157_s0 + $0x270] sm:$0xff]  ;;  %v4506_v19 = vld [vmem:[#allocation2 + $0x520] sm:$0xf] }
  0x33   :  { %7260 = vst [vmem:[#allocation11_spill] sm:$0xff] %v5477_v49  ;;  %v5122_v21 = vld [vmem:[#allocation2 + $0x4cc] sm:$0xf0]  ;;  %v56_v31 = vld [vmem:[%s7157_s0 + $0x40] sm:$0xff]  ;;  %v3852_v25 = vld [vmem:[#allocation2 + $0x10] sm:$0xf0] }
  0x34   :  { %1406 = vmatpush.bf16.msrb.mxu0 %v5379_v34  ;;  %1504 = vmatpush.bf16.msrb.mxu3 %v4299_v7  ;;  %v4282_v34 = vld [vmem:[#allocation2 + $0x360] sm:$0xf]  ;;  %v61_v7 = vld [vmem:[%s7157_s0 + $0x68] sm:$0xff]  ;;  %v50_v28 = vld [vmem:[%s7157_s0 + $0x10] sm:$0xff] }
  0x35   :  { %v4283_v54 = vor.u32 %v5078_v51, %v4282_v34  ;;  %1601 = vmatpush.bf16.msrb.mxu1 %v4571_v37  ;;  %v3916_v34 = vld [vmem:[#allocation2 + $0x90] sm:$0xf0]  ;;  %v5557_v51 = vpack.c.bf16 %v115_v40, %v109_v39  ;;  %v5595_v40 = vpack.c.bf16 %v56_v31, %v50_v28  ;;  %v4362_v28 = vld [vmem:[#allocation2 + $0x400] sm:$0xf]  ;;  %v5098_v31 = vld [vmem:[#allocation2 + $0x40c] sm:$0xf0] }
  0x36   :  { %v122_v33 = vld [vmem:[%s7157_s0 + $0x250] sm:$0xff] }
  0x37   :  { %1367 = vmatmul.bf16.gmra.mxu0 %v5473_v47  ;;  %1377 = vmatmul.bf16.gmra.mxu3 %v5475_v48  ;;  %7268 = vst [vmem:[#allocation19_spill] sm:$0xff] %v5557_v51 }
  0x38   :  { %1407 = vmatpush.bf16.msrb.mxu0 %v5385_v43  ;;  %1505 = vmatpush.bf16.msrb.mxu3 %v4283_v54  ;;  %v96_v43 = vld [vmem:[%s7157_s0 + $0x180] sm:$0xff]  ;;  %v5559_v54 = vpack.c.bf16 %v116_v41, %v110_v16  ;;  %7270 = vst [vmem:[#allocation21_spill] sm:$0xff] %v5595_v40  ;;  %v5118_v16 = vld [vmem:[#allocation2 + $0x4ac] sm:$0xf0] }
  0x39   :  { %1426 = vmatmul.bf16.gmra.mxu1 %v5477_v49  ;;  %1475 = vmatmul.bf16.gmra.mxu2 %v5479_v50  ;;  %v5513_v1 = vpack.c.bf16 %v102_v58, %v96_v43  ;;  %v5142_v43 = vld [vmem:[#allocation2 + $0x56c] sm:$0xf0]  ;;  %v4980_v58 = vld [vmem:[#allocation2 + $0x64] sm:$0xf] }
  0x3a   :  { %7269 = vst [vmem:[#allocation20_spill] sm:$0xff] %v5559_v54  ;;  %1602 = vmatpush.bf16.msrb.mxu1 %v4555_v55  ;;  %v4968_v41 = vld [vmem:[#allocation2 + $0x4] sm:$0xf] }
  0x3b   :  { %7262 = vst [vmem:[#allocation13_spill] sm:$0xff] %v5513_v1 }
  0x3c   :  { %1408 = vmatpush.bf16.msrb.mxu0 %v5391_v52  ;;  %v55_v52 = vld [vmem:[%s7157_s0 + $0x38] sm:$0xff]  ;;  %1506 = vmatpush.bf16.msrb.mxu3 %v4267_v57  ;;  %v4538_v57 = vld [vmem:[#allocation2 + $0x560] sm:$0xf] }
  0x3d   :  { %v5515_v2 = vpack.c.bf16 %v55_v52, %v49_v59  ;;  %v3900_v59 = vld [vmem:[#allocation2 + $0x70] sm:$0xf0]  ;;  %v4539_v52 = vor.u32 %v5142_v43, %v4538_v57  ;;  %v4426_v57 = vld [vmem:[#allocation2 + $0x480] sm:$0xf]  ;;  %v5114_v43 = vld [vmem:[#allocation2 + $0x48c] sm:$0xf0] }
  0x3f   :  { %7263 = vst [vmem:[#allocation14_spill] sm:$0xff] %v5515_v2  ;;  %1603 = vmatpush.bf16.msrb.mxu1 %v4539_v52 }
  0x40   :  { %1409 = vmatpush.bf16.msrb.mxu0 %v5397_v62  ;;  %v98_v62 = vld [vmem:[%s7157_s0 + $0x190] sm:$0xff]  ;;  %1507 = vmatpush.bf16.msrb.mxu3 %v4251_v27 }
  0x41   :  { %v5520_v4 = vpack.c.bf16 %v104_v0, %v98_v62  ;;  %v3903_v62 = vor.u32 %v4980_v58, %v3900_v59  ;;  %v3868_v27 = vld [vmem:[#allocation2 + $0x30] sm:$0xf0]  ;;  %v5028_v58 = vld [vmem:[#allocation2 + $0x1e4] sm:$0xf] }
  0x42   :  { %v4092_v59 = vld [vmem:[#allocation2 + $0x1f0] sm:$0xf0] }
  0x43   :  { %7265 = vst [vmem:[#allocation16_spill] sm:$0xff] %v5520_v4  ;;  %v4095_v52 = vor.u32 %v5028_v58, %v4092_v59  ;;  %v69_v58 = vld [vmem:[%s7157_s0 + $0xa8] sm:$0xff]  ;;  %v64_v59 = vld [vmem:[%s7157_s0 + $0x80] sm:$0xff] }
  0x44   :  { %1410 = vmatpush.bf16.msrb.mxu0 %v5418_v15  ;;  %v3948_v15 = vld [vmem:[#allocation2 + $0xd0] sm:$0xf0] }
  0x45   :  { %v3951_v20 = vor.u32 %v4992_v14, %v3948_v15  ;;  %v4458_v14 = vld [vmem:[#allocation2 + $0x4c0] sm:$0xf] }
  0x46   :  { %v4459_v37 = vor.u32 %v5122_v21, %v4458_v14  ;;  %v5102_v21 = vld [vmem:[#allocation2 + $0x42c] sm:$0xf0] }
  0x47   :  { %1382 = vmatmul.bf16.gmra.mxu3 %v5513_v1  ;;  %1411 = vmatmul.bf16.vlgmr.msrb.gmra.mxu0 %v5515_v2 }
  0x48   :  { %1452 = vmatpush.bf16.msra.mxu0 %v5363_v8  ;;  %v3967_v8 = vor.u32 %v4996_v9, %v3964_v10  ;;  %v5126_v9 = vld [vmem:[#allocation2 + $0x4ec] sm:$0xf0]  ;;  %v4976_v10 = vld [vmem:[#allocation2 + $0x44] sm:$0xf] }
  0x49   :  { %1431 = vmatmul.bf16.gmra.mxu1 %v5518_v3  ;;  %1480 = vmatmul.bf16.gmra.mxu2 %v5520_v4  ;;  %v4475_v13 = vor.u32 %v5126_v9, %v4474_v61  ;;  %v3887_v15 = vor.u32 %v4976_v10, %v3884_v11  ;;  %v5110_v61 = vld [vmem:[#allocation2 + $0x46c] sm:$0xf0]  ;;  %v133_v10 = vld [vmem:[%s7157_s0 + $0x2a8] sm:$0xff] }
  0x4a   :  { %1648 = vmatpush.bf16.msrb.mxu2 %v3967_v8  ;;  %v4523_v8 = vor.u32 %v5138_v6, %v4522_v5  ;;  %v138_v5 = vld [vmem:[%s7157_s0 + $0x2d0] sm:$0xff]  ;;  %v4394_v6 = vld [vmem:[#allocation2 + $0x440] sm:$0xf] }
  0x4b   :  { %v5106_v9 = vld [vmem:[#allocation2 + $0x44c] sm:$0xf0] }
  0x4c   :  { %1453 = vmatpush.bf16.msra.mxu0 %v5369_v17  ;;  %v108_v17 = vld [vmem:[%s7157_s0 + $0x1e0] sm:$0xff]  ;;  %1604 = vmatpush.bf16.msrb.mxu1 %v4523_v8  ;;  %v62_v11 = vld [vmem:[%s7157_s0 + $0x70] sm:$0xff]  ;;  %v4395_v14 = vor.u32 %v5106_v9, %v4394_v6 }
  0x4d   :  { %v5553_v45 = vpack.c.bf16 %v114_v36, %v108_v17  ;;  %v128_v17 = vld [vmem:[%s7157_s0 + $0x280] sm:$0xff]  ;;  %v4044_v6 = vld [vmem:[#allocation2 + $0x190] sm:$0xf0] }
  0x4e   :  { %1649 = vmatpush.bf16.msrb.mxu2 %v3951_v20  ;;  %v5134_v20 = vld [vmem:[#allocation2 + $0x52c] sm:$0xf0]  ;;  %v68_v8 = vld [vmem:[%s7157_s0 + $0xa0] sm:$0xff] }
  0x4f   :  { %7266 = vst [vmem:[#allocation17_spill] sm:$0xff] %v5553_v45  ;;  %v4507_v36 = vor.u32 %v5134_v20, %v4506_v19  ;;  %v5631_v19 = vpack.c.bf16 %v68_v8, %v62_v11  ;;  %v4378_v20 = vld [vmem:[#allocation2 + $0x420] sm:$0xf]  ;;  %v81_v11 = vld [vmem:[%s7157_s0 + $0x108] sm:$0xff] }
  0x50   :  { %1454 = vmatpush.bf16.msra.mxu0 %v5375_v26  ;;  %v67_v26 = vld [vmem:[%s7157_s0 + $0x98] sm:$0xff]  ;;  %v76_v8 = vld [vmem:[%s7157_s0 + $0xe0] sm:$0xff] }
  0x51   :  { %v5555_v46 = vpack.c.bf16 %v67_v26, %v61_v7  ;;  %v3871_v7 = vor.u32 %v4972_v22, %v3868_v27  ;;  %v5130_v26 = vld [vmem:[#allocation2 + $0x50c] sm:$0xf0]  ;;  %1605 = vmatpush.bf16.msrb.mxu1 %v4507_v36  ;;  %7273 = vst [vmem:[#allocation24_spill] sm:$0xff] %v5631_v19  ;;  %v4363_v36 = vor.u32 %v5098_v31, %v4362_v28 }
  0x52   :  { %1650 = vmatpush.bf16.msrb.mxu2 %v3935_v38  ;;  %v4442_v38 = vld [vmem:[#allocation2 + $0x4a0] sm:$0xf] }
  0x53   :  { %7267 = vst [vmem:[#allocation18_spill] sm:$0xff] %v5555_v46  ;;  %v4443_v55 = vor.u32 %v5118_v16, %v4442_v38  ;;  %v57_v38 = vld [vmem:[%s7157_s0 + $0x48] sm:$0xff]  ;;  %v59_v16 = vld [vmem:[%s7157_s0 + $0x58] sm:$0xff] }
  0x54   :  { %1455 = vmatpush.bf16.msra.mxu0 %v5381_v35  ;;  %v4984_v35 = vld [vmem:[#allocation2 + $0x84] sm:$0xf] }
  0x55   :  { %v3919_v56 = vor.u32 %v4984_v35, %v3916_v34  ;;  %v5599_v35 = vpack.c.bf16 %v128_v17, %v122_v33  ;;  %v4076_v33 = vld [vmem:[#allocation2 + $0x1d0] sm:$0xf0] }
  0x57   :  { %1387 = vmatmul.bf16.gmra.mxu3 %v5553_v45  ;;  %1416 = vmatmul.bf16.gmra.mxu0 %v5555_v46  ;;  %7272 = vst [vmem:[#allocation23_spill] sm:$0xff] %v5599_v35 }
  0x58   :  { %1456 = vmatpush.bf16.msra.mxu0 %v5387_v44  ;;  %v5066_v44 = vld [vmem:[#allocation2 + $0x30c] sm:$0xf0]  ;;  %1651 = vmatpush.bf16.msrb.mxu2 %v3919_v56  ;;  %v3855_v56 = vor.u32 %v4968_v41, %v3852_v25 }
  0x59   :  { %1436 = vmatmul.bf16.gmra.mxu1 %v5557_v51  ;;  %1485 = vmatmul.bf16.gmra.mxu2 %v5559_v54  ;;  %v4235_v0 = vor.u32 %v5066_v44, %v4234_v60  ;;  %v4427_v60 = vor.u32 %v5114_v43, %v4426_v57  ;;  %v4410_v44 = vld [vmem:[#allocation2 + $0x460] sm:$0xf]  ;;  %v63_v43 = vld [vmem:[%s7157_s0 + $0x78] sm:$0xff] }
  0x5b   :  { %1508 = vmatpush.bf16.msrb.mxu3 %v4235_v0  ;;  %v4411_v0 = vor.u32 %v5110_v61, %v4410_v44  ;;  %v71_v44 = vld [vmem:[%s7157_s0 + $0xb8] sm:$0xff]  ;;  %v5687_v61 = vpack.c.bf16 %v69_v58, %v63_v43  ;;  %v88_v43 = vld [vmem:[%s7157_s0 + $0x140] sm:$0xff]  ;;  %v94_v58 = vld [vmem:[%s7157_s0 + $0x170] sm:$0xff] }
  0x5c   :  { %1457 = vmatpush.bf16.msra.mxu0 %v5393_v53  ;;  %v120_v53 = vld [vmem:[%s7157_s0 + $0x240] sm:$0xff]  ;;  %1652 = vmatpush.bf16.msrb.mxu2 %v3903_v62 }
  0x5d   :  { %v5593_v39 = vpack.c.bf16 %v126_v12, %v120_v53  ;;  %v132_v62 = vld [vmem:[%s7157_s0 + $0x2a0] sm:$0xff]  ;;  %v139_v53 = vld [vmem:[%s7157_s0 + $0x2d8] sm:$0xff]  ;;  %v134_v12 = vld [vmem:[%s7157_s0 + $0x2b0] sm:$0xff]  ;;  %7279 = vst [vmem:[#allocation30_spill] sm:$0xff] %v5687_v61 }
  0x5e   :  { %v5633_v22 = vpack.c.bf16 %v139_v53, %v133_v10  ;;  %v75_v10 = vld [vmem:[%s7157_s0 + $0xd8] sm:$0xff]  ;;  %v82_v53 = vld [vmem:[%s7157_s0 + $0x110] sm:$0xff] }
  0x5f   :  { %1697 = vmatpush.bf16.msra.mxu3 %v4095_v52  ;;  %v70_v52 = vld [vmem:[%s7157_s0 + $0xb0] sm:$0xff] }
  0x60   :  { %1458 = vmatpush.bf16.msra.mxu0 %v5399_v63  ;;  %v121_v63 = vld [vmem:[%s7157_s0 + $0x248] sm:$0xff]  ;;  %1653 = vmatpush.bf16.msrb.mxu2 %v3887_v15  ;;  %v5629_v15 = vpack.c.bf16 %v138_v5, %v132_v62  ;;  %7274 = vst [vmem:[#allocation25_spill] sm:$0xff] %v5633_v22  ;;  %v5689_v62 = vpack.c.bf16 %v70_v52, %v64_v59  ;;  %v5016_v5 = vld [vmem:[#allocation2 + $0x184] sm:$0xf]  ;;  %v95_v52 = vld [vmem:[%s7157_s0 + $0x178] sm:$0xff] }
  0x61   :  { %v5597_v42 = vpack.c.bf16 %v127_v32, %v121_v63  ;;  %v4379_v63 = vor.u32 %v5102_v21, %v4378_v20  ;;  %v5024_v32 = vld [vmem:[#allocation2 + $0x1c4] sm:$0xf]  ;;  %v4047_v9 = vor.u32 %v5016_v5, %v4044_v6  ;;  %v5717_v20 = vpack.c.bf16 %v82_v53, %v76_v8  ;;  %v384_v21 = vld [vmem:[%s7159_s2] sm:$0xf]  ;;  %v89_v59 = vld [vmem:[%s7157_s0 + $0x148] sm:$0xff] }
  0x62   :  { %v4079_v17 = vor.u32 %v5024_v32, %v4076_v33  ;;  %7280 = vst [vmem:[#allocation31_spill] sm:$0xff] %v5689_v62  ;;  %v5724_v32 = vperm.slane %v384_v21, 0  ;;  %v5012_v33 = vld [vmem:[#allocation2 + $0x164] sm:$0xf]  ;;  %v4012_v21 = vld [vmem:[#allocation2 + $0x150] sm:$0xf0] }
  0x63   :  { %7271 = vst [vmem:[#allocation22_spill] sm:$0xff] %v5597_v42 }
  0x64   :  { %1459 = vmatpush.bf16.msra.mxu0 %v5420_v18  ;;  %v4490_v18 = vld [vmem:[#allocation2 + $0x500] sm:$0xf]  ;;  %1654 = vmatpush.bf16.msrb.mxu2 %v3871_v7 }
  0x65   :  { %v4491_v34 = vor.u32 %v5130_v26, %v4490_v18  ;;  %1698 = vmatpush.bf16.msra.mxu3 %v4079_v17  ;;  %v52_v7 = vld [vmem:[%s7157_s0 + $0x20] sm:$0xff]  ;;  %v58_v18 = vld [vmem:[%s7157_s0 + $0x50] sm:$0xff]  ;;  %v53_v26 = vld [vmem:[%s7157_s0 + $0x28] sm:$0xff] }
  0x66   :  { %v5661_v25 = vpack.c.bf16 %v58_v18, %v52_v7  ;;  %v4028_v17 = vld [vmem:[#allocation2 + $0x170] sm:$0xf0] }
  0x67   :  { %1392 = vmatmul.bf16.gmra.mxu3 %v5593_v39  ;;  %1460 = vmatmul.bf16.vlgmr.msra.gmra.mxu0 %v5595_v40 }
  0x68   :  { %1550 = vmatpush.bf16.msrb.mxu0 %v4475_v13  ;;  %1606 = vmatpush.bf16.msrb.mxu1 %v4491_v34  ;;  %v140_v13 = vld [vmem:[%s7157_s0 + $0x2e0] sm:$0xff]  ;;  %7277 = vst [vmem:[#allocation28_spill] sm:$0xff] %v5661_v25  ;;  %v5663_v34 = vpack.c.bf16 %v59_v16, %v53_v26 }
  0x69   :  { %1441 = vmatmul.bf16.gmra.mxu1 %v5597_v42  ;;  %1490 = vmatmul.bf16.gmra.mxu2 %v5599_v35  ;;  %v5635_v27 = vpack.c.bf16 %v140_v13, %v134_v12  ;;  %v77_v12 = vld [vmem:[%s7157_s0 + $0xe8] sm:$0xff]  ;;  %v83_v13 = vld [vmem:[%s7157_s0 + $0x118] sm:$0xff]  ;;  %v4236_v42 = vld [vmem:[#allocation2 + $0x310] sm:$0xf0] }
  0x6a   :  { %1655 = vmatpush.bf16.msrb.mxu2 %v3855_v56  ;;  %7278 = vst [vmem:[#allocation29_spill] sm:$0xff] %v5663_v34  ;;  %v4060_v56 = vld [vmem:[#allocation2 + $0x1b0] sm:$0xf0]  ;;  %v5722_v28 = vpack.c.bf16 %v83_v13, %v77_v12  ;;  %v5008_v13 = vld [vmem:[#allocation2 + $0x144] sm:$0xf] }
  0x6b   :  { %7275 = vst [vmem:[#allocation26_spill] sm:$0xff] %v5635_v27 }
  0x6c   :  { %1551 = vmatpush.bf16.msrb.mxu0 %v4459_v37  ;;  %v51_v37 = vld [vmem:[%s7157_s0 + $0x18] sm:$0xff]  ;;  %7282 = vst [vmem:[#allocation33_spill] sm:$0xff] %v5722_v28 }
  0x6d   :  { %v5659_v41 = vpack.c.bf16 %v57_v38, %v51_v37 }
  0x6f   :  { %7276 = vst [vmem:[#allocation27_spill] sm:$0xff] %v5659_v41 }
  0x70   :  { %1552 = vmatpush.bf16.msrb.mxu0 %v4443_v55  ;;  %v5020_v55 = vld [vmem:[#allocation2 + $0x1a4] sm:$0xf] }
  0x71   :  { %v4063_v57 = vor.u32 %v5020_v55, %v4060_v56  ;;  %v87_v56 = vld [vmem:[%s7157_s0 + $0x138] sm:$0xff] }
  0x73   :  { %1699 = vmatpush.bf16.msra.mxu3 %v4063_v57  ;;  %v93_v57 = vld [vmem:[%s7157_s0 + $0x168] sm:$0xff] }
  0x74   :  { %1553 = vmatpush.bf16.msrb.mxu0 %v4427_v60  ;;  %v65_v60 = vld [vmem:[%s7157_s0 + $0x88] sm:$0xff]  ;;  %v5754_v6 = vpack.c.bf16 %v93_v57, %v87_v56  ;;  %v100_v57 = vld [vmem:[%s7157_s0 + $0x1a0] sm:$0xff] }
  0x75   :  { %v105_v56 = vld [vmem:[%s7157_s0 + $0x1c8] sm:$0xff] }
  0x76   :  { %7283 = vst [vmem:[#allocation34_spill] sm:$0xff] %v5754_v6 }
  0x77   :  { %1397 = vmatmul.bf16.gmra.mxu3 %v5629_v15  ;;  %1465 = vmatmul.bf16.gmra.mxu0 %v5631_v19 }
  0x78   :  { %1554 = vmatpush.bf16.msrb.mxu0 %v4411_v0  ;;  %v5691_v0 = vpack.c.bf16 %v71_v44, %v65_v60  ;;  %1700 = vmatpush.bf16.msra.mxu3 %v4047_v9  ;;  %v5756_v9 = vpack.c.bf16 %v94_v58, %v88_v43  ;;  %v106_v43 = vld [vmem:[%s7157_s0 + $0x1d0] sm:$0xff] }
  0x79   :  { %1446 = vmatmul.bf16.gmra.mxu1 %v5633_v22  ;;  %1495 = vmatmul.bf16.gmra.mxu2 %v5635_v27 }
  0x7a   :  { %7281 = vst [vmem:[#allocation32_spill] sm:$0xff] %v5691_v0 }
  0x7b   :  { %7284 = vst [vmem:[#allocation35_spill] sm:$0xff] %v5756_v9 }
  0x7c   :  { %1555 = vmatpush.bf16.msrb.mxu0 %v4395_v14  ;;  %v5715_v14 = vpack.c.bf16 %v81_v11, %v75_v10  ;;  %v5760_v11 = vpack.c.bf16 %v95_v52, %v89_v59  ;;  %v101_v59 = vld [vmem:[%s7157_s0 + $0x1a8] sm:$0xff]  ;;  %v107_v52 = vld [vmem:[%s7157_s0 + $0x1d8] sm:$0xff] }
  0x7e   :  { %7285 = vst [vmem:[#allocation36_spill] sm:$0xff] %v5760_v11 }
  0x80   :  { %1556 = vmatpush.bf16.msrb.mxu0 %v4379_v63 }
  0x84   :  { %1557 = vmatpush.bf16.msrb.mxu0 %v4363_v36  ;;  %v4031_v36 = vor.u32 %v5012_v33, %v4028_v17 }
  0x86   :  { %1701 = vmatpush.bf16.msra.mxu3 %v4031_v36 }
  0x87   :  { %1509 = vmatmul.bf16.vlgmr.msrb.gmra.mxu3 %v5659_v41  ;;  %1558 = vmatmul.bf16.vlgmr.msrb.gmra.mxu0 %v5661_v25 }
  0x89   :  { %1607 = vmatmul.bf16.vlgmr.msrb.gmra.mxu1 %v5663_v34  ;;  %1656 = vmatmul.bf16.vlgmr.msrb.gmra.mxu2 %v5431_v23 }
  0x97   :  { %1514 = vmatmul.bf16.gmra.mxu3 %v5687_v61  ;;  %1563 = vmatmul.bf16.gmra.mxu0 %v5689_v62 }
  0x99   :  { %1612 = vmatmul.bf16.gmra.mxu1 %v5691_v0  ;;  %1661 = vmatmul.bf16.gmra.mxu2 %v5473_v47  ;;  %v4428_v47 = vld [vmem:[#allocation2 + $0x490] sm:$0xf0] }
  0xa4   :  { %v1363_v63 = vpop.f32.mrf.mxu0 }
  0xa5   :  { %v1364_v58 = vadd.f32 %v1363_v63, %v5724_v32 }
  0xa6   :  { %v1422_v31 = vpop.f32.mrf.mxu1 }
  0xa7   :  { %1519 = vmatmul.bf16.gmra.mxu3 %v5715_v14  ;;  %1568 = vmatmul.bf16.gmra.mxu0 %v5717_v20 }
  0xa9   :  { %1617 = vmatmul.bf16.gmra.mxu1 %v5722_v28  ;;  %1666 = vmatmul.bf16.gmra.mxu2 %v5433_v24  ;;  %v5120_v24 = vld [vmem:[#allocation2 + $0x4c4] sm:$0xf]  ;;  %v4460_v28 = vld [vmem:[#allocation2 + $0x4d0] sm:$0xf0] }
  0xaa   :  { %v1373_v37 = vpop.f32.mrf.mxu3 }
  0xab   :  { %v1374_v38 = vadd.f32 %v1373_v37, %v5724_v32 }
  0xac   :  { %v1471_v7 = vpop.f32.mrf.mxu2  ;;  %v5731_v18 = vpop.f32.mrf.mxu0 }
  0xad   :  { %v1423_v26 = vadd.f32 %v1422_v31, %v1374_v38  ;;  %v4015_v31 = vor.u32 %v5008_v13, %v4012_v21  ;;  %v5797_v21 = vpack.c.bf16 %v107_v52, %v101_v59  ;;  %v5124_v52 = vld [vmem:[#allocation2 + $0x4e4] sm:$0xf] }
  0xae   :  { %v1424_v16 = vpop.f32.mrf.mxu1 }
  0xaf   :  { %v5733_v55 = vadd.f32 %v1471_v7, %v1423_v26  ;;  %1702 = vmatpush.bf16.msra.mxu3 %v4015_v31  ;;  %7288 = vst [vmem:[#allocation39_spill] sm:$0xff] %v5797_v21 }
  0xb2   :  { %v1375_v60 = vpop.f32.mrf.mxu3 }
  0xb3   :  { %v1376_v44 = vadd.f32 %v1375_v60, %v5724_v32 }
  0xb4   :  { %v1473_v5 = vpop.f32.mrf.mxu2  ;;  %v5758_v10 = vpop.f32.mrf.mxu0 }
  0xb5   :  { %v1425_v8 = vadd.f32 %v1424_v16, %v1376_v44  ;;  %v99_v16 = vld [vmem:[%s7157_s0 + $0x198] sm:$0xff] }
  0xb6   :  { %v1427_v53 = vpop.f32.mrf.mxu1 }
  0xb7   :  { %v5762_v12 = vadd.f32 %v1473_v5, %v1425_v8  ;;  %1524 = vmatmul.bf16.gmra.mxu3 %v5754_v6  ;;  %1573 = vmatmul.bf16.gmra.mxu0 %v5756_v9  ;;  %v5793_v8 = vpack.c.bf16 %v105_v56, %v99_v16  ;;  %v5004_v16 = vld [vmem:[#allocation2 + $0x124] sm:$0xf]  ;;  %v3996_v56 = vld [vmem:[#allocation2 + $0x130] sm:$0xf0] }
  0xb9   :  { %1622 = vmatmul.bf16.gmra.mxu1 %v5760_v11  ;;  %1671 = vmatmul.bf16.gmra.mxu2 %v5475_v48  ;;  %7286 = vst [vmem:[#allocation37_spill] sm:$0xff] %v5793_v8  ;;  %v4204_v48 = vld [vmem:[#allocation2 + $0x2d0] sm:$0xf0]  ;;  %v5088_v11 = vld [vmem:[#allocation2 + $0x3c4] sm:$0xf] }
  0xba   :  { %v1378_v33 = vpop.f32.mrf.mxu3 }
  0xbb   :  { %v1379_v17 = vadd.f32 %v1378_v33, %v5724_v32 }
  0xbc   :  { %v1476_v36 = vpop.f32.mrf.mxu2  ;;  %v5769_v37 = vpop.f32.mrf.mxu0 }
  0xbd   :  { %v1428_v38 = vadd.f32 %v1427_v53, %v1379_v17  ;;  %v5795_v53 = vpack.c.bf16 %v106_v43, %v100_v57  ;;  %v1366_v43 = vadd.f32 %v5731_v18, %v5724_v32 }
  0xbe   :  { %v1429_v7 = vpop.f32.mrf.mxu1 }
  0xbf   :  { %v5771_v26 = vadd.f32 %v1476_v36, %v1428_v38  ;;  %7287 = vst [vmem:[#allocation38_spill] sm:$0xff] %v5795_v53  ;;  %v5060_v36 = vld [vmem:[#allocation2 + $0x2e4] sm:$0xf]  ;;  %v4220_v38 = vld [vmem:[#allocation2 + $0x2f0] sm:$0xf0] }
  0xc0   :  { %v4223_v57 = vor.u32 %v5060_v36, %v4220_v38  ;;  %v4332_v38 = vld [vmem:[#allocation2 + $0x3d0] sm:$0xf0] }
  0xc2   :  { %v1380_v60 = vpop.f32.mrf.mxu3  ;;  %1746 = vmatpush.bf16.msra.mxu0 %v4223_v57 }
  0xc3   :  { %v1381_v44 = vadd.f32 %v1380_v60, %v5724_v32  ;;  %v5092_v60 = vld [vmem:[#allocation2 + $0x3e4] sm:$0xf] }
  0xc4   :  { %v1478_v5 = vpop.f32.mrf.mxu2  ;;  %v1412_v13 = vpop.f32.mrf.mxu0 }
  0xc5   :  { %v1430_v63 = vadd.f32 %v1429_v7, %v1381_v44  ;;  %v5799_v31 = vadd.f32 %v1412_v13, %v1364_v58  ;;  %v4348_v7 = vld [vmem:[#allocation2 + $0x3f0] sm:$0xf0]  ;;  %v3999_v58 = vor.u32 %v5004_v16, %v3996_v56  ;;  %v4463_v16 = vor.u32 %v5120_v24, %v4460_v28  ;;  %v117_v24 = vld [vmem:[%s7157_s0 + $0x228] sm:$0xff]  ;;  %v112_v28 = vld [vmem:[%s7157_s0 + $0x200] sm:$0xff] }
  0xc6   :  { %v1432_v33 = vpop.f32.mrf.mxu1  ;;  %v4351_v59 = vor.u32 %v5092_v60, %v4348_v7  ;;  %v4476_v44 = vld [vmem:[#allocation2 + $0x4f0] sm:$0xf0]  ;;  %v4335_v60 = vor.u32 %v5088_v11, %v4332_v38  ;;  %v119_v38 = vld [vmem:[%s7157_s0 + $0x238] sm:$0xff] }
  0xc7   :  { %v5801_v17 = vadd.f32 %v1478_v5, %v1430_v63  ;;  %1529 = vmatmul.bf16.gmra.mxu3 %v5793_v8  ;;  %1578 = vmatmul.bf16.gmra.mxu0 %v5795_v53  ;;  %v4479_v13 = vor.u32 %v5124_v52, %v4476_v44  ;;  %v5056_v63 = vld [vmem:[#allocation2 + $0x2c4] sm:$0xf]  ;;  %v111_v52 = vld [vmem:[%s7157_s0 + $0x1f8] sm:$0xff]  ;;  %v4444_v11 = vld [vmem:[#allocation2 + $0x4b0] sm:$0xf0] }
  0xc8   :  { %1703 = vmatpush.bf16.msra.mxu3 %v3999_v58  ;;  %1795 = vmatpush.bf16.msra.mxu1 %v4351_v59  ;;  %v4207_v36 = vor.u32 %v5056_v63, %v4204_v48  ;;  %v5052_v44 = vld [vmem:[#allocation2 + $0x2a4] sm:$0xf]  ;;  %v4188_v58 = vld [vmem:[#allocation2 + $0x2b0] sm:$0xf0] }
  0xc9   :  { %1627 = vmatmul.bf16.gmra.mxu1 %v5797_v21  ;;  %1676 = vmatmul.bf16.gmra.mxu2 %v5513_v1  ;;  %v5084_v59 = vld [vmem:[#allocation2 + $0x3a4] sm:$0xf]  ;;  %v4316_v63 = vld [vmem:[#allocation2 + $0x3b0] sm:$0xf0] }
  0xca   :  { %v1383_v5 = vpop.f32.mrf.mxu3  ;;  %1844 = vmatpush.bf16.msra.mxu2 %v4479_v13  ;;  %1747 = vmatpush.bf16.msra.mxu0 %v4207_v36  ;;  %v5116_v13 = vld [vmem:[#allocation2 + $0x4a4] sm:$0xf]  ;;  %v113_v36 = vld [vmem:[%s7157_s0 + $0x208] sm:$0xff] }
  0xcb   :  { %v1384_v21 = vadd.f32 %v1383_v5, %v5724_v32  ;;  %v4191_v5 = vor.u32 %v5052_v44, %v4188_v58  ;;  %v5080_v44 = vld [vmem:[#allocation2 + $0x384] sm:$0xf]  ;;  %v5839_v23 = vpack.c.bf16 %v119_v38, %v113_v36 }
  0xcc   :  { %v1481_v1 = vpop.f32.mrf.mxu2  ;;  %v1414_v18 = vpop.f32.mrf.mxu0  ;;  %1796 = vmatpush.bf16.msra.mxu1 %v4335_v60  ;;  %v5048_v60 = vld [vmem:[#allocation2 + $0x284] sm:$0xf] }
  0xcd   :  { %v1433_v56 = vadd.f32 %v1432_v33, %v1384_v21  ;;  %v5810_v7 = vadd.f32 %v1414_v18, %v1366_v43  ;;  %v118_v21 = vld [vmem:[%s7157_s0 + $0x230] sm:$0xff]  ;;  %v4447_v33 = vor.u32 %v5116_v13, %v4444_v11  ;;  %v1369_v43 = vadd.f32 %v5758_v10, %v5724_v32  ;;  %v5112_v11 = vld [vmem:[#allocation2 + $0x484] sm:$0xf]  ;;  %7291 = vst [vmem:[#allocation42_spill] sm:$0xff] %v5839_v23 }
  0xce   :  { %v1434_v57 = vpop.f32.mrf.mxu1  ;;  %1845 = vmatpush.bf16.msra.mxu2 %v4463_v16  ;;  %1748 = vmatpush.bf16.msra.mxu0 %v4191_v5  ;;  %v4300_v13 = vld [vmem:[#allocation2 + $0x390] sm:$0xf0]  ;;  %v5108_v38 = vld [vmem:[#allocation2 + $0x464] sm:$0xf] }
  0xcf   :  { %v5815_v48 = vadd.f32 %v1481_v1, %v1433_v56  ;;  %v4319_v1 = vor.u32 %v5084_v59, %v4316_v63  ;;  %v4172_v56 = vld [vmem:[#allocation2 + $0x290] sm:$0xf0]  ;;  %v5835_v59 = vpack.c.bf16 %v117_v24, %v111_v52  ;;  %v5837_v63 = vpack.c.bf16 %v118_v21, %v112_v28  ;;  %v5044_v24 = vld [vmem:[#allocation2 + $0x264] sm:$0xf] }
  0xd0   :  { %v4175_v10 = vor.u32 %v5048_v60, %v4172_v56  ;;  %v4303_v22 = vor.u32 %v5080_v44, %v4300_v13  ;;  %v4156_v28 = vld [vmem:[#allocation2 + $0x270] sm:$0xf0]  ;;  %v5076_v21 = vld [vmem:[#allocation2 + $0x364] sm:$0xf] }
  0xd1   :  { %7289 = vst [vmem:[#allocation40_spill] sm:$0xff] %v5835_v59  ;;  %1797 = vmatpush.bf16.msra.mxu1 %v4319_v1  ;;  %v4159_v1 = vor.u32 %v5044_v24, %v4156_v28  ;;  %v4412_v60 = vld [vmem:[#allocation2 + $0x470] sm:$0xf0]  ;;  %v5104_v28 = vld [vmem:[#allocation2 + $0x444] sm:$0xf] }
  0xd2   :  { %v1385_v18 = vpop.f32.mrf.mxu3  ;;  %7290 = vst [vmem:[#allocation41_spill] sm:$0xff] %v5837_v63  ;;  %1846 = vmatpush.bf16.msra.mxu2 %v4447_v33  ;;  %1749 = vmatpush.bf16.msra.mxu0 %v4175_v10  ;;  %v4284_v33 = vld [vmem:[#allocation2 + $0x370] sm:$0xf0]  ;;  %v4415_v44 = vor.u32 %v5108_v38, %v4412_v60  ;;  %v5072_v10 = vld [vmem:[#allocation2 + $0x344] sm:$0xf] }
  0xd3   :  { %v1386_v16 = vadd.f32 %v1385_v18, %v5724_v32  ;;  %v4431_v18 = vor.u32 %v5112_v11, %v4428_v47  ;;  %v1371_v47 = vadd.f32 %v5769_v37, %v5724_v32  ;;  %v4287_v36 = vor.u32 %v5076_v21, %v4284_v33  ;;  %v4268_v24 = vld [vmem:[#allocation2 + $0x350] sm:$0xf0]  ;;  %v123_v33 = vld [vmem:[%s7157_s0 + $0x258] sm:$0xff]  ;;  %v5036_v38 = vld [vmem:[#allocation2 + $0x224] sm:$0xf] }
  0xd4   :  { %v1483_v58 = vpop.f32.mrf.mxu2  ;;  %v1417_v0 = vpop.f32.mrf.mxu0  ;;  %v4396_v37 = vld [vmem:[#allocation2 + $0x450] sm:$0xf0]  ;;  %v5068_v60 = vld [vmem:[#allocation2 + $0x324] sm:$0xf] }
  0xd5   :  { %v1435_v5 = vadd.f32 %v1434_v57, %v1386_v16  ;;  %v5841_v34 = vadd.f32 %v1417_v0, %v1369_v43  ;;  %v5000_v57 = vld [vmem:[#allocation2 + $0x104] sm:$0xf]  ;;  %v3980_v0 = vld [vmem:[#allocation2 + $0x110] sm:$0xf0]  ;;  %1798 = vmatpush.bf16.msra.mxu1 %v4303_v22 }
  0xd6   :  { %v1437_v27 = vpop.f32.mrf.mxu1  ;;  %1847 = vmatpush.bf16.msra.mxu2 %v4431_v18  ;;  %v3983_v43 = vor.u32 %v5000_v57, %v3980_v0  ;;  %1750 = vmatpush.bf16.msra.mxu0 %v4159_v1  ;;  %v5040_v16 = vld [vmem:[#allocation2 + $0x244] sm:$0xf]  ;;  %v4271_v18 = vor.u32 %v5072_v10, %v4268_v24  ;;  %v4399_v1 = vor.u32 %v5104_v28, %v4396_v37 }
  0xd7   :  { %v5843_v52 = vadd.f32 %v1483_v58, %v1435_v5  ;;  %1534 = vmatmul.bf16.gmra.mxu3 %v5835_v59  ;;  %1583 = vmatmul.bf16.gmra.mxu0 %v5837_v63  ;;  %v4140_v58 = vld [vmem:[#allocation2 + $0x250] sm:$0xf0]  ;;  %v5100_v10 = vld [vmem:[#allocation2 + $0x424] sm:$0xf] }
  0xd8   :  { %1704 = vmatpush.bf16.msra.mxu3 %v3983_v43  ;;  %v4143_v5 = vor.u32 %v5040_v16, %v4140_v58  ;;  %v4124_v43 = vld [vmem:[#allocation2 + $0x230] sm:$0xf0]  ;;  %v5032_v37 = vld [vmem:[#allocation2 + $0x204] sm:$0xf] }
  0xd9   :  { %1632 = vmatmul.bf16.gmra.mxu1 %v5839_v23  ;;  %1681 = vmatmul.bf16.gmra.mxu2 %v5553_v45  ;;  %v4127_v16 = vor.u32 %v5036_v38, %v4124_v43  ;;  %v4252_v58 = vld [vmem:[#allocation2 + $0x330] sm:$0xf0] }
  0xda   :  { %v1388_v56 = vpop.f32.mrf.mxu3  ;;  %1799 = vmatpush.bf16.msra.mxu1 %v4287_v36  ;;  %1848 = vmatpush.bf16.msra.mxu2 %v4415_v44  ;;  %v124_v36 = vld [vmem:[%s7157_s0 + $0x260] sm:$0xff]  ;;  %v130_v44 = vld [vmem:[%s7157_s0 + $0x290] sm:$0xff] }
  0xdb   :  { %v1389_v13 = vadd.f32 %v1388_v56, %v5724_v32  ;;  %1751 = vmatpush.bf16.msra.mxu0 %v4143_v5  ;;  %v4255_v5 = vor.u32 %v5068_v60, %v4252_v58  ;;  %v5877_v23 = vpack.c.bf16 %v130_v44, %v124_v36  ;;  %v4364_v63 = vld [vmem:[#allocation2 + $0x410] sm:$0xf0] }
  0xdc   :  { %v1486_v11 = vpop.f32.mrf.mxu2  ;;  %v1419_v22 = vpop.f32.mrf.mxu0 }
  0xdd   :  { %v1438_v57 = vadd.f32 %v1437_v27, %v1389_v13  ;;  %v5852_v21 = vadd.f32 %v1419_v22, %v1371_v47  ;;  %v4380_v27 = vld [vmem:[#allocation2 + $0x430] sm:$0xf0]  ;;  %v129_v47 = vld [vmem:[%s7157_s0 + $0x288] sm:$0xff]  ;;  %7294 = vst [vmem:[#allocation45_spill] sm:$0xff] %v5877_v23 }
  0xde   :  { %v1439_v0 = vpop.f32.mrf.mxu1  ;;  %v125_v13 = vld [vmem:[%s7157_s0 + $0x268] sm:$0xff]  ;;  %1800 = vmatpush.bf16.msra.mxu1 %v4271_v18  ;;  %1849 = vmatpush.bf16.msra.mxu2 %v4399_v1  ;;  %v4383_v24 = vor.u32 %v5100_v10, %v4380_v27  ;;  %v4108_v22 = vld [vmem:[#allocation2 + $0x210] sm:$0xf0]  ;;  %v5875_v45 = vpack.c.bf16 %v129_v47, %v123_v33 }
  0xdf   :  { %v5857_v56 = vadd.f32 %v1486_v11, %v1438_v57  ;;  %v131_v11 = vld [vmem:[%s7157_s0 + $0x298] sm:$0xff]  ;;  %1752 = vmatpush.bf16.msra.mxu0 %v4127_v16  ;;  %v5064_v57 = vld [vmem:[#allocation2 + $0x304] sm:$0xf]  ;;  %v4111_v35 = vor.u32 %v5032_v37, %v4108_v22  ;;  %v142_v37 = vld [vmem:[%s7157_s0 + $0x2f0] sm:$0xff] }
  0xe0   :  { %7293 = vst [vmem:[#allocation44_spill] sm:$0xff] %v5875_v45  ;;  %v5879_v1 = vpack.c.bf16 %v131_v11, %v125_v13  ;;  %v4239_v60 = vor.u32 %v5064_v57, %v4236_v42  ;;  %v5156_v42 = vld [vmem:[#allocation2 + $0x5e4] sm:$0xf]  ;;  %v143_v22 = vld [vmem:[%s7157_s0 + $0x2f8] sm:$0xff] }
  0xe1   :  { %7292 = vst [vmem:[#allocation43_spill] sm:$0xff] %v5857_v56  ;;  %v5096_v56 = vld [vmem:[#allocation2 + $0x404] sm:$0xf] }
  0xe2   :  { %v1390_v28 = vpop.f32.mrf.mxu3  ;;  %1801 = vmatpush.bf16.msra.mxu1 %v4255_v5  ;;  %1850 = vmatpush.bf16.msra.mxu2 %v4383_v24  ;;  %v4367_v27 = vor.u32 %v5096_v56, %v4364_v63  ;;  %v135_v5 = vld [vmem:[%s7157_s0 + $0x2b8] sm:$0xff]  ;;  %v141_v24 = vld [vmem:[%s7157_s0 + $0x2e8] sm:$0xff] }
  0xe3   :  { %v1391_v38 = vadd.f32 %v1390_v28, %v5724_v32  ;;  %1753 = vmatpush.bf16.msra.mxu0 %v4111_v35  ;;  %v136_v28 = vld [vmem:[%s7157_s0 + $0x2c0] sm:$0xff] }
  0xe4   :  { %v1488_v43 = vpop.f32.mrf.mxu2  ;;  %v1461_v18 = vpop.f32.mrf.mxu0 }
  0xe5   :  { %v1440_v58 = vadd.f32 %v1439_v0, %v1391_v38  ;;  %v5882_v10 = vadd.f32 %v1461_v18, %v5799_v31  ;;  %v4604_v0 = vld [vmem:[#allocation2 + $0x5f0] sm:$0xf0]  ;;  %v5913_v18 = vpack.c.bf16 %v141_v24, %v135_v5 }
  0xe6   :  { %v1442_v16 = vpop.f32.mrf.mxu1  ;;  %1802 = vmatpush.bf16.msra.mxu1 %v4239_v60  ;;  %1851 = vmatpush.bf16.msra.mxu2 %v4367_v27  ;;  %v4607_v31 = vor.u32 %v5156_v42, %v4604_v0  ;;  %v5915_v60 = vpack.c.bf16 %v142_v37, %v136_v28 }
  0xe7   :  { %v5884_v33 = vadd.f32 %v1488_v43, %v1440_v58  ;;  %1539 = vmatmul.bf16.gmra.mxu3 %v5875_v45  ;;  %1588 = vmatmul.bf16.gmra.mxu0 %v5877_v23  ;;  %7295 = vst [vmem:[#allocation46_spill] sm:$0xff] %v5913_v18 }
  0xe8   :  { %1893 = vmatpush.bf16.msrb.mxu3 %v4607_v31  ;;  %7296 = vst [vmem:[#allocation47_spill] sm:$0xff] %v5915_v60 }
  0xe9   :  { %1637 = vmatmul.bf16.gmra.mxu1 %v5879_v1  ;;  %1686 = vmatmul.bf16.gmra.mxu2 %v5593_v39 }
  0xea   :  { %v1393_v47 = vpop.f32.mrf.mxu3 }
  0xeb   :  { %v1394_v36 = vadd.f32 %v1393_v47, %v5724_v32 }
  0xec   :  { %v1491_v63 = vpop.f32.mrf.mxu2  ;;  %v1463_v35 = vpop.f32.mrf.mxu0 }
  0xed   :  { %v1443_v56 = vadd.f32 %v1442_v16, %v1394_v36  ;;  %v1464_v13 = vadd.f32 %v1463_v35, %v5810_v7  ;;  %v137_v7 = vld [vmem:[%s7157_s0 + $0x2c8] sm:$0xff]  ;;  %v5152_v35 = vld [vmem:[#allocation2 + $0x5c4] sm:$0xf] }
  0xee   :  { %v1444_v44 = vpop.f32.mrf.mxu1  ;;  %v5917_v16 = vpack.c.bf16 %v143_v22, %v137_v7 }
  0xef   :  { %v5892_v11 = vadd.f32 %v1491_v63, %v1443_v56  ;;  %v4588_v56 = vld [vmem:[#allocation2 + $0x5d0] sm:$0xf0] }
  0xf0   :  { %7297 = vst [vmem:[#allocation48_spill] sm:$0xff] %v5917_v16  ;;  %v4591_v5 = vor.u32 %v5152_v35, %v4588_v56 }
  0xf2   :  { %v1395_v57 = vpop.f32.mrf.mxu3  ;;  %1894 = vmatpush.bf16.msrb.mxu3 %v4591_v5 }
  0xf3   :  { %v1396_v38 = vadd.f32 %v1395_v57, %v5724_v32 }
  0xf4   :  { %v1493_v43 = vpop.f32.mrf.mxu2  ;;  %v1466_v58 = vpop.f32.mrf.mxu0 }
  0xf5   :  { %v1445_v27 = vadd.f32 %v1444_v44, %v1396_v38  ;;  %v1467_v0 = vadd.f32 %v1466_v58, %v5841_v34 }
  0xf6   :  { %v1447_v42 = vpop.f32.mrf.mxu1 }
  0xf7   :  { %v5920_v31 = vadd.f32 %v1493_v43, %v1445_v27  ;;  %1544 = vmatmul.bf16.gmra.mxu3 %v5913_v18  ;;  %1593 = vmatmul.bf16.gmra.mxu0 %v5915_v60 }
  0xf9   :  { %1642 = vmatmul.bf16.gmra.mxu1 %v5917_v16  ;;  %1691 = vmatmul.bf16.gmra.mxu2 %v5629_v15 }
  0xfa   :  { %v1398_v47 = vpop.f32.mrf.mxu3 }
  0xfb   :  { %v1399_v36 = vadd.f32 %v1398_v47, %v5724_v32 }
  0xfc   :  { %v1496_v63 = vpop.f32.mrf.mxu2  ;;  %v1468_v44 = vpop.f32.mrf.mxu0 }
  0xfd   :  { %v1448_v24 = vadd.f32 %v1447_v42, %v1399_v36  ;;  %v1469_v28 = vadd.f32 %v1468_v44, %v5852_v21  ;;  %v5148_v21 = vld [vmem:[#allocation2 + $0x5a4] sm:$0xf]  ;;  %v4572_v42 = vld [vmem:[#allocation2 + $0x5b0] sm:$0xf0] }
  0xfe   :  { %v1449_v34 = vpop.f32.mrf.mxu1  ;;  %v4575_v47 = vor.u32 %v5148_v21, %v4572_v42 }
  0xff   :  { %v5928_v37 = vadd.f32 %v1496_v63, %v1448_v24 }
 0x100   :  { %1895 = vmatpush.bf16.msrb.mxu3 %v4575_v47 }
 0x102   :  { %v1400_v7 = vpop.f32.mrf.mxu3 }
 0x103   :  { %v1401_v22 = vadd.f32 %v1400_v7, %v5724_v32 }
 0x104   :  { %v1498_v57 = vpop.f32.mrf.mxu2  ;;  %v1559_v38 = vpop.f32.mrf.mxu0 }
 0x105   :  { %v1450_v43 = vadd.f32 %v1449_v34, %v1401_v22 }
 0x106   :  { %v1608_v58 = vpop.f32.mrf.mxu1 }
 0x107   :  { %v5931_v27 = vadd.f32 %v1498_v57, %v1450_v43  ;;  %1705 = vmatmul.bf16.vlgmr.msra.gmra.mxu3 %v5515_v2  ;;  %1754 = vmatmul.bf16.vlgmr.msra.gmra.mxu0 %v5595_v40 }
 0x109   :  { %1803 = vmatmul.bf16.vlgmr.msra.gmra.mxu1 %v5659_v41  ;;  %1852 = vmatmul.bf16.vlgmr.msra.gmra.mxu2 %v5661_v25 }
 0x10a   :  { %v1510_v36 = vpop.f32.mrf.mxu3 }
 0x10b   :  { %v1511_v32 = vadd.f32 %v1510_v36, %v5882_v10  ;;  %v5144_v10 = vld [vmem:[#allocation2 + $0x584] sm:$0xf] }
 0x10c   :  { %v5938_v63 = vpop.f32.mrf.mxu2  ;;  %v1561_v35 = vpop.f32.mrf.mxu0 }
 0x10d   :  { %v1560_v56 = vadd.f32 %v1559_v38, %v1511_v32  ;;  %v4556_v38 = vld [vmem:[#allocation2 + $0x590] sm:$0xf0] }
 0x10e   :  { %v1610_v44 = vpop.f32.mrf.mxu1  ;;  %v4559_v42 = vor.u32 %v5144_v10, %v4556_v38 }
 0x10f   :  { %v1609_v5 = vadd.f32 %v1608_v58, %v1560_v56 }
 0x110   :  { %1896 = vmatpush.bf16.msrb.mxu3 %v4559_v42 }
 0x111   :  { %v2530_v21 = vmax.f32 %v1609_v5, 0.0 }
 0x112   :  { %v1512_v24 = vpop.f32.mrf.mxu3 }
 0x113   :  { %v1513_v34 = vadd.f32 %v1512_v24, %v1464_v13 }
 0x114   :  { %v5940_v7 = vpop.f32.mrf.mxu2  ;;  %v1564_v22 = vpop.f32.mrf.mxu0 }
 0x115   :  { %v1562_v57 = vadd.f32 %v1561_v35, %v1513_v34 }
 0x116   :  { %v1613_v43 = vpop.f32.mrf.mxu1 }
 0x117   :  { %v1611_v25 = vadd.f32 %v1610_v44, %v1562_v57  ;;  %1710 = vmatmul.bf16.gmra.mxu3 %v5555_v46  ;;  %1759 = vmatmul.bf16.gmra.mxu0 %v5631_v19 }
 0x119   :  { %1808 = vmatmul.bf16.gmra.mxu1 %v5687_v61  ;;  %1857 = vmatmul.bf16.gmra.mxu2 %v5689_v62  ;;  %v2534_v58 = vmax.f32 %v1611_v25, 0.0 }
 0x11a   :  { %v1515_v13 = vpop.f32.mrf.mxu3 }
 0x11b   :  { %v5946_v47 = vpack.c.bf16 %v2534_v58, %v2530_v21  ;;  %v1516_v36 = vadd.f32 %v1515_v13, %v1467_v0  ;;  %v5140_v0 = vld [vmem:[#allocation2 + $0x564] sm:$0xf] }
 0x11c   :  { %v5948_v32 = vpop.f32.mrf.mxu2  ;;  %v1566_v35 = vpop.f32.mrf.mxu0 }
 0x11d   :  { %7298 = vst [vmem:[#allocation49_spill] sm:$0xff] %v5946_v47  ;;  %v1565_v56 = vadd.f32 %v1564_v22, %v1516_v36  ;;  %v4540_v22 = vld [vmem:[#allocation2 + $0x570] sm:$0xf0] }
 0x11e   :  { %v1615_v44 = vpop.f32.mrf.mxu1 }
 0x11f   :  { %v1614_v24 = vadd.f32 %v1613_v43, %v1565_v56  ;;  %v4543_v43 = vor.u32 %v5140_v0, %v4540_v22 }
 0x121   :  { %v2538_v10 = vmax.f32 %v1614_v24, 0.0  ;;  %1897 = vmatpush.bf16.msrb.mxu3 %v4543_v43 }
 0x122   :  { %v1517_v34 = vpop.f32.mrf.mxu3 }
 0x123   :  { %v1518_v57 = vadd.f32 %v1517_v34, %v1469_v28 }
 0x124   :  { %v5950_v61 = vpop.f32.mrf.mxu2  ;;  %v1569_v62 = vpop.f32.mrf.mxu0 }
 0x125   :  { %v1567_v41 = vadd.f32 %v1566_v35, %v1518_v57 }
 0x126   :  { %v1618_v5 = vpop.f32.mrf.mxu1 }
 0x127   :  { %v1616_v25 = vadd.f32 %v1615_v44, %v1567_v41  ;;  %1715 = vmatmul.bf16.gmra.mxu3 %v5435_v29  ;;  %1764 = vmatmul.bf16.gmra.mxu0 %v5437_v30 }
 0x129   :  { %1813 = vmatmul.bf16.gmra.mxu1 %v5715_v14  ;;  %1862 = vmatmul.bf16.gmra.mxu2 %v5717_v20  ;;  %v2542_v38 = vmax.f32 %v1616_v25, 0.0 }
 0x12a   :  { %v1520_v28 = vpop.f32.mrf.mxu3 }
 0x12b   :  { %v1521_v21 = vadd.f32 %v1520_v28, %v5733_v55  ;;  %v5959_v41 = vpack.c.bf16 %v2542_v38, %v2538_v10  ;;  %v4524_v55 = vld [vmem:[#allocation2 + $0x550] sm:$0xf0] }
 0x12c   :  { %v5957_v58 = vpop.f32.mrf.mxu2  ;;  %v1571_v42 = vpop.f32.mrf.mxu0 }
 0x12d   :  { %7299 = vst [vmem:[#allocation50_spill] sm:$0xff] %v5959_v41  ;;  %v1570_v13 = vadd.f32 %v1569_v62, %v1521_v21  ;;  %v5136_v62 = vld [vmem:[#allocation2 + $0x544] sm:$0xf]  ;;  %v4999_v41 = vld [vmem:[#allocation2 + $0xf4] sm:$0xf0] }
 0x12e   :  { %v1620_v36 = vpop.f32.mrf.mxu1  ;;  %v4527_v22 = vor.u32 %v5136_v62, %v4524_v55  ;;  %v3970_v55 = vld [vmem:[#allocation2 + $0xe8] sm:$0xf] }
 0x12f   :  { %v1619_v35 = vadd.f32 %v1618_v5, %v1570_v13 }
 0x130   :  { %1898 = vmatpush.bf16.msrb.mxu3 %v4527_v22  ;;  %v4226_v22 = vld [vmem:[#allocation2 + $0x2e8] sm:$0xf] }
 0x131   :  { %v2546_v5 = vmax.f32 %v1619_v35, 0.0 }
 0x132   :  { %v1522_v56 = vpop.f32.mrf.mxu3 }
 0x133   :  { %v1523_v44 = vadd.f32 %v1522_v56, %v5762_v12 }
 0x134   :  { %v5962_v34 = vpop.f32.mrf.mxu2  ;;  %v1574_v24 = vpop.f32.mrf.mxu0 }
 0x135   :  { %v1572_v57 = vadd.f32 %v1571_v42, %v1523_v44 }
 0x136   :  { %v1623_v25 = vpop.f32.mrf.mxu1 }
 0x137   :  { %v1621_v0 = vadd.f32 %v1620_v36, %v1572_v57  ;;  %1720 = vmatmul.bf16.gmra.mxu3 %v5477_v49  ;;  %1769 = vmatmul.bf16.gmra.mxu0 %v5479_v50 }
 0x139   :  { %1818 = vmatmul.bf16.gmra.mxu1 %v5754_v6  ;;  %1867 = vmatmul.bf16.gmra.mxu2 %v5756_v9  ;;  %v2550_v10 = vmax.f32 %v1621_v0, 0.0  ;;  %v4210_v9 = vld [vmem:[#allocation2 + $0x2c8] sm:$0xf] }
 0x13a   :  { %v1525_v12 = vpop.f32.mrf.mxu3 }
 0x13b   :  { %v1526_v43 = vadd.f32 %v1525_v12, %v5771_v26  ;;  %v5971_v28 = vpack.c.bf16 %v2550_v10, %v2546_v5  ;;  %v4098_v26 = vld [vmem:[#allocation2 + $0x1e8] sm:$0xf]  ;;  %v3971_v5 = vor.u32 %v4999_v41, %v3970_v55  ;;  %v4508_v10 = vld [vmem:[#allocation2 + $0x530] sm:$0xf0]  ;;  %v4995_v41 = vld [vmem:[#allocation2 + $0xd4] sm:$0xf0] }
 0x13c   :  { %v5969_v38 = vpop.f32.mrf.mxu2  ;;  %v1576_v21 = vpop.f32.mrf.mxu0  ;;  %v4082_v55 = vld [vmem:[#allocation2 + $0x1c8] sm:$0xf] }
 0x13d   :  { %7300 = vst [vmem:[#allocation51_spill] sm:$0xff] %v5971_v28  ;;  %v1575_v42 = vadd.f32 %v1574_v24, %v1526_v43  ;;  %v5031_v24 = vld [vmem:[#allocation2 + $0x1f4] sm:$0xf0]  ;;  %1942 = vmatpush.bf16.msrb.mxu0 %v3971_v5 }
 0x13e   :  { %v1625_v13 = vpop.f32.mrf.mxu1  ;;  %v4099_v43 = vor.u32 %v5031_v24, %v4098_v26  ;;  %v5059_v26 = vld [vmem:[#allocation2 + $0x2d4] sm:$0xf0] }
 0x13f   :  { %v1624_v36 = vadd.f32 %v1623_v25, %v1575_v42  ;;  %v5063_v25 = vld [vmem:[#allocation2 + $0x2f4] sm:$0xf0] }
 0x140   :  { %1991 = vmatpush.bf16.msrb.mxu1 %v4099_v43 }
 0x141   :  { %v2554_v42 = vmax.f32 %v1624_v36, 0.0 }
 0x142   :  { %v1527_v56 = vpop.f32.mrf.mxu3 }
 0x143   :  { %v1528_v44 = vadd.f32 %v1527_v56, %v5801_v17  ;;  %v5132_v17 = vld [vmem:[#allocation2 + $0x524] sm:$0xf] }
 0x144   :  { %v5974_v57 = vpop.f32.mrf.mxu2  ;;  %v1579_v35 = vpop.f32.mrf.mxu0  ;;  %v4511_v56 = vor.u32 %v5132_v17, %v4508_v10  ;;  %v3938_v17 = vld [vmem:[#allocation2 + $0xa8] sm:$0xf]  ;;  %v4991_v10 = vld [vmem:[#allocation2 + $0xb4] sm:$0xf0] }
 0x145   :  { %v1577_v62 = vadd.f32 %v1576_v21, %v1528_v44  ;;  %v4227_v21 = vor.u32 %v5063_v25, %v4226_v22 }
 0x146   :  { %v1628_v0 = vpop.f32.mrf.mxu1  ;;  %1899 = vmatpush.bf16.msrb.mxu3 %v4511_v56  ;;  %v5023_v56 = vld [vmem:[#allocation2 + $0x1b4] sm:$0xf0] }
 0x147   :  { %v1626_v12 = vadd.f32 %v1625_v13, %v1577_v62  ;;  %1725 = vmatmul.bf16.gmra.mxu3 %v5518_v3  ;;  %1774 = vmatmul.bf16.gmra.mxu0 %v5520_v4  ;;  %v3954_v62 = vld [vmem:[#allocation2 + $0xc8] sm:$0xf] }
 0x148   :  { %2040 = vmatpush.bf16.msrb.mxu2 %v4227_v21  ;;  %v3939_v21 = vor.u32 %v4991_v10, %v3938_v17 }
 0x149   :  { %1823 = vmatmul.bf16.gmra.mxu1 %v5793_v8  ;;  %1872 = vmatmul.bf16.gmra.mxu2 %v5795_v53  ;;  %v2558_v13 = vmax.f32 %v1626_v12, 0.0  ;;  %v3955_v53 = vor.u32 %v4995_v41, %v3954_v62  ;;  %v5027_v8 = vld [vmem:[#allocation2 + $0x1d4] sm:$0xf0]  ;;  %v4211_v12 = vor.u32 %v5059_v26, %v4210_v9  ;;  %v3922_v9 = vld [vmem:[#allocation2 + $0x88] sm:$0xf] }
 0x14a   :  { %v1530_v44 = vpop.f32.mrf.mxu3  ;;  %v4083_v5 = vor.u32 %v5027_v8, %v4082_v55  ;;  %v5055_v62 = vld [vmem:[#allocation2 + $0x2b4] sm:$0xf0] }
 0x14b   :  { %v1531_v28 = vadd.f32 %v1530_v44, %v5815_v48  ;;  %v5983_v24 = vpack.c.bf16 %v2558_v13, %v2554_v42  ;;  %1943 = vmatpush.bf16.msrb.mxu0 %v3955_v53  ;;  %v4066_v48 = vld [vmem:[#allocation2 + $0x1a8] sm:$0xf]  ;;  %v4987_v8 = vld [vmem:[#allocation2 + $0x94] sm:$0xf0] }
 0x14c   :  { %v5981_v47 = vpop.f32.mrf.mxu2  ;;  %v1581_v36 = vpop.f32.mrf.mxu0  ;;  %1992 = vmatpush.bf16.msrb.mxu1 %v4083_v5  ;;  %2041 = vmatpush.bf16.msrb.mxu2 %v4211_v12  ;;  %v4194_v44 = vld [vmem:[#allocation2 + $0x2a8] sm:$0xf]  ;;  %v4067_v41 = vor.u32 %v5023_v56, %v4066_v48  ;;  %v3923_v13 = vor.u32 %v4987_v8, %v3922_v9  ;;  %v5019_v55 = vld [vmem:[#allocation2 + $0x194] sm:$0xf0]  ;;  %v4492_v9 = vld [vmem:[#allocation2 + $0x510] sm:$0xf0] }
 0x14d   :  { %7301 = vst [vmem:[#allocation52_spill] sm:$0xff] %v5983_v24  ;;  %v1580_v22 = vadd.f32 %v1579_v35, %v1531_v28  ;;  %v4195_v6 = vor.u32 %v5055_v62, %v4194_v44  ;;  %v4050_v28 = vld [vmem:[#allocation2 + $0x188] sm:$0xf]  ;;  %v5051_v26 = vld [vmem:[#allocation2 + $0x294] sm:$0xf0] }
 0x14e   :  { %v1630_v25 = vpop.f32.mrf.mxu1  ;;  %v4051_v12 = vor.u32 %v5019_v55, %v4050_v28  ;;  %v4983_v48 = vld [vmem:[#allocation2 + $0x74] sm:$0xf0]  ;;  %v4162_v62 = vld [vmem:[#allocation2 + $0x268] sm:$0xf] }
 0x14f   :  { %v1629_v43 = vadd.f32 %v1628_v0, %v1580_v22  ;;  %1944 = vmatpush.bf16.msrb.mxu0 %v3939_v21  ;;  %v4178_v0 = vld [vmem:[#allocation2 + $0x288] sm:$0xf]  ;;  %v5015_v44 = vld [vmem:[#allocation2 + $0x174] sm:$0xf0] }
 0x150   :  { %1993 = vmatpush.bf16.msrb.mxu1 %v4067_v41  ;;  %2042 = vmatpush.bf16.msrb.mxu2 %v4195_v6  ;;  %v4179_v22 = vor.u32 %v5051_v26, %v4178_v0  ;;  %v3906_v6 = vld [vmem:[#allocation2 + $0x68] sm:$0xf]  ;;  %v5047_v41 = vld [vmem:[#allocation2 + $0x274] sm:$0xf0] }
 0x151   :  { %v4034_v21 = vld [vmem:[#allocation2 + $0x168] sm:$0xf]  ;;  %v4163_v28 = vor.u32 %v5047_v41, %v4162_v62  ;;  %v4979_v26 = vld [vmem:[#allocation2 + $0x54] sm:$0xf0] }
 0x152   :  { %v1532_v42 = vpop.f32.mrf.mxu3  ;;  %v4035_v8 = vor.u32 %v5015_v44, %v4034_v21  ;;  %v3890_v0 = vld [vmem:[#allocation2 + $0x48] sm:$0xf]  ;;  %v5011_v24 = vld [vmem:[#allocation2 + $0x154] sm:$0xf0] }
 0x153   :  { %v1533_v53 = vadd.f32 %v1532_v42, %v5843_v52  ;;  %1945 = vmatpush.bf16.msrb.mxu0 %v3923_v13  ;;  %v3907_v52 = vor.u32 %v4983_v48, %v3906_v6  ;;  %v7302_v42 = vld [vmem:[#allocation41_spill] sm:$0xff]  ;;  %v3891_v48 = vor.u32 %v4979_v26, %v3890_v0  ;;  %v5043_v21 = vld [vmem:[#allocation2 + $0x254] sm:$0xf0]  ;;  %v4130_v0 = vld [vmem:[#allocation2 + $0x228] sm:$0xf] }
 0x154   :  { %v5986_v35 = vpop.f32.mrf.mxu2  ;;  %v1584_v5 = vpop.f32.mrf.mxu0  ;;  %1994 = vmatpush.bf16.msrb.mxu1 %v4051_v12  ;;  %2043 = vmatpush.bf16.msrb.mxu2 %v4179_v22  ;;  %v4018_v12 = vld [vmem:[#allocation2 + $0x148] sm:$0xf]  ;;  %v7303_v22 = vld [vmem:[#allocation43_spill] sm:$0xff]  ;;  %v5039_v26 = vld [vmem:[#allocation2 + $0x234] sm:$0xf0] }
 0x155   :  { %v1582_v17 = vadd.f32 %v1581_v36, %v1533_v53  ;;  %v5128_v36 = vld [vmem:[#allocation2 + $0x504] sm:$0xf]  ;;  %v2562_v53 = vmax.f32 %v1629_v43, 0.0 }
 0x156   :  { %v1633_v10 = vpop.f32.mrf.mxu1  ;;  %v4495_v13 = vor.u32 %v5128_v36, %v4492_v9  ;;  %v3874_v36 = vld [vmem:[#allocation2 + $0x28] sm:$0xf]  ;;  %v4975_v9 = vld [vmem:[#allocation2 + $0x34] sm:$0xf0] }
 0x157   :  { %v1631_v56 = vadd.f32 %v1630_v25, %v1582_v17  ;;  %1730 = vmatmul.bf16.gmra.mxu3 %v5557_v51  ;;  %1779 = vmatmul.bf16.gmra.mxu0 %v5559_v54 }
 0x158   :  { %1946 = vmatpush.bf16.msrb.mxu0 %v3907_v52  ;;  %1995 = vmatpush.bf16.msrb.mxu1 %v4035_v8  ;;  %v4019_v52 = vor.u32 %v5011_v24, %v4018_v12  ;;  %v4002_v8 = vld [vmem:[#allocation2 + $0x128] sm:$0xf] }
 0x159   :  { %1828 = vmatmul.bf16.gmra.mxu1 %v5835_v59  ;;  %1877 = vmatmul.bf16.gmra.mxu2 %v7302_v42  ;;  %v2566_v25 = vmax.f32 %v1631_v56, 0.0  ;;  %v4146_v42 = vld [vmem:[#allocation2 + $0x248] sm:$0xf]  ;;  %v4131_v59 = vor.u32 %v5039_v26, %v4130_v0 }
 0x15a   :  { %v1535_v55 = vpop.f32.mrf.mxu3  ;;  %2044 = vmatpush.bf16.msrb.mxu2 %v4163_v28  ;;  %1900 = vmatpush.bf16.msrb.mxu3 %v4495_v13  ;;  %v4147_v56 = vor.u32 %v5043_v21, %v4146_v42  ;;  %v5007_v13 = vld [vmem:[#allocation2 + $0x134] sm:$0xf0]  ;;  %v3858_v24 = vld [vmem:[#allocation2 + $0x8] sm:$0xf] }
 0x15b   :  { %v1536_v17 = vadd.f32 %v1535_v55, %v7303_v22  ;;  %v5995_v44 = vpack.c.bf16 %v2566_v25, %v2562_v53  ;;  %v3875_v55 = vor.u32 %v4975_v9, %v3874_v36  ;;  %v4003_v22 = vor.u32 %v5007_v13, %v4002_v8  ;;  %v3986_v42 = vld [vmem:[#allocation2 + $0x108] sm:$0xf]  ;;  %v5035_v21 = vld [vmem:[#allocation2 + $0x214] sm:$0xf0] }
 0x15c   :  { %v5993_v6 = vpop.f32.mrf.mxu2  ;;  %v1586_v43 = vpop.f32.mrf.mxu0  ;;  %1947 = vmatpush.bf16.msrb.mxu0 %v3891_v48  ;;  %1996 = vmatpush.bf16.msrb.mxu1 %v4019_v52  ;;  %v5003_v48 = vld [vmem:[#allocation2 + $0x114] sm:$0xf0]  ;;  %v7305_v8 = vld [vmem:[#allocation22_spill] sm:$0xff] }
 0x15d   :  { %7304 = vst [vmem:[#allocation43_spill] sm:$0xff] %v5995_v44  ;;  %v1585_v62 = vadd.f32 %v1584_v5, %v1536_v17  ;;  %v4971_v5 = vld [vmem:[#allocation2 + $0x14] sm:$0xf0] }
 0x15e   :  { %v1635_v41 = vpop.f32.mrf.mxu1  ;;  %2045 = vmatpush.bf16.msrb.mxu2 %v4147_v56  ;;  %v3859_v17 = vor.u32 %v4971_v5, %v3858_v24  ;;  %v3987_v56 = vor.u32 %v5003_v48, %v3986_v42  ;;  %v5095_v13 = vld [vmem:[#allocation2 + $0x3f4] sm:$0xf0] }
 0x15f   :  { %v1634_v28 = vadd.f32 %v1633_v10, %v1585_v62  ;;  %v4114_v10 = vld [vmem:[#allocation2 + $0x208] sm:$0xf] }
 0x160   :  { %1948 = vmatpush.bf16.msrb.mxu0 %v3875_v55  ;;  %1997 = vmatpush.bf16.msrb.mxu1 %v4003_v22  ;;  %v4115_v62 = vor.u32 %v5035_v21, %v4114_v10  ;;  %v7306_v55 = vld [vmem:[#allocation23_spill] sm:$0xff] }
 0x161   :  { %v2570_v0 = vmax.f32 %v1634_v28, 0.0 }
 0x162   :  { %v1537_v53 = vpop.f32.mrf.mxu3  ;;  %2046 = vmatpush.bf16.msrb.mxu2 %v4131_v59 }
 0x163   :  { %v1538_v25 = vadd.f32 %v1537_v53, %v5884_v33  ;;  %v4354_v33 = vld [vmem:[#allocation2 + $0x3e8] sm:$0xf] }
 0x164   :  { %v5998_v12 = vpop.f32.mrf.mxu2  ;;  %v1589_v52 = vpop.f32.mrf.mxu0  ;;  %1949 = vmatpush.bf16.msrb.mxu0 %v3859_v17  ;;  %1998 = vmatpush.bf16.msrb.mxu1 %v3987_v56  ;;  %v4355_v26 = vor.u32 %v5095_v13, %v4354_v33  ;;  %v4338_v33 = vld [vmem:[#allocation2 + $0x3c8] sm:$0xf] }
 0x165   :  { %v1587_v36 = vadd.f32 %v1586_v43, %v1538_v25 }
 0x166   :  { %v1638_v9 = vpop.f32.mrf.mxu1  ;;  %2047 = vmatpush.bf16.msrb.mxu2 %v4115_v62  ;;  %2089 = vmatpush.bf16.msra.mxu3 %v4355_v26 }
 0x167   :  { %v1636_v59 = vadd.f32 %v1635_v41, %v1587_v36  ;;  %1735 = vmatmul.bf16.gmra.mxu3 %v7305_v8  ;;  %1784 = vmatmul.bf16.gmra.mxu0 %v7306_v55 }
 0x169   :  { %1833 = vmatmul.bf16.gmra.mxu1 %v5875_v45  ;;  %1882 = vmatmul.bf16.gmra.mxu2 %v5877_v23  ;;  %v2574_v22 = vmax.f32 %v1636_v59, 0.0  ;;  %v7308_v59 = vld [vmem:[#allocation25_spill] sm:$0xff]  ;;  %v4993_v45 = vld [vmem:[#allocation2 + $0xcc] sm:$0xf] }
 0x16a   :  { %v1540_v53 = vpop.f32.mrf.mxu3 }
 0x16b   :  { %v1541_v43 = vadd.f32 %v1540_v53, %v5892_v11  ;;  %v6007_v41 = vpack.c.bf16 %v2574_v22, %v2570_v0  ;;  %v7309_v11 = vld [vmem:[#allocation26_spill] sm:$0xff] }
 0x16c   :  { %v6005_v24 = vpop.f32.mrf.mxu2  ;;  %v1591_v5 = vpop.f32.mrf.mxu0 }
 0x16d   :  { %7307 = vst [vmem:[#allocation22_spill] sm:$0xff] %v6007_v41  ;;  %v1590_v42 = vadd.f32 %v1589_v52, %v1541_v43 }
 0x16e   :  { %v1640_v25 = vpop.f32.mrf.mxu1 }
 0x16f   :  { %v1639_v17 = vadd.f32 %v1638_v9, %v1590_v42  ;;  %v5091_v9 = vld [vmem:[#allocation2 + $0x3d4] sm:$0xf0] }
 0x171   :  { %v2578_v52 = vmax.f32 %v1639_v17, 0.0  ;;  %v6024_v17 = vld [vmem:[%s7159_s2] sm:$0xf] }
 0x172   :  { %v1542_v48 = vpop.f32.mrf.mxu3 }
 0x173   :  { %v1543_v10 = vadd.f32 %v1542_v48, %v5920_v31  ;;  %v4339_v31 = vor.u32 %v5091_v9, %v4338_v33  ;;  %v7311_v9 = vld [vmem:[#allocation29_spill] sm:$0xff] }
 0x174   :  { %v6010_v21 = vpop.f32.mrf.mxu2  ;;  %v1594_v28 = vpop.f32.mrf.mxu0 }
 0x175   :  { %v1592_v56 = vadd.f32 %v1591_v5, %v1543_v10  ;;  %2090 = vmatpush.bf16.msra.mxu3 %v4339_v31  ;;  %v6027_v10 = vperm.slane %v6024_v17, 1  ;;  %v4322_v31 = vld [vmem:[#allocation2 + $0x3a8] sm:$0xf] }
 0x176   :  { %v1643_v62 = vpop.f32.mrf.mxu1 }
 0x177   :  { %v1641_v36 = vadd.f32 %v1640_v25, %v1592_v56  ;;  %1740 = vmatmul.bf16.gmra.mxu3 %v7308_v59  ;;  %1789 = vmatmul.bf16.gmra.mxu0 %v7309_v11  ;;  %v1660_v44 = vadd.f32 %v5940_v7, %v6027_v10 }
 0x179   :  { %1838 = vmatmul.bf16.gmra.mxu1 %v5913_v18  ;;  %1887 = vmatmul.bf16.gmra.mxu2 %v5915_v60  ;;  %v2582_v13 = vmax.f32 %v1641_v36, 0.0 }
 0x17a   :  { %v1545_v0 = vpop.f32.mrf.mxu3 }
 0x17b   :  { %v1546_v26 = vadd.f32 %v1545_v0, %v5928_v37  ;;  %v6019_v53 = vpack.c.bf16 %v2582_v13, %v2578_v52  ;;  %v7312_v13 = vld [vmem:[#allocation5_spill] sm:$0xff] }
 0x17c   :  { %v6017_v22 = vpop.f32.mrf.mxu2  ;;  %v1596_v43 = vpop.f32.mrf.mxu0 }
 0x17d   :  { %7310 = vst [vmem:[#allocation23_spill] sm:$0xff] %v6019_v53  ;;  %v1595_v5 = vadd.f32 %v1594_v28, %v1546_v26  ;;  %v1658_v28 = vadd.f32 %v5938_v63, %v6027_v10 }
 0x17e   :  { %v1645_v42 = vpop.f32.mrf.mxu1 }
 0x17f   :  { %v1644_v25 = vadd.f32 %v1643_v62, %v1595_v5 }
 0x181   :  { %v2586_v0 = vmax.f32 %v1644_v25, 0.0 }
 0x182   :  { %v1547_v48 = vpop.f32.mrf.mxu3 }
 0x183   :  { %v1548_v37 = vadd.f32 %v1547_v48, %v5931_v27  ;;  %v5087_v27 = vld [vmem:[#allocation2 + $0x3b4] sm:$0xf0] }
 0x184   :  { %v6030_v56 = vpop.f32.mrf.mxu2  ;;  %v1755_v36 = vpop.f32.mrf.mxu0  ;;  %v4323_v48 = vor.u32 %v5087_v27, %v4322_v31  ;;  %v7314_v27 = vld [vmem:[#allocation32_spill] sm:$0xff] }
 0x185   :  { %v1597_v52 = vadd.f32 %v1596_v43, %v1548_v37 }
 0x186   :  { %v1804_v33 = vpop.f32.mrf.mxu1  ;;  %2091 = vmatpush.bf16.msra.mxu3 %v4323_v48 }
 0x187   :  { %v1646_v62 = vadd.f32 %v1645_v42, %v1597_v52  ;;  %1901 = vmatmul.bf16.vlgmr.msrb.gmra.mxu3 %v7311_v9  ;;  %1950 = vmatmul.bf16.vlgmr.msrb.gmra.mxu0 %v7312_v13 }
 0x189   :  { %1999 = vmatmul.bf16.vlgmr.msrb.gmra.mxu1 %v5515_v2  ;;  %2048 = vmatmul.bf16.vlgmr.msrb.gmra.mxu2 %v5595_v40  ;;  %v2590_v26 = vmax.f32 %v1646_v62, 0.0 }
 0x18a   :  { %v1706_v5 = vpop.f32.mrf.mxu3 }
 0x18b   :  { %v1707_v43 = vadd.f32 %v1706_v5, %v1658_v28  ;;  %v6038_v53 = vpack.c.bf16 %v2590_v26, %v2586_v0  ;;  %v1663_v28 = vadd.f32 %v5948_v32, %v6027_v10 }
 0x18c   :  { %v1853_v37 = vpop.f32.mrf.mxu2  ;;  %v1757_v63 = vpop.f32.mrf.mxu0 }
 0x18d   :  { %7313 = vst [vmem:[#allocation25_spill] sm:$0xff] %v6038_v53  ;;  %v1756_v42 = vadd.f32 %v1755_v36, %v1707_v43  ;;  %v7315_v36 = vld [vmem:[#allocation9_spill] sm:$0xff] }
 0x18e   :  { %v1806_v52 = vpop.f32.mrf.mxu1 }
 0x18f   :  { %v1805_v41 = vadd.f32 %v1804_v33, %v1756_v42 }
 0x191   :  { %v6042_v2 = vadd.f32 %v1853_v37, %v1805_v41  ;;  %v4306_v41 = vld [vmem:[#allocation2 + $0x388] sm:$0xf]  ;;  %v1665_v37 = vadd.f32 %v5950_v61, %v6027_v10 }
 0x192   :  { %v1708_v25 = vpop.f32.mrf.mxu3 }
 0x193   :  { %v1709_v40 = vadd.f32 %v1708_v25, %v1660_v44  ;;  %v5083_v44 = vld [vmem:[#allocation2 + $0x394] sm:$0xf0] }
 0x194   :  { %v1855_v60 = vpop.f32.mrf.mxu2  ;;  %v1760_v62 = vpop.f32.mrf.mxu0  ;;  %v4307_v26 = vor.u32 %v5083_v44, %v4306_v41  ;;  %v7316_v44 = vld [vmem:[#allocation33_spill] sm:$0xff] }
 0x195   :  { %v1758_v18 = vadd.f32 %v1757_v63, %v1709_v40 }
 0x196   :  { %v1809_v31 = vpop.f32.mrf.mxu1  ;;  %2092 = vmatpush.bf16.msra.mxu3 %v4307_v26 }
 0x197   :  { %v1807_v0 = vadd.f32 %v1806_v52, %v1758_v18  ;;  %1906 = vmatmul.bf16.gmra.mxu3 %v7314_v27  ;;  %1955 = vmatmul.bf16.gmra.mxu0 %v7315_v36 }
 0x199   :  { %2004 = vmatmul.bf16.gmra.mxu1 %v5555_v46  ;;  %2053 = vmatmul.bf16.gmra.mxu2 %v5631_v19  ;;  %v6050_v7 = vadd.f32 %v1855_v60, %v1807_v0  ;;  %v4482_v19 = vld [vmem:[#allocation2 + $0x4e8] sm:$0xf] }
 0x19a   :  { %v1711_v33 = vpop.f32.mrf.mxu3 }
 0x19b   :  { %v1712_v40 = vadd.f32 %v1711_v33, %v1663_v28  ;;  %v1668_v28 = vadd.f32 %v5957_v58, %v6027_v10  ;;  %v5079_v33 = vld [vmem:[#allocation2 + $0x374] sm:$0xf0] }
 0x19c   :  { %v1858_v5 = vpop.f32.mrf.mxu2  ;;  %v1762_v48 = vpop.f32.mrf.mxu0 }
 0x19d   :  { %v1761_v32 = vadd.f32 %v1760_v62, %v1712_v40  ;;  %v7317_v62 = vld [vmem:[#allocation6_spill] sm:$0xff] }
 0x19e   :  { %v1811_v18 = vpop.f32.mrf.mxu1 }
 0x19f   :  { %v1810_v43 = vadd.f32 %v1809_v31, %v1761_v32  ;;  %v4290_v31 = vld [vmem:[#allocation2 + $0x368] sm:$0xf] }
 0x1a0   :  { %v4291_v40 = vor.u32 %v5079_v33, %v4290_v31  ;;  %v7318_v33 = vld [vmem:[#allocation36_spill] sm:$0xff] }
 0x1a1   :  { %v6054_v63 = vadd.f32 %v1858_v5, %v1810_v43 }
 0x1a2   :  { %v1713_v42 = vpop.f32.mrf.mxu3  ;;  %2093 = vmatpush.bf16.msra.mxu3 %v4291_v40 }
 0x1a3   :  { %v1714_v52 = vadd.f32 %v1713_v42, %v1665_v37  ;;  %v1670_v37 = vadd.f32 %v5962_v34, %v6027_v10 }
 0x1a4   :  { %v1860_v60 = vpop.f32.mrf.mxu2  ;;  %v1765_v25 = vpop.f32.mrf.mxu0 }
 0x1a5   :  { %v1763_v0 = vadd.f32 %v1762_v48, %v1714_v52 }
 0x1a6   :  { %v1814_v53 = vpop.f32.mrf.mxu1 }
 0x1a7   :  { %v1812_v41 = vadd.f32 %v1811_v18, %v1763_v0  ;;  %1911 = vmatmul.bf16.gmra.mxu3 %v7316_v44  ;;  %1960 = vmatmul.bf16.gmra.mxu0 %v7317_v62 }
 0x1a9   :  { %2009 = vmatmul.bf16.gmra.mxu1 %v5435_v29  ;;  %2058 = vmatmul.bf16.gmra.mxu2 %v5437_v30  ;;  %v6062_v61 = vadd.f32 %v1860_v60, %v1812_v41 }
 0x1aa   :  { %v1716_v26 = vpop.f32.mrf.mxu3 }
 0x1ab   :  { %v1717_v5 = vadd.f32 %v1716_v26, %v1668_v28  ;;  %v1673_v28 = vadd.f32 %v5969_v38, %v6027_v10  ;;  %v5075_v26 = vld [vmem:[#allocation2 + $0x354] sm:$0xf0] }
 0x1ac   :  { %v1863_v48 = vpop.f32.mrf.mxu2  ;;  %v1767_v32 = vpop.f32.mrf.mxu0 }
 0x1ad   :  { %v1766_v58 = vadd.f32 %v1765_v25, %v1717_v5  ;;  %v7319_v25 = vld [vmem:[#allocation10_spill] sm:$0xff] }
 0x1ae   :  { %v1816_v18 = vpop.f32.mrf.mxu1 }
 0x1af   :  { %v1815_v43 = vadd.f32 %v1814_v53, %v1766_v58  ;;  %v4274_v53 = vld [vmem:[#allocation2 + $0x348] sm:$0xf] }
 0x1b0   :  { %v4275_v5 = vor.u32 %v5075_v26, %v4274_v53  ;;  %v5127_v53 = vld [vmem:[#allocation2 + $0x4f4] sm:$0xf0]  ;;  %v1678_v26 = vadd.f32 %v5981_v47, %v6027_v10 }
 0x1b1   :  { %v6066_v42 = vadd.f32 %v1863_v48, %v1815_v43  ;;  %v1675_v43 = vadd.f32 %v5974_v57, %v6027_v10  ;;  %v4483_v57 = vor.u32 %v5127_v53, %v4482_v19  ;;  %v5123_v19 = vld [vmem:[#allocation2 + $0x4d4] sm:$0xf0] }
 0x1b2   :  { %v1718_v52 = vpop.f32.mrf.mxu3  ;;  %2094 = vmatpush.bf16.msra.mxu3 %v4275_v5  ;;  %v5159_v5 = vld [vmem:[#allocation2 + $0x5f4] sm:$0xf0] }
 0x1b3   :  { %v1719_v0 = vadd.f32 %v1718_v52, %v1670_v37  ;;  %2138 = vmatpush.bf16.msra.mxu0 %v4483_v57  ;;  %v4450_v57 = vld [vmem:[#allocation2 + $0x4a8] sm:$0xf] }
 0x1b4   :  { %v1865_v60 = vpop.f32.mrf.mxu2  ;;  %v1770_v41 = vpop.f32.mrf.mxu0 }
 0x1b5   :  { %v1768_v30 = vadd.f32 %v1767_v32, %v1719_v0 }
 0x1b6   :  { %v1819_v29 = vpop.f32.mrf.mxu1 }
 0x1b7   :  { %v1817_v31 = vadd.f32 %v1816_v18, %v1768_v30  ;;  %1916 = vmatmul.bf16.gmra.mxu3 %v7318_v33  ;;  %1965 = vmatmul.bf16.gmra.mxu0 %v7319_v25 }
 0x1b9   :  { %2014 = vmatmul.bf16.gmra.mxu1 %v5477_v49  ;;  %2063 = vmatmul.bf16.gmra.mxu2 %v5479_v50  ;;  %v6074_v34 = vadd.f32 %v1865_v60, %v1817_v31 }
 0x1ba   :  { %v1721_v40 = vpop.f32.mrf.mxu3 }
 0x1bb   :  { %v1722_v48 = vadd.f32 %v1721_v40, %v1673_v28  ;;  %v4610_v28 = vld [vmem:[#allocation2 + $0x5e8] sm:$0xf]  ;;  %v7320_v40 = vld [vmem:[#allocation39_spill] sm:$0xff] }
 0x1bc   :  { %v1868_v32 = vpop.f32.mrf.mxu2  ;;  %v1772_v58 = vpop.f32.mrf.mxu0 }
 0x1bd   :  { %v1771_v38 = vadd.f32 %v1770_v41, %v1722_v48  ;;  %v4997_v48 = vld [vmem:[#allocation2 + $0xec] sm:$0xf] }
 0x1be   :  { %v1821_v30 = vpop.f32.mrf.mxu1 }
 0x1bf   :  { %v1820_v18 = vadd.f32 %v1819_v29, %v1771_v38  ;;  %v7321_v29 = vld [vmem:[#allocation13_spill] sm:$0xff] }
 0x1c1   :  { %v6078_v37 = vadd.f32 %v1868_v32, %v1820_v18  ;;  %v3972_v32 = vld [vmem:[#allocation2 + $0xf8] sm:$0xf0] }
 0x1c2   :  { %v1723_v52 = vpop.f32.mrf.mxu3  ;;  %v3975_v38 = vor.u32 %v4997_v48, %v3972_v32  ;;  %v5119_v32 = vld [vmem:[#allocation2 + $0x4b4] sm:$0xf0] }
 0x1c3   :  { %v1724_v0 = vadd.f32 %v1723_v52, %v1675_v43  ;;  %v4258_v43 = vld [vmem:[#allocation2 + $0x328] sm:$0xf]  ;;  %v5071_v52 = vld [vmem:[#allocation2 + $0x334] sm:$0xf0] }
 0x1c4   :  { %v1870_v60 = vpop.f32.mrf.mxu2  ;;  %v1775_v31 = vpop.f32.mrf.mxu0  ;;  %v4259_v47 = vor.u32 %v5071_v52, %v4258_v43  ;;  %2236 = vmatpush.bf16.msra.mxu2 %v3975_v38  ;;  %v4451_v43 = vor.u32 %v5119_v32, %v4450_v57  ;;  %v4989_v52 = vld [vmem:[#allocation2 + $0xac] sm:$0xf] }
 0x1c5   :  { %v1773_v50 = vadd.f32 %v1772_v58, %v1724_v0  ;;  %v4611_v58 = vor.u32 %v5159_v5, %v4610_v28  ;;  %v4594_v0 = vld [vmem:[#allocation2 + $0x5c8] sm:$0xf] }
 0x1c6   :  { %v1824_v49 = vpop.f32.mrf.mxu1  ;;  %2095 = vmatpush.bf16.msra.mxu3 %v4259_v47  ;;  %v1680_v47 = vadd.f32 %v5986_v35, %v6027_v10 }
 0x1c7   :  { %v1822_v41 = vadd.f32 %v1821_v30, %v1773_v50  ;;  %1921 = vmatmul.bf16.gmra.mxu3 %v7320_v40  ;;  %1970 = vmatmul.bf16.gmra.mxu0 %v7321_v29  ;;  %v4466_v30 = vld [vmem:[#allocation2 + $0x4c8] sm:$0xf] }
 0x1c8   :  { %2187 = vmatpush.bf16.msra.mxu1 %v4611_v58  ;;  %v4467_v23 = vor.u32 %v5123_v19, %v4466_v30  ;;  %v4578_v58 = vld [vmem:[#allocation2 + $0x5a8] sm:$0xf] }
 0x1c9   :  { %2019 = vmatmul.bf16.gmra.mxu1 %v5518_v3  ;;  %2068 = vmatmul.bf16.gmra.mxu2 %v5520_v4  ;;  %v6086_v18 = vadd.f32 %v1870_v60, %v1822_v41  ;;  %v5155_v3 = vld [vmem:[#allocation2 + $0x5d4] sm:$0xf0]  ;;  %v3956_v4 = vld [vmem:[#allocation2 + $0xd8] sm:$0xf0] }
 0x1ca   :  { %v1726_v50 = vpop.f32.mrf.mxu3  ;;  %v4595_v60 = vor.u32 %v5155_v3, %v4594_v0  ;;  %v3959_v41 = vor.u32 %v4993_v45, %v3956_v4  ;;  %2139 = vmatpush.bf16.msra.mxu0 %v4467_v23  ;;  %v4434_v23 = vld [vmem:[#allocation2 + $0x488] sm:$0xf]  ;;  %v5115_v45 = vld [vmem:[#allocation2 + $0x494] sm:$0xf0] }
 0x1cb   :  { %v1727_v53 = vadd.f32 %v1726_v50, %v1678_v26  ;;  %v5151_v26 = vld [vmem:[#allocation2 + $0x5b4] sm:$0xf0]  ;;  %v3940_v50 = vld [vmem:[#allocation2 + $0xb8] sm:$0xf0] }
 0x1cc   :  { %v1873_v46 = vpop.f32.mrf.mxu2  ;;  %v1777_v28 = vpop.f32.mrf.mxu0  ;;  %2188 = vmatpush.bf16.msra.mxu1 %v4595_v60  ;;  %2237 = vmatpush.bf16.msra.mxu2 %v3959_v41  ;;  %v4579_v30 = vor.u32 %v5151_v26, %v4578_v58  ;;  %v3943_v19 = vor.u32 %v4989_v52, %v3940_v50  ;;  %v5147_v60 = vld [vmem:[#allocation2 + $0x594] sm:$0xf0]  ;;  %v4985_v41 = vld [vmem:[#allocation2 + $0x8c] sm:$0xf]  ;;  %v1683_v52 = vadd.f32 %v5993_v6, %v6027_v10 }
 0x1cd   :  { %v1776_v5 = vadd.f32 %v1775_v31, %v1727_v53  ;;  %v4562_v31 = vld [vmem:[#allocation2 + $0x588] sm:$0xf]  ;;  %v4435_v53 = vor.u32 %v5115_v45, %v4434_v23  ;;  %v4981_v23 = vld [vmem:[#allocation2 + $0x6c] sm:$0xf]  ;;  %v3908_v45 = vld [vmem:[#allocation2 + $0x78] sm:$0xf0] }
 0x1ce   :  { %v1826_v48 = vpop.f32.mrf.mxu1  ;;  %2140 = vmatpush.bf16.msra.mxu0 %v4451_v43  ;;  %v4563_v32 = vor.u32 %v5147_v60, %v4562_v31  ;;  %v4546_v43 = vld [vmem:[#allocation2 + $0x568] sm:$0xf]  ;;  %v3911_v31 = vor.u32 %v4981_v23, %v3908_v45  ;;  %v5067_v60 = vld [vmem:[#allocation2 + $0x314] sm:$0xf0] }
 0x1cf   :  { %v1825_v38 = vadd.f32 %v1824_v49, %v1776_v5  ;;  %v3924_v5 = vld [vmem:[#allocation2 + $0x98] sm:$0xf0]  ;;  %v5103_v45 = vld [vmem:[#allocation2 + $0x434] sm:$0xf0] }
 0x1d0   :  { %2189 = vmatpush.bf16.msra.mxu1 %v4579_v30  ;;  %2238 = vmatpush.bf16.msra.mxu2 %v3943_v19  ;;  %v3927_v58 = vor.u32 %v4985_v41, %v3924_v5  ;;  %v7322_v30 = vld [vmem:[#allocation42_spill] sm:$0xff]  ;;  %v7323_v19 = vld [vmem:[#allocation17_spill] sm:$0xff]  ;;  %v5107_v5 = vld [vmem:[#allocation2 + $0x454] sm:$0xf0] }
 0x1d1   :  { %v6090_v3 = vadd.f32 %v1873_v46, %v1825_v38  ;;  %v4418_v46 = vld [vmem:[#allocation2 + $0x468] sm:$0xf]  ;;  %v5111_v38 = vld [vmem:[#allocation2 + $0x474] sm:$0xf0] }
 0x1d2   :  { %v1728_v4 = vpop.f32.mrf.mxu3  ;;  %2141 = vmatpush.bf16.msra.mxu0 %v4435_v53  ;;  %v4242_v53 = vld [vmem:[#allocation2 + $0x308] sm:$0xf] }
 0x1d3   :  { %v1729_v0 = vadd.f32 %v1728_v4, %v1680_v47  ;;  %v4419_v47 = vor.u32 %v5111_v38, %v4418_v46  ;;  %v5143_v4 = vld [vmem:[#allocation2 + $0x574] sm:$0xf0]  ;;  %v4402_v41 = vld [vmem:[#allocation2 + $0x448] sm:$0xf] }
 0x1d4   :  { %v1875_v49 = vpop.f32.mrf.mxu2  ;;  %v1780_v57 = vpop.f32.mrf.mxu0  ;;  %2190 = vmatpush.bf16.msra.mxu1 %v4563_v32  ;;  %2239 = vmatpush.bf16.msra.mxu2 %v3927_v58  ;;  %v4530_v32 = vld [vmem:[#allocation2 + $0x548] sm:$0xf]  ;;  %v4403_v46 = vor.u32 %v5107_v5, %v4402_v41  ;;  %v5139_v38 = vld [vmem:[#allocation2 + $0x554] sm:$0xf0] }
 0x1d5   :  { %v1778_v26 = vadd.f32 %v1777_v28, %v1729_v0  ;;  %v4547_v28 = vor.u32 %v5143_v4, %v4546_v43 }
 0x1d6   :  { %v1829_v35 = vpop.f32.mrf.mxu1  ;;  %2142 = vmatpush.bf16.msra.mxu0 %v4419_v47  ;;  %v4386_v47 = vld [vmem:[#allocation2 + $0x428] sm:$0xf] }
 0x1d7   :  { %v1827_v50 = vadd.f32 %v1826_v48, %v1778_v26  ;;  %1926 = vmatmul.bf16.gmra.mxu3 %v7322_v30  ;;  %1975 = vmatmul.bf16.gmra.mxu0 %v7323_v19  ;;  %v4243_v48 = vor.u32 %v5067_v60, %v4242_v53  ;;  %v4387_v53 = vor.u32 %v5103_v45, %v4386_v47  ;;  %v4973_v60 = vld [vmem:[#allocation2 + $0x2c] sm:$0xf] }
 0x1d8   :  { %2191 = vmatpush.bf16.msra.mxu1 %v4547_v28  ;;  %2240 = vmatpush.bf16.msra.mxu2 %v3911_v31  ;;  %v4514_v28 = vld [vmem:[#allocation2 + $0x528] sm:$0xf] }
 0x1d9   :  { %2024 = vmatmul.bf16.gmra.mxu1 %v5557_v51  ;;  %2073 = vmatmul.bf16.gmra.mxu2 %v5559_v54  ;;  %v6098_v0 = vadd.f32 %v1875_v49, %v1827_v50  ;;  %v4977_v51 = vld [vmem:[#allocation2 + $0x4c] sm:$0xf]  ;;  %v3892_v54 = vld [vmem:[#allocation2 + $0x58] sm:$0xf0]  ;;  %v4531_v49 = vor.u32 %v5139_v38, %v4530_v32 }
 0x1da   :  { %v1731_v6 = vpop.f32.mrf.mxu3  ;;  %2096 = vmatpush.bf16.msra.mxu3 %v4243_v48  ;;  %v3895_v50 = vor.u32 %v4977_v51, %v3892_v54  ;;  %2143 = vmatpush.bf16.msra.mxu0 %v4403_v46  ;;  %v1685_v48 = vadd.f32 %v5998_v12, %v6027_v10  ;;  %v4370_v54 = vld [vmem:[#allocation2 + $0x408] sm:$0xf] }
 0x1db   :  { %v1732_v58 = vadd.f32 %v1731_v6, %v1683_v52  ;;  %v5135_v52 = vld [vmem:[#allocation2 + $0x534] sm:$0xf0]  ;;  %v3876_v6 = vld [vmem:[#allocation2 + $0x38] sm:$0xf0] }
 0x1dc   :  { %v1878_v26 = vpop.f32.mrf.mxu2  ;;  %v1782_v43 = vpop.f32.mrf.mxu0  ;;  %2192 = vmatpush.bf16.msra.mxu1 %v4531_v49  ;;  %2241 = vmatpush.bf16.msra.mxu2 %v3895_v50  ;;  %v4515_v41 = vor.u32 %v5135_v52, %v4514_v28  ;;  %v3879_v5 = vor.u32 %v4973_v60, %v3876_v6  ;;  %v5131_v49 = vld [vmem:[#allocation2 + $0x514] sm:$0xf0]  ;;  %v4969_v50 = vld [vmem:[#allocation2 + $0xc] sm:$0xf] }
 0x1dd   :  { %v1781_v4 = vadd.f32 %v1780_v57, %v1732_v58  ;;  %v5099_v57 = vld [vmem:[#allocation2 + $0x414] sm:$0xf0]  ;;  %v4498_v58 = vld [vmem:[#allocation2 + $0x508] sm:$0xf]  ;;  %v5029_v60 = vld [vmem:[#allocation2 + $0x1ec] sm:$0xf] }
 0x1de   :  { %v1831_v23 = vpop.f32.mrf.mxu1  ;;  %2144 = vmatpush.bf16.msra.mxu0 %v4387_v53  ;;  %v4371_v38 = vor.u32 %v5099_v57, %v4370_v54  ;;  %v4499_v45 = vor.u32 %v5131_v49, %v4498_v58  ;;  %v1690_v57 = vadd.f32 %v6010_v21, %v6027_v10  ;;  %v5025_v21 = vld [vmem:[#allocation2 + $0x1cc] sm:$0xf] }
 0x1df   :  { %v1830_v31 = vadd.f32 %v1829_v35, %v1781_v4  ;;  %v3860_v4 = vld [vmem:[#allocation2 + $0x18] sm:$0xf0] }
 0x1e0   :  { %2193 = vmatpush.bf16.msra.mxu1 %v4515_v41  ;;  %2242 = vmatpush.bf16.msra.mxu2 %v3879_v5  ;;  %v3863_v28 = vor.u32 %v4969_v50, %v3860_v4 }
 0x1e1   :  { %v6102_v32 = vadd.f32 %v1878_v26, %v1830_v31  ;;  %v1688_v26 = vadd.f32 %v6005_v24, %v6027_v10 }
 0x1e2   :  { %v1733_v51 = vpop.f32.mrf.mxu3  ;;  %2145 = vmatpush.bf16.msra.mxu0 %v4371_v38 }
 0x1e3   :  { %v1734_v46 = vadd.f32 %v1733_v51, %v1685_v48 }
 0x1e4   :  { %v1880_v35 = vpop.f32.mrf.mxu2  ;;  %v1785_v47 = vpop.f32.mrf.mxu0  ;;  %2194 = vmatpush.bf16.msra.mxu1 %v4499_v45  ;;  %2243 = vmatpush.bf16.msra.mxu2 %v3863_v28  ;;  %v1693_v45 = vadd.f32 %v6017_v22, %v6027_v10 }
 0x1e5   :  { %v1783_v52 = vadd.f32 %v1782_v43, %v1734_v46  ;;  %v4100_v43 = vld [vmem:[#allocation2 + $0x1f8] sm:$0xf0] }
 0x1e6   :  { %v1834_v12 = vpop.f32.mrf.mxu1  ;;  %v4103_v41 = vor.u32 %v5029_v60, %v4100_v43 }
 0x1e7   :  { %v1832_v31 = vadd.f32 %v1831_v23, %v1783_v52  ;;  %1931 = vmatmul.bf16.gmra.mxu3 %v5879_v1  ;;  %1980 = vmatmul.bf16.gmra.mxu0 %v5593_v39 }
 0x1e8   :  { %2285 = vmatpush.bf16.msrb.mxu3 %v4103_v41 }
 0x1e9   :  { %2029 = vmatmul.bf16.gmra.mxu1 %v7305_v8  ;;  %2078 = vmatmul.bf16.gmra.mxu2 %v7306_v55  ;;  %v6110_v53 = vadd.f32 %v1880_v35, %v1832_v31 }
 0x1ea   :  { %v1736_v6 = vpop.f32.mrf.mxu3 }
 0x1eb   :  { %v1737_v5 = vadd.f32 %v1736_v6, %v1688_v26 }
 0x1ec   :  { %v1883_v48 = vpop.f32.mrf.mxu2  ;;  %v1787_v51 = vpop.f32.mrf.mxu0 }
 0x1ed   :  { %v1786_v24 = vadd.f32 %v1785_v47, %v1737_v5  ;;  %v4084_v47 = vld [vmem:[#allocation2 + $0x1d8] sm:$0xf0]  ;;  %v1695_v5 = vadd.f32 %v6030_v56, %v6027_v10 }
 0x1ee   :  { %v1836_v23 = vpop.f32.mrf.mxu1  ;;  %v4068_v10 = vld [vmem:[#allocation2 + $0x1b8] sm:$0xf0] }
 0x1ef   :  { %v1835_v54 = vadd.f32 %v1834_v12, %v1786_v24  ;;  %v4087_v12 = vor.u32 %v5025_v21, %v4084_v47 }
 0x1f1   :  { %v6114_v58 = vadd.f32 %v1883_v48, %v1835_v54  ;;  %2286 = vmatpush.bf16.msrb.mxu3 %v4087_v12 }
 0x1f2   :  { %v1738_v46 = vpop.f32.mrf.mxu3 }
 0x1f3   :  { %v1739_v38 = vadd.f32 %v1738_v46, %v1690_v57 }
 0x1f4   :  { %v1885_v35 = vpop.f32.mrf.mxu2  ;;  %v1790_v49 = vpop.f32.mrf.mxu0 }
 0x1f5   :  { %v1788_v50 = vadd.f32 %v1787_v51, %v1739_v38  ;;  %v6129_v51 = vperm.slane %v6024_v17, 2  ;;  %v5021_v17 = vld [vmem:[#allocation2 + $0x1ac] sm:$0xf] }
 0x1f6   :  { %v1839_v4 = vpop.f32.mrf.mxu1 }
 0x1f7   :  { %v1837_v28 = vadd.f32 %v1836_v23, %v1788_v50  ;;  %1936 = vmatmul.bf16.gmra.mxu3 %v5917_v16  ;;  %1985 = vmatmul.bf16.gmra.mxu0 %v5629_v15 }
 0x1f9   :  { %2034 = vmatmul.bf16.gmra.mxu1 %v7308_v59  ;;  %2083 = vmatmul.bf16.gmra.mxu2 %v7309_v11  ;;  %v6122_v52 = vadd.f32 %v1885_v35, %v1837_v28  ;;  %v4071_v28 = vor.u32 %v5021_v17, %v4068_v10 }
 0x1fa   :  { %v1741_v26 = vpop.f32.mrf.mxu3 }
 0x1fb   :  { %v1742_v31 = vadd.f32 %v1741_v26, %v1693_v45  ;;  %v7324_v45 = vld [vmem:[#allocation27_spill] sm:$0xff]  ;;  %2287 = vmatpush.bf16.msrb.mxu3 %v4071_v28 }
 0x1fc   :  { %v1888_v60 = vpop.f32.mrf.mxu2  ;;  %v1792_v43 = vpop.f32.mrf.mxu0 }
 0x1fd   :  { %v1791_v22 = vadd.f32 %v1790_v49, %v1742_v31 }
 0x1fe   :  { %v1841_v6 = vpop.f32.mrf.mxu1 }
 0x1ff   :  { %v1840_v41 = vadd.f32 %v1839_v4, %v1791_v22  ;;  %v7325_v4 = vld [vmem:[#allocation28_spill] sm:$0xff] }
 0x201   :  { %v6126_v48 = vadd.f32 %v1888_v60, %v1840_v41 }
 0x202   :  { %v1743_v24 = vpop.f32.mrf.mxu3 }
 0x203   :  { %v1744_v23 = vadd.f32 %v1743_v24, %v1695_v5 }
 0x204   :  { %v1890_v54 = vpop.f32.mrf.mxu2  ;;  %v1951_v57 = vpop.f32.mrf.mxu0 }
 0x205   :  { %v1793_v46 = vadd.f32 %v1792_v43, %v1744_v23  ;;  %v1952_v38 = vadd.f32 %v1951_v57, %v6129_v51 }
 0x206   :  { %v2000_v35 = vpop.f32.mrf.mxu1 }
 0x207   :  { %v1842_v50 = vadd.f32 %v1841_v6, %v1793_v46  ;;  %v2001_v49 = vadd.f32 %v2000_v35, %v1952_v38  ;;  %2097 = vmatmul.bf16.vlgmr.msra.gmra.mxu3 %v7324_v45  ;;  %2146 = vmatmul.bf16.vlgmr.msra.gmra.mxu0 %v7325_v4  ;;  %v7326_v35 = vld [vmem:[#allocation30_spill] sm:$0xff] }
 0x209   :  { %2195 = vmatmul.bf16.vlgmr.msra.gmra.mxu1 %v7311_v9  ;;  %2244 = vmatmul.bf16.vlgmr.msra.gmra.mxu2 %v7312_v13  ;;  %v6136_v56 = vadd.f32 %v1890_v54, %v1842_v50  ;;  %v7327_v50 = vld [vmem:[#allocation31_spill] sm:$0xff] }
 0x20a   :  { %v1902_v21 = vpop.f32.mrf.mxu3 }
 0x20b   :  { %v1903_v47 = vadd.f32 %v1902_v21, %v6042_v2 }
 0x20c   :  { %v2049_v12 = vpop.f32.mrf.mxu2  ;;  %v1953_v31 = vpop.f32.mrf.mxu0 }
 0x20d   :  { %v6139_v26 = vadd.f32 %v2049_v12, %v2001_v49  ;;  %v1954_v60 = vadd.f32 %v1953_v31, %v6129_v51  ;;  %v2531_v23 = vmax.f32 %v1903_v47, 0.0  ;;  %v4052_v49 = vld [vmem:[#allocation2 + $0x198] sm:$0xf0] }
 0x20e   :  { %v2002_v43 = vpop.f32.mrf.mxu1 }
 0x20f   :  { %v2003_v22 = vadd.f32 %v2002_v43, %v1954_v60 }
 0x212   :  { %v1904_v6 = vpop.f32.mrf.mxu3 }
 0x213   :  { %v1905_v13 = vadd.f32 %v1904_v6, %v6050_v7  ;;  %v5017_v7 = vld [vmem:[#allocation2 + $0x18c] sm:$0xf] }
 0x214   :  { %v2051_v41 = vpop.f32.mrf.mxu2  ;;  %v1956_v24 = vpop.f32.mrf.mxu0  ;;  %v4055_v17 = vor.u32 %v5017_v7, %v4052_v49 }
 0x215   :  { %v6143_v5 = vadd.f32 %v2051_v41, %v2003_v22  ;;  %v2535_v54 = vmax.f32 %v1905_v13, 0.0  ;;  %v1957_v2 = vadd.f32 %v1956_v24, %v6129_v51 }
 0x216   :  { %v2005_v57 = vpop.f32.mrf.mxu1  ;;  %2288 = vmatpush.bf16.msrb.mxu3 %v4055_v17 }
 0x217   :  { %v6146_v46 = vpack.c.bf16 %v2535_v54, %v2531_v23  ;;  %v2006_v38 = vadd.f32 %v2005_v57, %v1957_v2  ;;  %2102 = vmatmul.bf16.gmra.mxu3 %v7326_v35  ;;  %2151 = vmatmul.bf16.gmra.mxu0 %v7327_v50 }
 0x219   :  { %2200 = vmatmul.bf16.gmra.mxu1 %v7314_v27  ;;  %2249 = vmatmul.bf16.gmra.mxu2 %v7315_v36 }
 0x21a   :  { %v1907_v10 = vpop.f32.mrf.mxu3 }
 0x21b   :  { %v1908_v28 = vadd.f32 %v1907_v10, %v6054_v63 }
 0x21c   :  { %v2054_v21 = vpop.f32.mrf.mxu2  ;;  %v1958_v12 = vpop.f32.mrf.mxu0 }
 0x21d   :  { %v6153_v47 = vadd.f32 %v2054_v21, %v2006_v38  ;;  %v1959_v31 = vadd.f32 %v1958_v12, %v6129_v51  ;;  %v2539_v24 = vmax.f32 %v1908_v28, 0.0  ;;  %v4036_v38 = vld [vmem:[#allocation2 + $0x178] sm:$0xf0] }
 0x21e   :  { %v2007_v60 = vpop.f32.mrf.mxu1 }
 0x21f   :  { %v2008_v43 = vadd.f32 %v2007_v60, %v1959_v31 }
 0x222   :  { %v1909_v22 = vpop.f32.mrf.mxu3 }
 0x223   :  { %v1910_v6 = vadd.f32 %v1909_v22, %v6062_v61  ;;  %v5013_v61 = vld [vmem:[#allocation2 + $0x16c] sm:$0xf] }
 0x224   :  { %v2056_v13 = vpop.f32.mrf.mxu2  ;;  %v1961_v41 = vpop.f32.mrf.mxu0  ;;  %v4039_v7 = vor.u32 %v5013_v61, %v4036_v38  ;;  %v4020_v38 = vld [vmem:[#allocation2 + $0x158] sm:$0xf0] }
 0x225   :  { %v6157_v36 = vadd.f32 %v2056_v13, %v2008_v43  ;;  %v2543_v23 = vmax.f32 %v1910_v6, 0.0  ;;  %v1962_v63 = vadd.f32 %v1961_v41, %v6129_v51 }
 0x226   :  { %v2010_v54 = vpop.f32.mrf.mxu1  ;;  %2289 = vmatpush.bf16.msrb.mxu3 %v4039_v7 }
 0x227   :  { %v2011_v2 = vadd.f32 %v2010_v54, %v1962_v63  ;;  %2107 = vmatmul.bf16.gmra.mxu3 %v5715_v14  ;;  %2156 = vmatmul.bf16.gmra.mxu0 %v5717_v20  ;;  %v6162_v57 = vpack.c.bf16 %v2543_v23, %v2539_v24  ;;  %v7328_v54 = vld [vmem:[#allocation34_spill] sm:$0xff] }
 0x229   :  { %2205 = vmatmul.bf16.gmra.mxu1 %v7316_v44  ;;  %2254 = vmatmul.bf16.gmra.mxu2 %v7317_v62 }
 0x22a   :  { %v1912_v49 = vpop.f32.mrf.mxu3 }
 0x22b   :  { %v1913_v17 = vadd.f32 %v1912_v49, %v6066_v42 }
 0x22c   :  { %v2059_v10 = vpop.f32.mrf.mxu2  ;;  %v1963_v21 = vpop.f32.mrf.mxu0 }
 0x22d   :  { %v6167_v28 = vadd.f32 %v2059_v10, %v2011_v2  ;;  %v1964_v12 = vadd.f32 %v1963_v21, %v6129_v51  ;;  %v2547_v41 = vmax.f32 %v1913_v17, 0.0  ;;  %v7329_v2 = vld [vmem:[#allocation35_spill] sm:$0xff] }
 0x22e   :  { %v2012_v31 = vpop.f32.mrf.mxu1 }
 0x22f   :  { %v2013_v60 = vadd.f32 %v2012_v31, %v1964_v12 }
 0x232   :  { %v1914_v43 = vpop.f32.mrf.mxu3 }
 0x233   :  { %v1915_v22 = vadd.f32 %v1914_v43, %v6074_v34  ;;  %v5009_v34 = vld [vmem:[#allocation2 + $0x14c] sm:$0xf] }
 0x234   :  { %v2061_v6 = vpop.f32.mrf.mxu2  ;;  %v1966_v13 = vpop.f32.mrf.mxu0  ;;  %v4023_v7 = vor.u32 %v5009_v34, %v4020_v38  ;;  %v5061_v34 = vld [vmem:[#allocation2 + $0x2ec] sm:$0xf] }
 0x235   :  { %v6171_v62 = vadd.f32 %v2061_v6, %v2013_v60  ;;  %v2551_v24 = vmax.f32 %v1915_v22, 0.0  ;;  %v1967_v42 = vadd.f32 %v1966_v13, %v6129_v51  ;;  %v5093_v38 = vld [vmem:[#allocation2 + $0x3ec] sm:$0xf] }
 0x236   :  { %v2015_v23 = vpop.f32.mrf.mxu1  ;;  %2290 = vmatpush.bf16.msrb.mxu3 %v4023_v7 }
 0x237   :  { %v2016_v63 = vadd.f32 %v2015_v23, %v1967_v42  ;;  %2112 = vmatmul.bf16.gmra.mxu3 %v7328_v54  ;;  %2161 = vmatmul.bf16.gmra.mxu0 %v7329_v2  ;;  %v6176_v61 = vpack.c.bf16 %v2551_v24, %v2547_v41 }
 0x239   :  { %7330 = vst [vmem:[#allocation26_spill] sm:$0xff] %v6176_v61  ;;  %2210 = vmatmul.bf16.gmra.mxu1 %v7318_v33  ;;  %2259 = vmatmul.bf16.gmra.mxu2 %v7319_v25 }
 0x23a   :  { %v1917_v49 = vpop.f32.mrf.mxu3 }
 0x23b   :  { %v1918_v17 = vadd.f32 %v1917_v49, %v6078_v37  ;;  %v7331_v49 = vld [vmem:[#allocation37_spill] sm:$0xff] }
 0x23c   :  { %v2064_v10 = vpop.f32.mrf.mxu2  ;;  %v1968_v12 = vpop.f32.mrf.mxu0 }
 0x23d   :  { %v6181_v21 = vadd.f32 %v2064_v10, %v2016_v63  ;;  %v1969_v31 = vadd.f32 %v1968_v12, %v6129_v51  ;;  %v2555_v24 = vmax.f32 %v1918_v17, 0.0  ;;  %v4228_v63 = vld [vmem:[#allocation2 + $0x2f8] sm:$0xf0]  ;;  %v7332_v10 = vld [vmem:[#allocation38_spill] sm:$0xff] }
 0x23e   :  { %v2017_v60 = vpop.f32.mrf.mxu1  ;;  %v4231_v12 = vor.u32 %v5061_v34, %v4228_v63  ;;  %v5005_v17 = vld [vmem:[#allocation2 + $0x12c] sm:$0xf]  ;;  %v4212_v34 = vld [vmem:[#allocation2 + $0x2d8] sm:$0xf0] }
 0x23f   :  { %v2018_v43 = vadd.f32 %v2017_v60, %v1969_v31  ;;  %v4356_v31 = vld [vmem:[#allocation2 + $0x3f8] sm:$0xf0]  ;;  %v5089_v63 = vld [vmem:[#allocation2 + $0x3cc] sm:$0xf] }
 0x240   :  { %v4484_v60 = vld [vmem:[#allocation2 + $0x4f8] sm:$0xf0]  ;;  %2334 = vmatpush.bf16.msrb.mxu0 %v4231_v12 }
 0x242   :  { %v1919_v22 = vpop.f32.mrf.mxu3 }
 0x243   :  { %v1920_v6 = vadd.f32 %v1919_v22, %v6086_v18  ;;  %v5125_v18 = vld [vmem:[#allocation2 + $0x4ec] sm:$0xf]  ;;  %v4004_v22 = vld [vmem:[#allocation2 + $0x138] sm:$0xf0] }
 0x244   :  { %v2066_v13 = vpop.f32.mrf.mxu2  ;;  %v1971_v41 = vpop.f32.mrf.mxu0 }
 0x245   :  { %v6185_v25 = vadd.f32 %v2066_v13, %v2018_v43  ;;  %v2559_v42 = vmax.f32 %v1920_v6, 0.0  ;;  %v1972_v37 = vadd.f32 %v1971_v41, %v6129_v51  ;;  %v4359_v6 = vor.u32 %v5093_v38, %v4356_v31 }
 0x246   :  { %v2020_v23 = vpop.f32.mrf.mxu1  ;;  %v4487_v13 = vor.u32 %v5125_v18, %v4484_v60  ;;  %v4007_v41 = vor.u32 %v5005_v17, %v4004_v22  ;;  %v5053_v17 = vld [vmem:[#allocation2 + $0x2ac] sm:$0xf]  ;;  %v4196_v22 = vld [vmem:[#allocation2 + $0x2b8] sm:$0xf0] }
 0x247   :  { %v2021_v7 = vadd.f32 %v2020_v23, %v1972_v37  ;;  %2117 = vmatmul.bf16.gmra.mxu3 %v7331_v49  ;;  %2166 = vmatmul.bf16.gmra.mxu0 %v7332_v10  ;;  %v6190_v43 = vpack.c.bf16 %v2559_v42, %v2555_v24  ;;  %v5057_v23 = vld [vmem:[#allocation2 + $0x2cc] sm:$0xf] }
 0x248   :  { %2383 = vmatpush.bf16.msrb.mxu1 %v4359_v6  ;;  %2432 = vmatpush.bf16.msrb.mxu2 %v4487_v13  ;;  %v4215_v42 = vor.u32 %v5057_v23, %v4212_v34  ;;  %v4199_v13 = vor.u32 %v5053_v17, %v4196_v22  ;;  %v4452_v23 = vld [vmem:[#allocation2 + $0x4b8] sm:$0xf0] }
 0x249   :  { %7333 = vst [vmem:[#allocation29_spill] sm:$0xff] %v6190_v43  ;;  %2215 = vmatmul.bf16.gmra.mxu1 %v7320_v40  ;;  %2264 = vmatmul.bf16.gmra.mxu2 %v7321_v29  ;;  %v4340_v40 = vld [vmem:[#allocation2 + $0x3d8] sm:$0xf0]  ;;  %v5121_v43 = vld [vmem:[#allocation2 + $0x4cc] sm:$0xf] }
 0x24a   :  { %v1922_v37 = vpop.f32.mrf.mxu3  ;;  %2291 = vmatpush.bf16.msrb.mxu3 %v4007_v41  ;;  %v4468_v29 = vld [vmem:[#allocation2 + $0x4d8] sm:$0xf0]  ;;  %v4343_v31 = vor.u32 %v5089_v63, %v4340_v40  ;;  %2335 = vmatpush.bf16.msrb.mxu0 %v4215_v42  ;;  %v5049_v40 = vld [vmem:[#allocation2 + $0x28c] sm:$0xf] }
 0x24b   :  { %v1923_v33 = vadd.f32 %v1922_v37, %v6090_v3  ;;  %v4471_v18 = vor.u32 %v5121_v43, %v4468_v29  ;;  %v5085_v3 = vld [vmem:[#allocation2 + $0x3ac] sm:$0xf]  ;;  %v4324_v41 = vld [vmem:[#allocation2 + $0x3b8] sm:$0xf0] }
 0x24c   :  { %v2069_v24 = vpop.f32.mrf.mxu2  ;;  %v1973_v38 = vpop.f32.mrf.mxu0  ;;  %2384 = vmatpush.bf16.msrb.mxu1 %v4343_v31  ;;  %v5117_v37 = vld [vmem:[#allocation2 + $0x4ac] sm:$0xf]  ;;  %v4327_v34 = vor.u32 %v5085_v3, %v4324_v41  ;;  %v4180_v43 = vld [vmem:[#allocation2 + $0x298] sm:$0xf0] }
 0x24d   :  { %v6195_v61 = vadd.f32 %v2069_v24, %v2021_v7  ;;  %v1974_v12 = vadd.f32 %v1973_v38, %v6129_v51  ;;  %2433 = vmatpush.bf16.msrb.mxu2 %v4471_v18  ;;  %v4455_v7 = vor.u32 %v5117_v37, %v4452_v23  ;;  %v5081_v63 = vld [vmem:[#allocation2 + $0x38c] sm:$0xf]  ;;  %v4183_v38 = vor.u32 %v5049_v40, %v4180_v43  ;;  %v4308_v31 = vld [vmem:[#allocation2 + $0x398] sm:$0xf0]  ;;  %v7335_v43 = vld [vmem:[#allocation41_spill] sm:$0xff] }
 0x24e   :  { %v2022_v60 = vpop.f32.mrf.mxu1  ;;  %2336 = vmatpush.bf16.msrb.mxu0 %v4199_v13  ;;  %v5113_v18 = vld [vmem:[#allocation2 + $0x48c] sm:$0xf]  ;;  %v4311_v22 = vor.u32 %v5081_v63, %v4308_v31  ;;  %v2563_v41 = vmax.f32 %v1923_v33, 0.0  ;;  %v7334_v40 = vld [vmem:[#allocation40_spill] sm:$0xff] }
 0x24f   :  { %v2023_v6 = vadd.f32 %v2022_v60, %v1974_v12  ;;  %v4436_v12 = vld [vmem:[#allocation2 + $0x498] sm:$0xf0]  ;;  %v5109_v63 = vld [vmem:[#allocation2 + $0x46c] sm:$0xf] }
 0x250   :  { %2385 = vmatpush.bf16.msrb.mxu1 %v4327_v34  ;;  %v4439_v3 = vor.u32 %v5113_v18, %v4436_v12  ;;  %v5045_v34 = vld [vmem:[#allocation2 + $0x26c] sm:$0xf]  ;;  %v4420_v31 = vld [vmem:[#allocation2 + $0x478] sm:$0xf0] }
 0x251   :  { %2434 = vmatpush.bf16.msrb.mxu2 %v4455_v7  ;;  %v5077_v7 = vld [vmem:[#allocation2 + $0x36c] sm:$0xf]  ;;  %v4423_v12 = vor.u32 %v5109_v63, %v4420_v31 }
 0x252   :  { %v1924_v24 = vpop.f32.mrf.mxu3  ;;  %2337 = vmatpush.bf16.msrb.mxu0 %v4183_v38  ;;  %v3988_v38 = vld [vmem:[#allocation2 + $0x118] sm:$0xf0] }
 0x253   :  { %v1925_v42 = vadd.f32 %v1924_v24, %v6098_v0  ;;  %v4164_v0 = vld [vmem:[#allocation2 + $0x278] sm:$0xf0] }
 0x254   :  { %v2071_v29 = vpop.f32.mrf.mxu2  ;;  %v1976_v17 = vpop.f32.mrf.mxu0  ;;  %2386 = vmatpush.bf16.msrb.mxu1 %v4311_v22 }
 0x255   :  { %v6199_v60 = vadd.f32 %v2071_v29, %v2023_v6  ;;  %v2567_v13 = vmax.f32 %v1925_v42, 0.0  ;;  %v1977_v37 = vadd.f32 %v1976_v17, %v6129_v51  ;;  %2435 = vmatpush.bf16.msrb.mxu2 %v4439_v3  ;;  %v4167_v6 = vor.u32 %v5045_v34, %v4164_v0  ;;  %v4292_v29 = vld [vmem:[#allocation2 + $0x378] sm:$0xf0]  ;;  %v5001_v42 = vld [vmem:[#allocation2 + $0x10c] sm:$0xf] }
 0x256   :  { %v2025_v23 = vpop.f32.mrf.mxu1  ;;  %v4295_v18 = vor.u32 %v5077_v7, %v4292_v29  ;;  %v3991_v17 = vor.u32 %v5001_v42, %v3988_v38  ;;  %v5041_v3 = vld [vmem:[#allocation2 + $0x24c] sm:$0xf]  ;;  %v4276_v0 = vld [vmem:[#allocation2 + $0x358] sm:$0xf0] }
 0x257   :  { %v2026_v24 = vadd.f32 %v2025_v23, %v1977_v37  ;;  %2122 = vmatmul.bf16.gmra.mxu3 %v7334_v40  ;;  %2171 = vmatmul.bf16.gmra.mxu0 %v7335_v43  ;;  %v6204_v33 = vpack.c.bf16 %v2567_v13, %v2563_v41  ;;  %v4148_v37 = vld [vmem:[#allocation2 + $0x258] sm:$0xf0]  ;;  %v5073_v23 = vld [vmem:[#allocation2 + $0x34c] sm:$0xf] }
 0x258   :  { %2338 = vmatpush.bf16.msrb.mxu0 %v4167_v6  ;;  %2387 = vmatpush.bf16.msrb.mxu1 %v4295_v18  ;;  %v4151_v13 = vor.u32 %v5041_v3, %v4148_v37  ;;  %v4279_v29 = vor.u32 %v5073_v23, %v4276_v0  ;;  %v5037_v42 = vld [vmem:[#allocation2 + $0x22c] sm:$0xf]  ;;  %v4132_v38 = vld [vmem:[#allocation2 + $0x238] sm:$0xf0] }
 0x259   :  { %7336 = vst [vmem:[#allocation5_spill] sm:$0xff] %v6204_v33  ;;  %2220 = vmatmul.bf16.gmra.mxu1 %v7322_v30  ;;  %2269 = vmatmul.bf16.gmra.mxu2 %v7323_v19  ;;  %v5105_v30 = vld [vmem:[#allocation2 + $0x44c] sm:$0xf]  ;;  %v4404_v19 = vld [vmem:[#allocation2 + $0x458] sm:$0xf0] }
 0x25a   :  { %v1927_v22 = vpop.f32.mrf.mxu3  ;;  %2436 = vmatpush.bf16.msrb.mxu2 %v4423_v12  ;;  %2292 = vmatpush.bf16.msrb.mxu3 %v3991_v17  ;;  %v4407_v63 = vor.u32 %v5105_v30, %v4404_v19  ;;  %v4135_v12 = vor.u32 %v5037_v42, %v4132_v38  ;;  %v4260_v17 = vld [vmem:[#allocation2 + $0x338] sm:$0xf0]  ;;  %v5033_v30 = vld [vmem:[#allocation2 + $0x20c] sm:$0xf] }
 0x25b   :  { %v1928_v34 = vadd.f32 %v1927_v22, %v6102_v32  ;;  %v5069_v32 = vld [vmem:[#allocation2 + $0x32c] sm:$0xf]  ;;  %v4388_v3 = vld [vmem:[#allocation2 + $0x438] sm:$0xf0] }
 0x25c   :  { %v2074_v41 = vpop.f32.mrf.mxu2  ;;  %v1978_v7 = vpop.f32.mrf.mxu0  ;;  %2339 = vmatpush.bf16.msrb.mxu0 %v4151_v13  ;;  %2388 = vmatpush.bf16.msrb.mxu1 %v4279_v29  ;;  %v5101_v22 = vld [vmem:[#allocation2 + $0x42c] sm:$0xf]  ;;  %v4263_v37 = vor.u32 %v5069_v32, %v4260_v17  ;;  %v4116_v23 = vld [vmem:[#allocation2 + $0x218] sm:$0xf0] }
 0x25d   :  { %v6209_v33 = vadd.f32 %v2074_v41, %v2026_v24  ;;  %v1979_v6 = vadd.f32 %v1978_v7, %v6129_v51  ;;  %v4391_v24 = vor.u32 %v5101_v22, %v4388_v3  ;;  %v5065_v0 = vld [vmem:[#allocation2 + $0x30c] sm:$0xf]  ;;  %v4119_v7 = vor.u32 %v5033_v30, %v4116_v23  ;;  %v4244_v29 = vld [vmem:[#allocation2 + $0x318] sm:$0xf0] }
 0x25e   :  { %v2027_v31 = vpop.f32.mrf.mxu1  ;;  %2437 = vmatpush.bf16.msrb.mxu2 %v4407_v63  ;;  %v5097_v63 = vld [vmem:[#allocation2 + $0x40c] sm:$0xf]  ;;  %v4247_v38 = vor.u32 %v5065_v0, %v4244_v29  ;;  %v2571_v17 = vmax.f32 %v1928_v34, 0.0  ;;  %v4612_v34 = vld [vmem:[#allocation2 + $0x5f8] sm:$0xf0] }
 0x25f   :  { %v2028_v18 = vadd.f32 %v2027_v31, %v1979_v6  ;;  %v4372_v6 = vld [vmem:[#allocation2 + $0x418] sm:$0xf0] }
 0x260   :  { %2340 = vmatpush.bf16.msrb.mxu0 %v4135_v12  ;;  %2389 = vmatpush.bf16.msrb.mxu1 %v4263_v37  ;;  %v4375_v32 = vor.u32 %v5097_v63, %v4372_v6 }
 0x262   :  { %v1929_v41 = vpop.f32.mrf.mxu3  ;;  %2438 = vmatpush.bf16.msrb.mxu2 %v4391_v24  ;;  %v7338_v24 = vld [vmem:[#allocation45_spill] sm:$0xff] }
 0x263   :  { %v1930_v13 = vadd.f32 %v1929_v41, %v6110_v53  ;;  %v7337_v53 = vld [vmem:[#allocation44_spill] sm:$0xff] }
 0x264   :  { %v2076_v19 = vpop.f32.mrf.mxu2  ;;  %v1981_v42 = vpop.f32.mrf.mxu0  ;;  %2341 = vmatpush.bf16.msrb.mxu0 %v4119_v7  ;;  %2390 = vmatpush.bf16.msrb.mxu1 %v4247_v38 }
 0x265   :  { %v6213_v31 = vadd.f32 %v2076_v19, %v2028_v18  ;;  %v2575_v12 = vmax.f32 %v1930_v13, 0.0  ;;  %v1982_v22 = vadd.f32 %v1981_v42, %v6129_v51  ;;  %v5157_v18 = vld [vmem:[#allocation2 + $0x5ec] sm:$0xf] }
 0x266   :  { %v2030_v3 = vpop.f32.mrf.mxu1  ;;  %2439 = vmatpush.bf16.msrb.mxu2 %v4375_v32  ;;  %v4615_v30 = vor.u32 %v5157_v18, %v4612_v34  ;;  %v7340_v34 = vld [vmem:[#allocation47_spill] sm:$0xff] }
 0x267   :  { %v2031_v37 = vadd.f32 %v2030_v3, %v1982_v22  ;;  %2127 = vmatmul.bf16.gmra.mxu3 %v7337_v53  ;;  %2176 = vmatmul.bf16.gmra.mxu0 %v7338_v24  ;;  %v6218_v41 = vpack.c.bf16 %v2575_v12, %v2571_v17 }
 0x268   :  { %2481 = vmatpush.bf16.msra.mxu3 %v4615_v30 }
 0x269   :  { %2225 = vmatmul.bf16.gmra.mxu1 %v5879_v1  ;;  %2274 = vmatmul.bf16.gmra.mxu2 %v5593_v39 }
 0x26a   :  { %v1932_v23 = vpop.f32.mrf.mxu3 }
 0x26b   :  { %v1933_v0 = vadd.f32 %v1932_v23, %v6114_v58 }
 0x26c   :  { %v2079_v13 = vpop.f32.mrf.mxu2  ;;  %v1983_v7 = vpop.f32.mrf.mxu0 }
 0x26d   :  { %v6223_v19 = vadd.f32 %v2079_v13, %v2031_v37  ;;  %v1984_v29 = vadd.f32 %v1983_v7, %v6129_v51  ;;  %v2579_v12 = vmax.f32 %v1933_v0, 0.0  ;;  %v7339_v37 = vld [vmem:[#allocation46_spill] sm:$0xff]  ;;  %v4596_v7 = vld [vmem:[#allocation2 + $0x5d8] sm:$0xf0] }
 0x26e   :  { %v2032_v63 = vpop.f32.mrf.mxu1  ;;  %v5153_v0 = vld [vmem:[#allocation2 + $0x5cc] sm:$0xf] }
 0x26f   :  { %v2033_v6 = vadd.f32 %v2032_v63, %v1984_v29 }
 0x272   :  { %v1934_v42 = vpop.f32.mrf.mxu3 }
 0x273   :  { %v1935_v38 = vadd.f32 %v1934_v42, %v6122_v52 }
 0x274   :  { %v2081_v32 = vpop.f32.mrf.mxu2  ;;  %v1986_v17 = vpop.f32.mrf.mxu0 }
 0x275   :  { %v6227_v39 = vadd.f32 %v2081_v32, %v2033_v6  ;;  %v2583_v22 = vmax.f32 %v1935_v38, 0.0  ;;  %v1987_v58 = vadd.f32 %v1986_v17, %v6129_v51  ;;  %v4599_v6 = vor.u32 %v5153_v0, %v4596_v7  ;;  %v4580_v0 = vld [vmem:[#allocation2 + $0x5b8] sm:$0xf0] }
 0x276   :  { %v2035_v3 = vpop.f32.mrf.mxu1 }
 0x277   :  { %v2036_v18 = vadd.f32 %v2035_v3, %v1987_v58  ;;  %2132 = vmatmul.bf16.gmra.mxu3 %v7339_v37  ;;  %2181 = vmatmul.bf16.gmra.mxu0 %v7340_v34  ;;  %v6232_v30 = vpack.c.bf16 %v2583_v22, %v2579_v12 }
 0x278   :  { %2482 = vmatpush.bf16.msra.mxu3 %v4599_v6 }
 0x279   :  { %2230 = vmatmul.bf16.gmra.mxu1 %v5917_v16  ;;  %2279 = vmatmul.bf16.gmra.mxu2 %v5629_v15  ;;  %v7341_v16 = vld [vmem:[#allocation14_spill] sm:$0xff] }
 0x27a   :  { %v1937_v52 = vpop.f32.mrf.mxu3 }
 0x27b   :  { %v1938_v23 = vadd.f32 %v1937_v52, %v6126_v48 }
 0x27c   :  { %v2084_v13 = vpop.f32.mrf.mxu2  ;;  %v1988_v63 = vpop.f32.mrf.mxu0 }
 0x27d   :  { %v6237_v29 = vadd.f32 %v2084_v13, %v2036_v18  ;;  %v1989_v42 = vadd.f32 %v1988_v63, %v6129_v51  ;;  %v2587_v48 = vmax.f32 %v1938_v23, 0.0  ;;  %v7342_v18 = vld [vmem:[#allocation21_spill] sm:$0xff]  ;;  %v5149_v51 = vld [vmem:[#allocation2 + $0x5ac] sm:$0xf] }
 0x27e   :  { %v2037_v38 = vpop.f32.mrf.mxu1 }
 0x27f   :  { %v2038_v32 = vadd.f32 %v2037_v38, %v1989_v42 }
 0x282   :  { %v1939_v17 = vpop.f32.mrf.mxu3 }
 0x283   :  { %v1940_v12 = vadd.f32 %v1939_v17, %v6136_v56  ;;  %v4583_v56 = vor.u32 %v5149_v51, %v4580_v0 }
 0x284   :  { %v2086_v22 = vpop.f32.mrf.mxu2  ;;  %v2147_v58 = vpop.f32.mrf.mxu0 }
 0x285   :  { %v6241_v15 = vadd.f32 %v2086_v22, %v2038_v32  ;;  %v2591_v3 = vmax.f32 %v1940_v12, 0.0  ;;  %2483 = vmatpush.bf16.msra.mxu3 %v4583_v56 }
 0x286   :  { %v2196_v52 = vpop.f32.mrf.mxu1 }
 0x287   :  { %2293 = vmatmul.bf16.vlgmr.msrb.gmra.mxu3 %v7341_v16  ;;  %2342 = vmatmul.bf16.vlgmr.msrb.gmra.mxu0 %v7342_v18  ;;  %v6245_v13 = vpack.c.bf16 %v2591_v3, %v2587_v48  ;;  %v7343_v3 = vld [vmem:[#allocation18_spill] sm:$0xff]  ;;  %v7344_v18 = vld [vmem:[#allocation24_spill] sm:$0xff] }
 0x289   :  { %2391 = vmatmul.bf16.vlgmr.msrb.gmra.mxu1 %v7324_v45  ;;  %2440 = vmatmul.bf16.vlgmr.msrb.gmra.mxu2 %v7325_v4 }
 0x28a   :  { %v2098_v7 = vpop.f32.mrf.mxu3 }
 0x28b   :  { %v2099_v63 = vadd.f32 %v2098_v7, %v6139_v26  ;;  %v5145_v26 = vld [vmem:[#allocation2 + $0x58c] sm:$0xf] }
 0x28c   :  { %v6250_v6 = vpop.f32.mrf.mxu2  ;;  %v2149_v23 = vpop.f32.mrf.mxu0 }
 0x28d   :  { %v2148_v42 = vadd.f32 %v2147_v58, %v2099_v63  ;;  %v4564_v58 = vld [vmem:[#allocation2 + $0x598] sm:$0xf0] }
 0x28e   :  { %v2198_v16 = vpop.f32.mrf.mxu1  ;;  %v4567_v0 = vor.u32 %v5145_v26, %v4564_v58  ;;  %v7346_v26 = vld [vmem:[#allocation8_spill] sm:$0xff] }
 0x28f   :  { %v2197_v38 = vadd.f32 %v2196_v52, %v2148_v42 }
 0x290   :  { %2484 = vmatpush.bf16.msra.mxu3 %v4567_v0 }
 0x291   :  { %v2532_v52 = vmax.f32 %v2197_v38, 0.0 }
 0x292   :  { %v2100_v32 = vpop.f32.mrf.mxu3 }
 0x293   :  { %v2101_v17 = vadd.f32 %v2100_v32, %v6143_v5 }
 0x294   :  { %v6253_v12 = vpop.f32.mrf.mxu2  ;;  %v2152_v45 = vpop.f32.mrf.mxu0 }
 0x295   :  { %v2150_v4 = vadd.f32 %v2149_v23, %v2101_v17 }
 0x296   :  { %v2201_v22 = vpop.f32.mrf.mxu1 }
 0x297   :  { %v2199_v48 = vadd.f32 %v2198_v16, %v2150_v4  ;;  %2298 = vmatmul.bf16.gmra.mxu3 %v7343_v3  ;;  %2347 = vmatmul.bf16.gmra.mxu0 %v7344_v18  ;;  %v7345_v18 = vld [vmem:[#allocation7_spill] sm:$0xff] }
 0x299   :  { %2396 = vmatmul.bf16.gmra.mxu1 %v7326_v35  ;;  %2445 = vmatmul.bf16.gmra.mxu2 %v7327_v50  ;;  %v2536_v51 = vmax.f32 %v2199_v48, 0.0 }
 0x29a   :  { %v2103_v5 = vpop.f32.mrf.mxu3 }
 0x29b   :  { %v6259_v56 = vpack.c.bf16 %v2536_v51, %v2532_v52  ;;  %v2104_v7 = vadd.f32 %v2103_v5, %v6153_v47  ;;  %v5141_v47 = vld [vmem:[#allocation2 + $0x56c] sm:$0xf] }
 0x29c   :  { %v6262_v63 = vpop.f32.mrf.mxu2  ;;  %v2154_v23 = vpop.f32.mrf.mxu0 }
 0x29d   :  { %v2153_v42 = vadd.f32 %v2152_v45, %v2104_v7  ;;  %v4548_v45 = vld [vmem:[#allocation2 + $0x578] sm:$0xf0] }
 0x29e   :  { %v2203_v16 = vpop.f32.mrf.mxu1  ;;  %v4551_v58 = vor.u32 %v5141_v47, %v4548_v45 }
 0x29f   :  { %v2202_v32 = vadd.f32 %v2201_v22, %v2153_v42 }
 0x2a0   :  { %2485 = vmatpush.bf16.msra.mxu3 %v4551_v58 }
 0x2a1   :  { %v2540_v22 = vmax.f32 %v2202_v32, 0.0 }
 0x2a2   :  { %v2105_v35 = vpop.f32.mrf.mxu3 }
 0x2a3   :  { %v2106_v50 = vadd.f32 %v2105_v35, %v6157_v36 }
 0x2a4   :  { %v6265_v17 = vpop.f32.mrf.mxu2  ;;  %v2157_v38 = vpop.f32.mrf.mxu0 }
 0x2a5   :  { %v2155_v4 = vadd.f32 %v2154_v23, %v2106_v50 }
 0x2a6   :  { %v2206_v48 = vpop.f32.mrf.mxu1 }
 0x2a7   :  { %v2204_v3 = vadd.f32 %v2203_v16, %v2155_v4  ;;  %2303 = vmatmul.bf16.gmra.mxu3 %v7345_v18  ;;  %2352 = vmatmul.bf16.gmra.mxu0 %v7346_v26  ;;  %v7347_v18 = vld [vmem:[#allocation11_spill] sm:$0xff]  ;;  %v4532_v26 = vld [vmem:[#allocation2 + $0x558] sm:$0xf0] }
 0x2a9   :  { %2401 = vmatmul.bf16.gmra.mxu1 %v5715_v14  ;;  %2450 = vmatmul.bf16.gmra.mxu2 %v5717_v20  ;;  %v2544_v52 = vmax.f32 %v2204_v3, 0.0 }
 0x2aa   :  { %v2108_v36 = vpop.f32.mrf.mxu3 }
 0x2ab   :  { %v2109_v51 = vadd.f32 %v2108_v36, %v6167_v28  ;;  %v6274_v5 = vpack.c.bf16 %v2544_v52, %v2540_v22  ;;  %v7348_v28 = vld [vmem:[#allocation12_spill] sm:$0xff] }
 0x2ac   :  { %v6272_v0 = vpop.f32.mrf.mxu2  ;;  %v2159_v7 = vpop.f32.mrf.mxu0 }
 0x2ad   :  { %v2158_v23 = vadd.f32 %v2157_v38, %v2109_v51  ;;  %v5137_v38 = vld [vmem:[#allocation2 + $0x54c] sm:$0xf] }
 0x2ae   :  { %v2208_v42 = vpop.f32.mrf.mxu1  ;;  %v4535_v47 = vor.u32 %v5137_v38, %v4532_v26  ;;  %v4802_v38 = vld [vmem:[%s7160_s3 + $0x170] sm:$0xf]  ;;  %v5207_v26 = vld [vmem:[%s7160_s3 + $0x174] sm:$0xf0] }
 0x2af   :  { %v2207_v16 = vadd.f32 %v2206_v48, %v2158_v23 }
 0x2b0   :  { %2486 = vmatpush.bf16.msra.mxu3 %v4535_v47  ;;  %v4516_v47 = vld [vmem:[#allocation2 + $0x538] sm:$0xf0] }
 0x2b1   :  { %v2548_v48 = vmax.f32 %v2207_v16, 0.0 }
 0x2b2   :  { %v2110_v14 = vpop.f32.mrf.mxu3 }
 0x2b3   :  { %v2111_v20 = vadd.f32 %v2110_v14, %v6171_v62 }
 0x2b4   :  { %v6277_v35 = vpop.f32.mrf.mxu2  ;;  %v2162_v32 = vpop.f32.mrf.mxu0 }
 0x2b5   :  { %v2160_v50 = vadd.f32 %v2159_v7, %v2111_v20 }
 0x2b6   :  { %v2211_v4 = vpop.f32.mrf.mxu1 }
 0x2b7   :  { %v2209_v3 = vadd.f32 %v2208_v42, %v2160_v50  ;;  %2308 = vmatmul.bf16.gmra.mxu3 %v7347_v18  ;;  %2357 = vmatmul.bf16.gmra.mxu0 %v7348_v28  ;;  %v5175_v50 = vld [vmem:[%s7160_s3 + $0x74] sm:$0xf0] }
 0x2b8   :  { %v5191_v28 = vld [vmem:[%s7160_s3 + $0xf4] sm:$0xf0] }
 0x2b9   :  { %2406 = vmatmul.bf16.gmra.mxu1 %v7328_v54  ;;  %2455 = vmatmul.bf16.gmra.mxu2 %v7329_v2  ;;  %v2552_v45 = vmax.f32 %v2209_v3, 0.0  ;;  %v7349_v3 = vld [vmem:[#allocation15_spill] sm:$0xff] }
 0x2ba   :  { %v2113_v62 = vpop.f32.mrf.mxu3 }
 0x2bb   :  { %v2114_v22 = vadd.f32 %v2113_v62, %v6181_v21  ;;  %v6286_v52 = vpack.c.bf16 %v2552_v45, %v2548_v48  ;;  %v4674_v21 = vld [vmem:[%s7160_s3 + $0x70] sm:$0xf]  ;;  %v5133_v48 = vld [vmem:[#allocation2 + $0x52c] sm:$0xf]  ;;  %v4803_v62 = vor.u32 %v5207_v26, %v4802_v38  ;;  %v5171_v26 = vld [vmem:[%s7160_s3 + $0x54] sm:$0xf0] }
 0x2bc   :  { %v6284_v58 = vpop.f32.mrf.mxu2  ;;  %v2164_v36 = vpop.f32.mrf.mxu0  ;;  %v4675_v18 = vor.u32 %v5175_v50, %v4674_v21  ;;  %v5189_v21 = vld [vmem:[%s7160_s3 + $0xe4] sm:$0xf0]  ;;  %v4794_v50 = vld [vmem:[%s7160_s3 + $0x160] sm:$0xf]  ;;  %v4658_v38 = vld [vmem:[%s7160_s3 + $0x50] sm:$0xf] }
 0x2bd   :  { %v2163_v51 = vadd.f32 %v2162_v32, %v2114_v22  ;;  %v4738_v32 = vld [vmem:[%s7160_s3 + $0xf0] sm:$0xf]  ;;  %3114 = vmatpush.bf16.msra.mxu2 %v4803_v62 }
 0x2be   :  { %v2213_v7 = vpop.f32.mrf.mxu1  ;;  %v4739_v45 = vor.u32 %v5191_v28, %v4738_v32  ;;  %3016 = vmatpush.bf16.msra.mxu0 %v4675_v18  ;;  %v5205_v32 = vld [vmem:[%s7160_s3 + $0x164] sm:$0xf0]  ;;  %v4786_v62 = vld [vmem:[%s7160_s3 + $0x150] sm:$0xf] }
 0x2bf   :  { %v2212_v23 = vadd.f32 %v2211_v4, %v2163_v51 }
 0x2c0   :  { %3065 = vmatpush.bf16.msra.mxu1 %v4739_v45  ;;  %v4659_v45 = vor.u32 %v5171_v26, %v4658_v38  ;;  %v4642_v26 = vld [vmem:[%s7160_s3 + $0x30] sm:$0xf] }
 0x2c1   :  { %v2556_v22 = vmax.f32 %v2212_v23, 0.0 }
 0x2c2   :  { %v2115_v54 = vpop.f32.mrf.mxu3 }
 0x2c3   :  { %v2116_v2 = vadd.f32 %v2115_v54, %v6185_v25  ;;  %v7350_v25 = vld [vmem:[#allocation16_spill] sm:$0xff]  ;;  %v4666_v54 = vld [vmem:[%s7160_s3 + $0x60] sm:$0xf] }
 0x2c4   :  { %v6289_v42 = vpop.f32.mrf.mxu2  ;;  %v2167_v16 = vpop.f32.mrf.mxu0 }
 0x2c5   :  { %v2165_v14 = vadd.f32 %v2164_v36, %v2116_v2  ;;  %v4519_v36 = vor.u32 %v5133_v48, %v4516_v47  ;;  %v4722_v48 = vld [vmem:[%s7160_s3 + $0xd0] sm:$0xf] }
 0x2c6   :  { %v2216_v20 = vpop.f32.mrf.mxu1 }
 0x2c7   :  { %v2214_v4 = vadd.f32 %v2213_v7, %v2165_v14  ;;  %2313 = vmatmul.bf16.gmra.mxu3 %v7349_v3  ;;  %2362 = vmatmul.bf16.gmra.mxu0 %v7350_v25  ;;  %v4795_v25 = vor.u32 %v5205_v32, %v4794_v50  ;;  %v4778_v50 = vld [vmem:[%s7160_s3 + $0x140] sm:$0xf]  ;;  %v5201_v32 = vld [vmem:[%s7160_s3 + $0x144] sm:$0xf0] }
 0x2c8   :  { %2487 = vmatpush.bf16.msra.mxu3 %v4519_v36 }
 0x2c9   :  { %2411 = vmatmul.bf16.gmra.mxu1 %v7331_v49  ;;  %2460 = vmatmul.bf16.gmra.mxu2 %v7332_v10  ;;  %v2560_v51 = vmax.f32 %v2214_v4, 0.0  ;;  %v5173_v49 = vld [vmem:[%s7160_s3 + $0x64] sm:$0xf0]  ;;  %v4730_v10 = vld [vmem:[%s7160_s3 + $0xe0] sm:$0xf] }
 0x2ca   :  { %v2118_v7 = vpop.f32.mrf.mxu3  ;;  %v4667_v14 = vor.u32 %v5173_v49, %v4666_v54  ;;  %3115 = vmatpush.bf16.msra.mxu2 %v4795_v25  ;;  %v5169_v54 = vld [vmem:[%s7160_s3 + $0x44] sm:$0xf0]  ;;  %v4714_v49 = vld [vmem:[%s7160_s3 + $0xc0] sm:$0xf] }
 0x2cb   :  { %v2119_v23 = vadd.f32 %v2118_v7, %v6195_v61  ;;  %v6334_v4 = vpack.c.bf16 %v2560_v51, %v2556_v22  ;;  %v4731_v61 = vor.u32 %v5189_v21, %v4730_v10  ;;  %v5203_v22 = vld [vmem:[%s7160_s3 + $0x154] sm:$0xf0]  ;;  %v5185_v21 = vld [vmem:[%s7160_s3 + $0xc4] sm:$0xf0] }
 0x2cc   :  { %v6323_v2 = vpop.f32.mrf.mxu2  ;;  %v2169_v3 = vpop.f32.mrf.mxu0  ;;  %3017 = vmatpush.bf16.msra.mxu0 %v4667_v14  ;;  %v4787_v51 = vor.u32 %v5203_v22, %v4786_v62  ;;  %v4715_v25 = vor.u32 %v5185_v21, %v4714_v49  ;;  %v7351_v62 = vld [vmem:[#allocation19_spill] sm:$0xff] }
 0x2cd   :  { %v2168_v18 = vadd.f32 %v2167_v16, %v2119_v23  ;;  %3066 = vmatpush.bf16.msra.mxu1 %v4731_v61  ;;  %v5187_v16 = vld [vmem:[%s7160_s3 + $0xd4] sm:$0xf0] }
 0x2ce   :  { %v2218_v28 = vpop.f32.mrf.mxu1  ;;  %v4723_v36 = vor.u32 %v5187_v16, %v4722_v48  ;;  %3116 = vmatpush.bf16.msra.mxu2 %v4787_v51  ;;  %v5167_v48 = vld [vmem:[%s7160_s3 + $0x34] sm:$0xf0]  ;;  %v4770_v51 = vld [vmem:[%s7160_s3 + $0x130] sm:$0xf] }
 0x2cf   :  { %v2217_v47 = vadd.f32 %v2216_v20, %v2168_v18  ;;  %v4650_v20 = vld [vmem:[%s7160_s3 + $0x40] sm:$0xf]  ;;  %v4779_v18 = vor.u32 %v5201_v32, %v4778_v50  ;;  %v4643_v22 = vor.u32 %v5167_v48, %v4642_v26  ;;  %v5197_v48 = vld [vmem:[%s7160_s3 + $0x124] sm:$0xf0] }
 0x2d0   :  { %3018 = vmatpush.bf16.msra.mxu0 %v4659_v45  ;;  %v4651_v14 = vor.u32 %v5169_v54, %v4650_v20  ;;  %v4706_v45 = vld [vmem:[%s7160_s3 + $0xb0] sm:$0xf]  ;;  %v4500_v20 = vld [vmem:[#allocation2 + $0x518] sm:$0xf0]  ;;  %v4634_v32 = vld [vmem:[%s7160_s3 + $0x20] sm:$0xf] }
 0x2d1   :  { %3067 = vmatpush.bf16.msra.mxu1 %v4723_v36  ;;  %v5183_v36 = vld [vmem:[%s7160_s3 + $0xb4] sm:$0xf0]  ;;  %v4762_v26 = vld [vmem:[%s7160_s3 + $0x120] sm:$0xf] }
 0x2d2   :  { %v2120_v7 = vpop.f32.mrf.mxu3  ;;  %3117 = vmatpush.bf16.msra.mxu2 %v4779_v18  ;;  %v4707_v54 = vor.u32 %v5183_v36, %v4706_v45  ;;  %v4626_v36 = vld [vmem:[%s7160_s3 + $0x10] sm:$0xf] }
 0x2d3   :  { %v2121_v10 = vadd.f32 %v2120_v7, %v6199_v60  ;;  %v5199_v7 = vld [vmem:[%s7160_s3 + $0x134] sm:$0xf0] }
 0x2d4   :  { %v6364_v23 = vpop.f32.mrf.mxu2  ;;  %v2172_v61 = vpop.f32.mrf.mxu0  ;;  %3019 = vmatpush.bf16.msra.mxu0 %v4651_v14  ;;  %v4771_v49 = vor.u32 %v5199_v7, %v4770_v51  ;;  %v5163_v51 = vld [vmem:[%s7160_s3 + $0x14] sm:$0xf0]  ;;  %v4690_v7 = vld [vmem:[%s7160_s3 + $0x90] sm:$0xf] }
 0x2d5   :  { %v2170_v38 = vadd.f32 %v2169_v3, %v2121_v10  ;;  %3068 = vmatpush.bf16.msra.mxu1 %v4715_v25  ;;  %v7352_v3 = vld [vmem:[#allocation20_spill] sm:$0xff]  ;;  %v2564_v10 = vmax.f32 %v2217_v47, 0.0 }
 0x2d6   :  { %v2221_v60 = vpop.f32.mrf.mxu1  ;;  %3118 = vmatpush.bf16.msra.mxu2 %v4771_v49  ;;  %v5195_v49 = vld [vmem:[%s7160_s3 + $0x114] sm:$0xf0] }
 0x2d7   :  { %v2219_v16 = vadd.f32 %v2218_v28, %v2170_v38  ;;  %2318 = vmatmul.bf16.gmra.mxu3 %v7351_v62  ;;  %2367 = vmatmul.bf16.gmra.mxu0 %v7352_v3  ;;  %v5129_v28 = vld [vmem:[#allocation2 + $0x50c] sm:$0xf]  ;;  %v5181_v38 = vld [vmem:[%s7160_s3 + $0xa4] sm:$0xf0]  ;;  %v4763_v62 = vor.u32 %v5197_v48, %v4762_v26 }
 0x2d8   :  { %v4503_v14 = vor.u32 %v5129_v28, %v4500_v20  ;;  %3020 = vmatpush.bf16.msra.mxu0 %v4643_v22  ;;  %v4627_v20 = vor.u32 %v5163_v51, %v4626_v36  ;;  %v5193_v26 = vld [vmem:[%s7160_s3 + $0x104] sm:$0xf0] }
 0x2d9   :  { %2416 = vmatmul.bf16.gmra.mxu1 %v7334_v40  ;;  %2465 = vmatmul.bf16.gmra.mxu2 %v7335_v43  ;;  %v2568_v21 = vmax.f32 %v2219_v16, 0.0  ;;  %v5165_v40 = vld [vmem:[%s7160_s3 + $0x24] sm:$0xf0]  ;;  %v4698_v43 = vld [vmem:[%s7160_s3 + $0xa0] sm:$0xf] }
 0x2da   :  { %v2123_v50 = vpop.f32.mrf.mxu3  ;;  %3069 = vmatpush.bf16.msra.mxu1 %v4707_v54  ;;  %2488 = vmatpush.bf16.msra.mxu3 %v4503_v14  ;;  %v4635_v18 = vor.u32 %v5165_v40, %v4634_v32  ;;  %v4754_v54 = vld [vmem:[%s7160_s3 + $0x110] sm:$0xf]  ;;  %v4682_v32 = vld [vmem:[%s7160_s3 + $0x80] sm:$0xf] }
 0x2db   :  { %v2124_v47 = vadd.f32 %v2123_v50, %v6209_v33  ;;  %v6418_v45 = vpack.c.bf16 %v2568_v21, %v2564_v10  ;;  %v4699_v33 = vor.u32 %v5181_v38, %v4698_v43  ;;  %3119 = vmatpush.bf16.msra.mxu2 %v4763_v62  ;;  %v4755_v14 = vor.u32 %v5195_v49, %v4754_v54  ;;  %v5161_v50 = vld [vmem:[%s7160_s3 + $0x4] sm:$0xf0]  ;;  %v4746_v38 = vld [vmem:[%s7160_s3 + $0x100] sm:$0xf] }
 0x2dc   :  { %v6407_v25 = vpop.f32.mrf.mxu2  ;;  %v2174_v16 = vpop.f32.mrf.mxu0  ;;  %3021 = vmatpush.bf16.msra.mxu0 %v4635_v18  ;;  %v5177_v18 = vld [vmem:[%s7160_s3 + $0x84] sm:$0xf0]  ;;  %v4747_v62 = vor.u32 %v5193_v26, %v4746_v38 }
 0x2dd   :  { %v2173_v3 = vadd.f32 %v2172_v61, %v2124_v47  ;;  %v5179_v61 = vld [vmem:[%s7160_s3 + $0x94] sm:$0xf0] }
 0x2de   :  { %v2223_v22 = vpop.f32.mrf.mxu1  ;;  %3070 = vmatpush.bf16.msra.mxu1 %v4699_v33  ;;  %v4691_v10 = vor.u32 %v5179_v61, %v4690_v7  ;;  %v4683_v33 = vor.u32 %v5177_v18, %v4682_v32 }
 0x2df   :  { %v2222_v28 = vadd.f32 %v2221_v60, %v2173_v3  ;;  %3120 = vmatpush.bf16.msra.mxu2 %v4755_v14  ;;  %v4618_v60 = vld [vmem:[%s7160_s3] sm:$0xf] }
 0x2e0   :  { %3022 = vmatpush.bf16.msra.mxu0 %v4627_v20  ;;  %v4619_v47 = vor.u32 %v5161_v50, %v4618_v60  ;;  %v4866_v50 = vld [vmem:[%s7160_s3 + $0x1f0] sm:$0xf] }
 0x2e1   :  { %v2572_v51 = vmax.f32 %v2222_v28, 0.0 }
 0x2e2   :  { %v2125_v21 = vpop.f32.mrf.mxu3  ;;  %3071 = vmatpush.bf16.msra.mxu1 %v4691_v10 }
 0x2e3   :  { %v2126_v40 = vadd.f32 %v2125_v21, %v6213_v31  ;;  %3121 = vmatpush.bf16.msra.mxu2 %v4747_v62 }
 0x2e4   :  { %v6448_v43 = vpop.f32.mrf.mxu2  ;;  %v2177_v48 = vpop.f32.mrf.mxu0  ;;  %3023 = vmatpush.bf16.msra.mxu0 %v4619_v47 }
 0x2e5   :  { %v2175_v3 = vadd.f32 %v2174_v16, %v2126_v40 }
 0x2e6   :  { %v2226_v31 = vpop.f32.mrf.mxu1  ;;  %3072 = vmatpush.bf16.msra.mxu1 %v4683_v33  ;;  %v5278_v33 = vld [vmem:[%s7159_s2] sm:$0xf] }
 0x2e7   :  { %v2224_v36 = vadd.f32 %v2223_v22, %v2175_v3  ;;  %2323 = vmatmul.bf16.gmra.mxu3 %v7305_v8  ;;  %2372 = vmatmul.bf16.gmra.mxu0 %v7306_v55  ;;  %v6489_v62 = vperm.slane %v5278_v33, 3  ;;  %v5219_v33 = vld [vmem:[%s7160_s3 + $0x1d4] sm:$0xf0] }
 0x2e9   :  { %2421 = vmatmul.bf16.gmra.mxu1 %v7337_v53  ;;  %2470 = vmatmul.bf16.gmra.mxu2 %v7338_v24  ;;  %v2576_v7 = vmax.f32 %v2224_v36, 0.0 }
 0x2ea   :  { %v2128_v20 = vpop.f32.mrf.mxu3 }
 0x2eb   :  { %v2129_v61 = vadd.f32 %v2128_v20, %v6223_v19  ;;  %v6466_v16 = vpack.c.bf16 %v2576_v7, %v2572_v51  ;;  %v2246_v7 = vadd.f32 %v6250_v6, %v6489_v62 }
 0x2ec   :  { %v6464_v54 = vpop.f32.mrf.mxu2  ;;  %v2179_v49 = vpop.f32.mrf.mxu0 }
 0x2ed   :  { %v2178_v10 = vadd.f32 %v2177_v48, %v2129_v61  ;;  %v7353_v61 = vld [vmem:[#allocation49_spill] sm:$0xff] }
 0x2ee   :  { %v2228_v22 = vpop.f32.mrf.mxu1 }
 0x2ef   :  { %v2227_v14 = vadd.f32 %v2226_v31, %v2178_v10  ;;  %v5221_v10 = vld [vmem:[%s7160_s3 + $0x1e4] sm:$0xf0] }
 0x2f1   :  { %v2580_v19 = vmax.f32 %v2227_v14, 0.0 }
 0x2f2   :  { %v2130_v8 = vpop.f32.mrf.mxu3 }
 0x2f3   :  { %v2131_v55 = vadd.f32 %v2130_v8, %v6227_v39  ;;  %v5223_v39 = vld [vmem:[%s7160_s3 + $0x1f4] sm:$0xf0] }
 0x2f4   :  { %v6469_v21 = vpop.f32.mrf.mxu2  ;;  %v2182_v53 = vpop.f32.mrf.mxu0  ;;  %v4867_v47 = vor.u32 %v5223_v39, %v4866_v50 }
 0x2f5   :  { %v2180_v24 = vadd.f32 %v2179_v49, %v2131_v55 }
 0x2f6   :  { %v2231_v28 = vpop.f32.mrf.mxu1  ;;  %3163 = vmatpush.bf16.msrb.mxu3 %v4867_v47 }
 0x2f7   :  { %v2229_v60 = vadd.f32 %v2228_v22, %v2180_v24  ;;  %2328 = vmatmul.bf16.gmra.mxu3 %v7308_v59  ;;  %2377 = vmatmul.bf16.gmra.mxu0 %v7309_v11 }
 0x2f9   :  { %2426 = vmatmul.bf16.gmra.mxu1 %v7339_v37  ;;  %2475 = vmatmul.bf16.gmra.mxu2 %v7340_v34  ;;  %v2584_v32 = vmax.f32 %v2229_v60, 0.0 }
 0x2fa   :  { %v2133_v40 = vpop.f32.mrf.mxu3 }
 0x2fb   :  { %v2134_v59 = vadd.f32 %v2133_v40, %v6237_v29  ;;  %v6484_v11 = vpack.c.bf16 %v2584_v32, %v2580_v19  ;;  %v2248_v19 = vadd.f32 %v6253_v12, %v6489_v62 }
 0x2fc   :  { %v6482_v18 = vpop.f32.mrf.mxu2  ;;  %v2184_v37 = vpop.f32.mrf.mxu0 }
 0x2fd   :  { %v2183_v34 = vadd.f32 %v2182_v53, %v2134_v59 }
 0x2fe   :  { %v2233_v38 = vpop.f32.mrf.mxu1 }
 0x2ff   :  { %v2232_v26 = vadd.f32 %v2231_v28, %v2183_v34  ;;  %v2251_v34 = vadd.f32 %v6262_v63, %v6489_v62 }
 0x301   :  { %v2588_v49 = vmax.f32 %v2232_v26, 0.0  ;;  %v7354_v26 = vld [vmem:[#allocation50_spill] sm:$0xff] }
 0x302   :  { %v2135_v48 = vpop.f32.mrf.mxu3 }
 0x303   :  { %v2136_v3 = vadd.f32 %v2135_v48, %v6241_v15  ;;  %v4858_v15 = vld [vmem:[%s7160_s3 + $0x1e0] sm:$0xf]  ;;  %v4850_v48 = vld [vmem:[%s7160_s3 + $0x1d0] sm:$0xf] }
 0x304   :  { %v6492_v31 = vpop.f32.mrf.mxu2  ;;  %v2343_v29 = vpop.f32.mrf.mxu0  ;;  %v4859_v14 = vor.u32 %v5221_v10, %v4858_v15 }
 0x305   :  { %v2185_v36 = vadd.f32 %v2184_v37, %v2136_v3  ;;  %v4851_v3 = vor.u32 %v5219_v33, %v4850_v48 }
 0x306   :  { %v2392_v51 = vpop.f32.mrf.mxu1  ;;  %3164 = vmatpush.bf16.msrb.mxu3 %v4859_v14 }
 0x307   :  { %v2234_v20 = vadd.f32 %v2233_v38, %v2185_v36  ;;  %2489 = vmatmul.bf16.vlgmr.msra.gmra.mxu3 %v7311_v9  ;;  %3024 = vmatmul.bf16.vlgmr.msra.gmra.mxu0 %v7353_v61 }
 0x309   :  { %3073 = vmatmul.bf16.vlgmr.msra.gmra.mxu1 %v6146_v46  ;;  %3122 = vmatmul.bf16.vlgmr.msra.gmra.mxu2 %v6259_v56  ;;  %v2592_v22 = vmax.f32 %v2234_v20, 0.0 }
 0x30a   :  { %v2294_v6 = vpop.f32.mrf.mxu3  ;;  %3165 = vmatpush.bf16.msrb.mxu3 %v4851_v3 }
 0x30b   :  { %v2295_v8 = vadd.f32 %v2294_v6, %v2246_v7  ;;  %v6506_v55 = vpack.c.bf16 %v2592_v22, %v2588_v49  ;;  %v2253_v49 = vadd.f32 %v6265_v17, %v6489_v62 }
 0x30c   :  { %v2441_v9 = vpop.f32.mrf.mxu2  ;;  %v2345_v53 = vpop.f32.mrf.mxu0 }
 0x30d   :  { %v2344_v24 = vadd.f32 %v2343_v29, %v2295_v8 }
 0x30e   :  { %v2394_v28 = vpop.f32.mrf.mxu1 }
 0x30f   :  { %v2393_v60 = vadd.f32 %v2392_v51, %v2344_v24 }
 0x311   :  { %v6510_v50 = vadd.f32 %v2441_v9, %v2393_v60  ;;  %v7356_v60 = vld [vmem:[#allocation26_spill] sm:$0xff] }
 0x312   :  { %v2296_v39 = vpop.f32.mrf.mxu3 }
 0x313   :  { %v2297_v32 = vadd.f32 %v2296_v39, %v2248_v19  ;;  %v4842_v19 = vld [vmem:[%s7160_s3 + $0x1c0] sm:$0xf]  ;;  %v5217_v39 = vld [vmem:[%s7160_s3 + $0x1c4] sm:$0xf0] }
 0x314   :  { %v2443_v40 = vpop.f32.mrf.mxu2  ;;  %v2348_v47 = vpop.f32.mrf.mxu0 }
 0x315   :  { %v2346_v59 = vadd.f32 %v2345_v53, %v2297_v32  ;;  %v2256_v53 = vadd.f32 %v6272_v0, %v6489_v62  ;;  %v4843_v32 = vor.u32 %v5217_v39, %v4842_v19 }
 0x316   :  { %v2397_v37 = vpop.f32.mrf.mxu1 }
 0x317   :  { %v2395_v38 = vadd.f32 %v2394_v28, %v2346_v59  ;;  %2494 = vmatmul.bf16.gmra.mxu3 %v7314_v27  ;;  %3029 = vmatmul.bf16.gmra.mxu0 %v7354_v26  ;;  %v7355_v28 = vld [vmem:[#allocation51_spill] sm:$0xff] }
 0x318   :  { %3166 = vmatpush.bf16.msrb.mxu3 %v4843_v32 }
 0x319   :  { %3078 = vmatmul.bf16.gmra.mxu1 %v6162_v57  ;;  %3127 = vmatmul.bf16.gmra.mxu2 %v6274_v5  ;;  %v6518_v12 = vadd.f32 %v2443_v40, %v2395_v38  ;;  %v2258_v38 = vadd.f32 %v6277_v35, %v6489_v62 }
 0x31a   :  { %v2299_v63 = vpop.f32.mrf.mxu3 }
 0x31b   :  { %v2300_v29 = vadd.f32 %v2299_v63, %v2251_v34 }
 0x31c   :  { %v2446_v27 = vpop.f32.mrf.mxu2  ;;  %v2350_v36 = vpop.f32.mrf.mxu0 }
 0x31d   :  { %v2349_v51 = vadd.f32 %v2348_v47, %v2300_v29 }
 0x31e   :  { %v2399_v7 = vpop.f32.mrf.mxu1 }
 0x31f   :  { %v2398_v20 = vadd.f32 %v2397_v37, %v2349_v51  ;;  %v2261_v51 = vadd.f32 %v6284_v58, %v6489_v62 }
 0x321   :  { %v6528_v15 = vadd.f32 %v2446_v27, %v2398_v20  ;;  %v7357_v20 = vld [vmem:[#allocation36_spill] sm:$0xff] }
 0x322   :  { %v2301_v10 = vpop.f32.mrf.mxu3 }
 0x323   :  { %v2302_v22 = vadd.f32 %v2301_v10, %v2253_v49  ;;  %v7358_v49 = vld [vmem:[#allocation52_spill] sm:$0xff]  ;;  %v7359_v10 = vld [vmem:[#allocation29_spill] sm:$0xff] }
 0x324   :  { %v2448_v6 = vpop.f32.mrf.mxu2  ;;  %v2353_v14 = vpop.f32.mrf.mxu0 }
 0x325   :  { %v2351_v8 = vadd.f32 %v2350_v36, %v2302_v22  ;;  %v4834_v22 = vld [vmem:[%s7160_s3 + $0x1b0] sm:$0xf] }
 0x326   :  { %v2402_v9 = vpop.f32.mrf.mxu1 }
 0x327   :  { %v2400_v24 = vadd.f32 %v2399_v7, %v2351_v8  ;;  %2499 = vmatmul.bf16.gmra.mxu3 %v7316_v44  ;;  %3034 = vmatmul.bf16.gmra.mxu0 %v7355_v28 }
 0x329   :  { %3083 = vmatmul.bf16.gmra.mxu1 %v7356_v60  ;;  %3132 = vmatmul.bf16.gmra.mxu2 %v6286_v52  ;;  %v6536_v17 = vadd.f32 %v2448_v6, %v2400_v24  ;;  %v5215_v6 = vld [vmem:[%s7160_s3 + $0x1b4] sm:$0xf0] }
 0x32a   :  { %v2304_v0 = vpop.f32.mrf.mxu3 }
 0x32b   :  { %v2305_v40 = vadd.f32 %v2304_v0, %v2256_v53  ;;  %v2263_v0 = vadd.f32 %v6289_v42, %v6489_v62  ;;  %v5190_v42 = vld [vmem:[%s7160_s3 + $0xf4] sm:$0xf] }
 0x32c   :  { %v2451_v44 = vpop.f32.mrf.mxu2  ;;  %v2355_v47 = vpop.f32.mrf.mxu0 }
 0x32d   :  { %v2354_v59 = vadd.f32 %v2353_v14, %v2305_v40  ;;  %v4835_v14 = vor.u32 %v5215_v6, %v4834_v22  ;;  %v7362_v22 = vld [vmem:[#allocation5_spill] sm:$0xff] }
 0x32e   :  { %v2404_v37 = vpop.f32.mrf.mxu1 }
 0x32f   :  { %v2403_v34 = vadd.f32 %v2402_v9, %v2354_v59  ;;  %3167 = vmatpush.bf16.msrb.mxu3 %v4835_v14  ;;  %v4826_v14 = vld [vmem:[%s7160_s3 + $0x1a0] sm:$0xf] }
 0x331   :  { %v6546_v48 = vadd.f32 %v2451_v44, %v2403_v34 }
 0x332   :  { %v2306_v33 = vpop.f32.mrf.mxu3 }
 0x333   :  { %v2307_v63 = vadd.f32 %v2306_v33, %v2258_v38  ;;  %v5174_v38 = vld [vmem:[%s7160_s3 + $0x74] sm:$0xf]  ;;  %v4676_v33 = vld [vmem:[%s7160_s3 + $0x78] sm:$0xf0] }
 0x334   :  { %v2453_v3 = vpop.f32.mrf.mxu2  ;;  %v2358_v29 = vpop.f32.mrf.mxu0 }
 0x335   :  { %v2356_v27 = vadd.f32 %v2355_v47, %v2307_v63  ;;  %v2266_v63 = vadd.f32 %v6323_v2, %v6489_v62 }
 0x336   :  { %v2407_v36 = vpop.f32.mrf.mxu1 }
 0x337   :  { %v2405_v7 = vadd.f32 %v2404_v37, %v2356_v27  ;;  %2504 = vmatmul.bf16.gmra.mxu3 %v7357_v20  ;;  %3039 = vmatmul.bf16.gmra.mxu0 %v7358_v49  ;;  %v7361_v27 = vld [vmem:[#allocation43_spill] sm:$0xff]  ;;  %v4804_v20 = vld [vmem:[%s7160_s3 + $0x178] sm:$0xf0] }
 0x339   :  { %3088 = vmatmul.bf16.gmra.mxu1 %v7359_v10  ;;  %3137 = vmatmul.bf16.gmra.mxu2 %v6334_v4  ;;  %v6554_v35 = vadd.f32 %v2453_v3, %v2405_v7  ;;  %v5206_v7 = vld [vmem:[%s7160_s3 + $0x174] sm:$0xf] }
 0x33a   :  { %v2309_v58 = vpop.f32.mrf.mxu3  ;;  %v4807_v6 = vor.u32 %v5206_v7, %v4804_v20  ;;  %v5186_v7 = vld [vmem:[%s7160_s3 + $0xd4] sm:$0xf] }
 0x33b   :  { %v2310_v8 = vadd.f32 %v2309_v58, %v2261_v51  ;;  %v4740_v51 = vld [vmem:[%s7160_s3 + $0xf8] sm:$0xf0] }
 0x33c   :  { %v2456_v9 = vpop.f32.mrf.mxu2  ;;  %v2360_v53 = vpop.f32.mrf.mxu0  ;;  %v4743_v2 = vor.u32 %v5190_v42, %v4740_v51  ;;  %3310 = vmatpush.bf16.msrb.mxu2 %v4807_v6  ;;  %v4660_v51 = vld [vmem:[%s7160_s3 + $0x58] sm:$0xf0]  ;;  %v5202_v6 = vld [vmem:[%s7160_s3 + $0x154] sm:$0xf] }
 0x33d   :  { %v2359_v24 = vadd.f32 %v2358_v29, %v2310_v8  ;;  %v7360_v29 = vld [vmem:[#allocation39_spill] sm:$0xff]  ;;  %v5213_v8 = vld [vmem:[%s7160_s3 + $0x1a4] sm:$0xf0] }
 0x33e   :  { %v2409_v19 = vpop.f32.mrf.mxu1  ;;  %3261 = vmatpush.bf16.msrb.mxu1 %v4743_v2 }
 0x33f   :  { %v2408_v39 = vadd.f32 %v2407_v36, %v2359_v24  ;;  %v4679_v36 = vor.u32 %v5174_v38, %v4676_v33  ;;  %v5172_v24 = vld [vmem:[%s7160_s3 + $0x64] sm:$0xf]  ;;  %v4796_v38 = vld [vmem:[%s7160_s3 + $0x168] sm:$0xf0] }
 0x341   :  { %v6564_v32 = vadd.f32 %v2456_v9, %v2408_v39  ;;  %3212 = vmatpush.bf16.msrb.mxu0 %v4679_v36  ;;  %v5188_v39 = vld [vmem:[%s7160_s3 + $0xe4] sm:$0xf]  ;;  %v5170_v36 = vld [vmem:[%s7160_s3 + $0x54] sm:$0xf] }
 0x342   :  { %v2311_v40 = vpop.f32.mrf.mxu3  ;;  %v4663_v2 = vor.u32 %v5170_v36, %v4660_v51 }
 0x343   :  { %v2312_v44 = vadd.f32 %v2311_v40, %v2263_v0 }
 0x344   :  { %v2458_v47 = vpop.f32.mrf.mxu2  ;;  %v2363_v59 = vpop.f32.mrf.mxu0 }
 0x345   :  { %v2361_v37 = vadd.f32 %v2360_v53, %v2312_v44  ;;  %v4827_v53 = vor.u32 %v5213_v8, %v4826_v14  ;;  %v4788_v14 = vld [vmem:[%s7160_s3 + $0x158] sm:$0xf0] }
 0x346   :  { %v2412_v34 = vpop.f32.mrf.mxu1 }
 0x347   :  { %v2410_v3 = vadd.f32 %v2409_v19, %v2361_v37  ;;  %2509 = vmatmul.bf16.gmra.mxu3 %v7360_v29  ;;  %3044 = vmatmul.bf16.gmra.mxu0 %v7361_v27  ;;  %v4668_v19 = vld [vmem:[%s7160_s3 + $0x68] sm:$0xf0]  ;;  %v5204_v37 = vld [vmem:[%s7160_s3 + $0x164] sm:$0xf] }
 0x348   :  { %v4671_v44 = vor.u32 %v5172_v24, %v4668_v19  ;;  %3168 = vmatpush.bf16.msrb.mxu3 %v4827_v53  ;;  %v2268_v53 = vadd.f32 %v6364_v23, %v6489_v62  ;;  %v5168_v19 = vld [vmem:[%s7160_s3 + $0x44] sm:$0xf] }
 0x349   :  { %3093 = vmatmul.bf16.gmra.mxu1 %v7362_v22  ;;  %3142 = vmatmul.bf16.gmra.mxu2 %v6418_v45  ;;  %v6590_v58 = vadd.f32 %v2458_v47, %v2410_v3  ;;  %v4732_v47 = vld [vmem:[%s7160_s3 + $0xe8] sm:$0xf0]  ;;  %v4799_v3 = vor.u32 %v5204_v37, %v4796_v38  ;;  %v5200_v37 = vld [vmem:[%s7160_s3 + $0x144] sm:$0xf] }
 0x34a   :  { %v2314_v9 = vpop.f32.mrf.mxu3  ;;  %v4735_v42 = vor.u32 %v5188_v39, %v4732_v47  ;;  %3213 = vmatpush.bf16.msrb.mxu0 %v4671_v44  ;;  %v4652_v39 = vld [vmem:[%s7160_s3 + $0x48] sm:$0xf0] }
 0x34b   :  { %v2315_v0 = vadd.f32 %v2314_v9, %v2266_v63  ;;  %3311 = vmatpush.bf16.msrb.mxu2 %v4799_v3  ;;  %v4791_v9 = vor.u32 %v5202_v6, %v4788_v14  ;;  %v4716_v47 = vld [vmem:[%s7160_s3 + $0xc8] sm:$0xf0] }
 0x34c   :  { %v2461_v40 = vpop.f32.mrf.mxu2  ;;  %v2365_v33 = vpop.f32.mrf.mxu0  ;;  %3262 = vmatpush.bf16.msrb.mxu1 %v4735_v42  ;;  %v4780_v38 = vld [vmem:[%s7160_s3 + $0x148] sm:$0xf0] }
 0x34d   :  { %v2364_v29 = vadd.f32 %v2363_v59, %v2315_v0  ;;  %v4724_v59 = vld [vmem:[%s7160_s3 + $0xd8] sm:$0xf0]  ;;  %v5184_v0 = vld [vmem:[%s7160_s3 + $0xc4] sm:$0xf]  ;;  %v7363_v6 = vld [vmem:[#allocation42_spill] sm:$0xff] }
 0x34e   :  { %v2414_v63 = vpop.f32.mrf.mxu1  ;;  %v4727_v8 = vor.u32 %v5186_v7, %v4724_v59  ;;  %3214 = vmatpush.bf16.msrb.mxu0 %v4663_v2  ;;  %v4719_v3 = vor.u32 %v5184_v0, %v4716_v47  ;;  %v5166_v7 = vld [vmem:[%s7160_s3 + $0x34] sm:$0xf]  ;;  %v2271_v59 = vadd.f32 %v6407_v25, %v6489_v62  ;;  %v7364_v14 = vld [vmem:[#allocation22_spill] sm:$0xff]  ;;  %v5211_v0 = vld [vmem:[%s7160_s3 + $0x194] sm:$0xf0] }
 0x34f   :  { %v2413_v20 = vadd.f32 %v2412_v34, %v2364_v29  ;;  %3312 = vmatpush.bf16.msrb.mxu2 %v4791_v9  ;;  %v4783_v29 = vor.u32 %v5200_v37, %v4780_v38  ;;  %v5182_v2 = vld [vmem:[%s7160_s3 + $0xb4] sm:$0xf]  ;;  %v4708_v9 = vld [vmem:[%s7160_s3 + $0xb8] sm:$0xf0]  ;;  %v5164_v47 = vld [vmem:[%s7160_s3 + $0x24] sm:$0xf] }
 0x350   :  { %3263 = vmatpush.bf16.msrb.mxu1 %v4727_v8  ;;  %v4711_v25 = vor.u32 %v5182_v2, %v4708_v9  ;;  %v5180_v37 = vld [vmem:[%s7160_s3 + $0xa4] sm:$0xf]  ;;  %v5162_v9 = vld [vmem:[%s7160_s3 + $0x14] sm:$0xf] }
 0x351   :  { %v6636_v24 = vadd.f32 %v2461_v40, %v2413_v20  ;;  %v4655_v40 = vor.u32 %v5168_v19, %v4652_v39  ;;  %v4644_v20 = vld [vmem:[%s7160_s3 + $0x38] sm:$0xf0]  ;;  %v4818_v39 = vld [vmem:[%s7160_s3 + $0x190] sm:$0xf] }
 0x352   :  { %v2316_v34 = vpop.f32.mrf.mxu3  ;;  %v4647_v8 = vor.u32 %v5166_v7, %v4644_v20  ;;  %v5196_v7 = vld [vmem:[%s7160_s3 + $0x124] sm:$0xf]  ;;  %v4764_v20 = vld [vmem:[%s7160_s3 + $0x128] sm:$0xf0] }
 0x353   :  { %v2317_v44 = vadd.f32 %v2316_v34, %v2268_v53  ;;  %3215 = vmatpush.bf16.msrb.mxu0 %v4655_v40  ;;  %3313 = vmatpush.bf16.msrb.mxu2 %v4783_v29  ;;  %v5198_v53 = vld [vmem:[%s7160_s3 + $0x134] sm:$0xf]  ;;  %v4772_v34 = vld [vmem:[%s7160_s3 + $0x138] sm:$0xf0]  ;;  %v4819_v40 = vor.u32 %v5211_v0, %v4818_v39 }
 0x354   :  { %v2463_v23 = vpop.f32.mrf.mxu2  ;;  %v2368_v42 = vpop.f32.mrf.mxu0  ;;  %3264 = vmatpush.bf16.msrb.mxu1 %v4719_v3  ;;  %v5194_v39 = vld [vmem:[%s7160_s3 + $0x114] sm:$0xf]  ;;  %v4756_v0 = vld [vmem:[%s7160_s3 + $0x118] sm:$0xf0] }
 0x355   :  { %v2366_v36 = vadd.f32 %v2365_v33, %v2317_v44  ;;  %3169 = vmatpush.bf16.msrb.mxu3 %v4819_v40  ;;  %v4759_v40 = vor.u32 %v5194_v39, %v4756_v0 }
 0x356   :  { %v2417_v51 = vpop.f32.mrf.mxu1 }
 0x357   :  { %v2415_v33 = vadd.f32 %v2414_v63, %v2366_v36  ;;  %2514 = vmatmul.bf16.gmra.mxu3 %v7363_v6  ;;  %3049 = vmatmul.bf16.gmra.mxu0 %v7364_v14  ;;  %v4775_v63 = vor.u32 %v5198_v53, %v4772_v34  ;;  %v4700_v36 = vld [vmem:[%s7160_s3 + $0xa8] sm:$0xf0]  ;;  %v4767_v6 = vor.u32 %v5196_v7, %v4764_v20  ;;  %v4628_v53 = vld [vmem:[%s7160_s3 + $0x18] sm:$0xf0]  ;;  %v5178_v34 = vld [vmem:[%s7160_s3 + $0x94] sm:$0xf] }
 0x358   :  { %3216 = vmatpush.bf16.msrb.mxu0 %v4647_v8  ;;  %3265 = vmatpush.bf16.msrb.mxu1 %v4711_v25  ;;  %v4684_v7 = vld [vmem:[%s7160_s3 + $0x88] sm:$0xf0]  ;;  %v5192_v20 = vld [vmem:[%s7160_s3 + $0x104] sm:$0xf] }
 0x359   :  { %3098 = vmatmul.bf16.gmra.mxu1 %v6218_v41  ;;  %3147 = vmatmul.bf16.gmra.mxu2 %v6466_v16  ;;  %v6680_v19 = vadd.f32 %v2463_v23, %v2415_v33  ;;  %v4636_v23 = vld [vmem:[%s7160_s3 + $0x28] sm:$0xf0]  ;;  %v4703_v33 = vor.u32 %v5180_v37, %v4700_v36  ;;  %v5160_v37 = vld [vmem:[%s7160_s3 + $0x4] sm:$0xf] }
 0x35a   :  { %v2319_v44 = vpop.f32.mrf.mxu3  ;;  %3314 = vmatpush.bf16.msrb.mxu2 %v4775_v63  ;;  %v4639_v29 = vor.u32 %v5164_v47, %v4636_v23  ;;  %v4631_v63 = vor.u32 %v5162_v9, %v4628_v53  ;;  %v2273_v47 = vadd.f32 %v6448_v43, %v6489_v62 }
 0x35b   :  { %v2320_v38 = vadd.f32 %v2319_v44, %v2271_v59 }
 0x35c   :  { %v2466_v3 = vpop.f32.mrf.mxu2  ;;  %v2370_v2 = vpop.f32.mrf.mxu0  ;;  %3217 = vmatpush.bf16.msrb.mxu0 %v4639_v29  ;;  %3266 = vmatpush.bf16.msrb.mxu1 %v4703_v33  ;;  %v5176_v29 = vld [vmem:[%s7160_s3 + $0x84] sm:$0xf] }
 0x35d   :  { %v2369_v8 = vadd.f32 %v2368_v42, %v2320_v38  ;;  %v4692_v42 = vld [vmem:[%s7160_s3 + $0x98] sm:$0xf0]  ;;  %v4620_v38 = vld [vmem:[%s7160_s3 + $0x8] sm:$0xf0] }
 0x35e   :  { %v2419_v59 = vpop.f32.mrf.mxu1  ;;  %3315 = vmatpush.bf16.msrb.mxu2 %v4767_v6  ;;  %v4695_v44 = vor.u32 %v5178_v34, %v4692_v42  ;;  %v4687_v6 = vor.u32 %v5176_v29, %v4684_v7  ;;  %v7365_v42 = vld [vmem:[#allocation23_spill] sm:$0xff] }
 0x35f   :  { %v2418_v25 = vadd.f32 %v2417_v51, %v2369_v8  ;;  %v4748_v8 = vld [vmem:[%s7160_s3 + $0x108] sm:$0xf0] }
 0x360   :  { %3218 = vmatpush.bf16.msrb.mxu0 %v4631_v63  ;;  %3267 = vmatpush.bf16.msrb.mxu1 %v4695_v44  ;;  %v4751_v34 = vor.u32 %v5192_v20, %v4748_v8  ;;  %v2281_v8 = vadd.f32 %v6482_v18, %v6489_v62 }
 0x361   :  { %v6726_v23 = vadd.f32 %v2466_v3, %v2418_v25  ;;  %v4623_v3 = vor.u32 %v5160_v37, %v4620_v38  ;;  %v2276_v25 = vadd.f32 %v6464_v54, %v6489_v62  ;;  %v5209_v54 = vld [vmem:[%s7160_s3 + $0x184] sm:$0xf0]  ;;  %v2278_v38 = vadd.f32 %v6469_v21, %v6489_v62 }
 0x362   :  { %v2321_v51 = vpop.f32.mrf.mxu3  ;;  %3316 = vmatpush.bf16.msrb.mxu2 %v4759_v40 }
 0x363   :  { %v2322_v36 = vadd.f32 %v2321_v51, %v2273_v47 }
 0x364   :  { %v2468_v43 = vpop.f32.mrf.mxu2  ;;  %v2373_v33 = vpop.f32.mrf.mxu0  ;;  %3219 = vmatpush.bf16.msrb.mxu0 %v4623_v3  ;;  %3268 = vmatpush.bf16.msrb.mxu1 %v4687_v6 }
 0x365   :  { %v2371_v9 = vadd.f32 %v2370_v2, %v2322_v36  ;;  %v4810_v2 = vld [vmem:[%s7160_s3 + $0x180] sm:$0xf] }
 0x366   :  { %v2422_v53 = vpop.f32.mrf.mxu1  ;;  %3317 = vmatpush.bf16.msrb.mxu2 %v4751_v34  ;;  %v4811_v0 = vor.u32 %v5209_v54, %v4810_v2  ;;  %v7366_v34 = vld [vmem:[#allocation48_spill] sm:$0xff] }
 0x367   :  { %v2420_v63 = vadd.f32 %v2419_v59, %v2371_v9  ;;  %2519 = vmatmul.bf16.gmra.mxu3 %v5879_v1  ;;  %3054 = vmatmul.bf16.gmra.mxu0 %v7365_v42 }
 0x368   :  { %3170 = vmatpush.bf16.msrb.mxu3 %v4811_v0 }
 0x369   :  { %3103 = vmatmul.bf16.gmra.mxu1 %v6232_v30  ;;  %3152 = vmatmul.bf16.gmra.mxu2 %v6484_v11  ;;  %v6752_v39 = vadd.f32 %v2468_v43, %v2420_v63 }
 0x36a   :  { %v2324_v59 = vpop.f32.mrf.mxu3 }
 0x36b   :  { %v2325_v1 = vadd.f32 %v2324_v59, %v2276_v25  ;;  %v4868_v25 = vld [vmem:[%s7160_s3 + $0x1f8] sm:$0xf0] }
 0x36c   :  { %v2471_v44 = vpop.f32.mrf.mxu2  ;;  %v2375_v40 = vpop.f32.mrf.mxu0 }
 0x36d   :  { %v2374_v47 = vadd.f32 %v2373_v33, %v2325_v1  ;;  %v7367_v33 = vld [vmem:[#allocation25_spill] sm:$0xff] }
 0x36e   :  { %v2424_v51 = vpop.f32.mrf.mxu1 }
 0x36f   :  { %v2423_v37 = vadd.f32 %v2422_v53, %v2374_v47  ;;  %v5222_v53 = vld [vmem:[%s7160_s3 + $0x1f4] sm:$0xf]  ;;  %v2283_v47 = vadd.f32 %v6492_v31, %v6489_v62  ;;  %v5220_v31 = vld [vmem:[%s7160_s3 + $0x1e4] sm:$0xf] }
 0x370   :  { %v4871_v63 = vor.u32 %v5222_v53, %v4868_v25 }
 0x371   :  { %v6762_v29 = vadd.f32 %v2471_v44, %v2423_v37  ;;  %v6781_v44 = vld [vmem:[%s7161_s4] sm:$0x3] }
 0x372   :  { %v2326_v36 = vpop.f32.mrf.mxu3  ;;  %3359 = vmatpush.bf16.msra.mxu3 %v4871_v63  ;;  %v6788_v37 = vperm.slane %v6781_v44, 0 }
 0x373   :  { %v2327_v43 = vadd.f32 %v2326_v36, %v2278_v38 }
 0x374   :  { %v2473_v3 = vpop.f32.mrf.mxu2  ;;  %v2378_v7 = vpop.f32.mrf.mxu0 }
 0x375   :  { %v2376_v20 = vadd.f32 %v2375_v40, %v2327_v43 }
 0x376   :  { %v2427_v6 = vpop.f32.mrf.mxu1 }
 0x377   :  { %v2425_v9 = vadd.f32 %v2424_v51, %v2376_v20  ;;  %2524 = vmatmul.bf16.gmra.mxu3 %v7366_v34  ;;  %3059 = vmatmul.bf16.gmra.mxu0 %v7367_v33 }
 0x379   :  { %3108 = vmatmul.bf16.gmra.mxu1 %v6245_v13  ;;  %3157 = vmatmul.bf16.gmra.mxu2 %v6506_v55  ;;  %v6770_v21 = vadd.f32 %v2473_v3, %v2425_v9 }
 0x37a   :  { %v2329_v18 = vpop.f32.mrf.mxu3 }
 0x37b   :  { %v2330_v2 = vadd.f32 %v2329_v18, %v2281_v8 }
 0x37c   :  { %v2476_v54 = vpop.f32.mrf.mxu2  ;;  %v2380_v59 = vpop.f32.mrf.mxu0 }
 0x37d   :  { %v2379_v0 = vadd.f32 %v2378_v7, %v2330_v2 }
 0x37e   :  { %v2429_v1 = vpop.f32.mrf.mxu1 }
 0x37f   :  { %v2428_v40 = vadd.f32 %v2427_v6, %v2379_v0  ;;  %v4860_v6 = vld [vmem:[%s7160_s3 + $0x1e8] sm:$0xf0] }
 0x380   :  { %v4863_v25 = vor.u32 %v5220_v31, %v4860_v6 }
 0x381   :  { %v6785_v51 = vadd.f32 %v2476_v54, %v2428_v40 }
 0x382   :  { %v2331_v38 = vpop.f32.mrf.mxu3  ;;  %3360 = vmatpush.bf16.msra.mxu3 %v4863_v25 }
 0x383   :  { %v2332_v36 = vadd.f32 %v2331_v38, %v2283_v47 }
 0x384   :  { %v2478_v43 = vpop.f32.mrf.mxu2  ;;  %v3025_v3 = vpop.f32.mrf.mxu0 }
 0x385   :  { %v2381_v7 = vadd.f32 %v2380_v59, %v2332_v36  ;;  %v3026_v20 = vadd.f32 %v3025_v3, %v6788_v37 }
 0x386   :  { %v3074_v8 = vpop.f32.mrf.mxu1 }
 0x387   :  { %v2430_v9 = vadd.f32 %v2429_v1, %v2381_v7  ;;  %v3075_v34 = vadd.f32 %v3074_v8, %v3026_v20  ;;  %3220 = vmatmul.bf16.vlgmr.msrb.gmra.mxu0 %v7353_v61 }
 0x389   :  { %3269 = vmatmul.bf16.vlgmr.msrb.gmra.mxu1 %v6146_v46  ;;  %3318 = vmatmul.bf16.vlgmr.msrb.gmra.mxu2 %v6259_v56  ;;  %v6794_v62 = vadd.f32 %v2478_v43, %v2430_v9 }
 0x38a   :  { %v2490_v53 = vpop.f32.mrf.mxu3 }
 0x38b   :  { %v2491_v54 = vadd.f32 %v2490_v53, %v6510_v50  ;;  %v5218_v50 = vld [vmem:[%s7160_s3 + $0x1d4] sm:$0xf] }
 0x38c   :  { %v3123_v18 = vpop.f32.mrf.mxu2  ;;  %v3027_v61 = vpop.f32.mrf.mxu0 }
 0x38d   :  { %v6802_v63 = vadd.f32 %v3123_v18, %v3075_v34  ;;  %v3028_v46 = vadd.f32 %v3027_v61, %v6788_v37  ;;  %v2533_v38 = vmax.f32 %v2491_v54, 0.0 }
 0x38e   :  { %v3076_v56 = vpop.f32.mrf.mxu1 }
 0x38f   :  { %v3077_v2 = vadd.f32 %v3076_v56, %v3028_v46 }
 0x392   :  { %v2492_v59 = vpop.f32.mrf.mxu3 }
 0x393   :  { %v2493_v0 = vadd.f32 %v2492_v59, %v6518_v12  ;;  %v4852_v12 = vld [vmem:[%s7160_s3 + $0x1d8] sm:$0xf0] }
 0x394   :  { %v3125_v1 = vpop.f32.mrf.mxu2  ;;  %v3030_v47 = vpop.f32.mrf.mxu0  ;;  %v4855_v9 = vor.u32 %v5218_v50, %v4852_v12 }
 0x395   :  { %v6807_v40 = vadd.f32 %v3125_v1, %v3077_v2  ;;  %v2537_v36 = vmax.f32 %v2493_v0, 0.0  ;;  %v3031_v43 = vadd.f32 %v3030_v47, %v6788_v37 }
 0x396   :  { %v3079_v3 = vpop.f32.mrf.mxu1  ;;  %3361 = vmatpush.bf16.msra.mxu3 %v4855_v9 }
 0x397   :  { %v6810_v7 = vpack.c.bf16 %v2537_v36, %v2533_v38  ;;  %v3080_v20 = vadd.f32 %v3079_v3, %v3031_v43  ;;  %3225 = vmatmul.bf16.gmra.mxu0 %v7354_v26 }
 0x399   :  { %3274 = vmatmul.bf16.gmra.mxu1 %v6162_v57  ;;  %3323 = vmatmul.bf16.gmra.mxu2 %v6274_v5 }
 0x39a   :  { %3171 = vmatmul.bf16.vlgmr.msrb.gmra.mxu3 %v6810_v7  ;;  %v2495_v8 = vpop.f32.mrf.mxu3 }
 0x39b   :  { %v2496_v53 = vadd.f32 %v2495_v8, %v6528_v15  ;;  %v5216_v15 = vld [vmem:[%s7160_s3 + $0x1c4] sm:$0xf] }
 0x39c   :  { %v3128_v34 = vpop.f32.mrf.mxu2  ;;  %v3032_v26 = vpop.f32.mrf.mxu0 }
 0x39d   :  { %v6822_v31 = vadd.f32 %v3128_v34, %v3080_v20  ;;  %v3033_v57 = vadd.f32 %v3032_v26, %v6788_v37  ;;  %v2541_v2 = vmax.f32 %v2496_v53, 0.0 }
 0x39e   :  { %v3081_v5 = vpop.f32.mrf.mxu1 }
 0x39f   :  { %v3082_v6 = vadd.f32 %v3081_v5, %v3033_v57 }
 0x3a2   :  { %v2497_v25 = vpop.f32.mrf.mxu3 }
 0x3a3   :  { %v2498_v18 = vadd.f32 %v2497_v25, %v6536_v17  ;;  %v4844_v17 = vld [vmem:[%s7160_s3 + $0x1c8] sm:$0xf0] }
 0x3a4   :  { %v3130_v61 = vpop.f32.mrf.mxu2  ;;  %v3035_v56 = vpop.f32.mrf.mxu0  ;;  %v4847_v36 = vor.u32 %v5216_v15, %v4844_v17 }
 0x3a5   :  { %v6827_v46 = vadd.f32 %v3130_v61, %v3082_v6  ;;  %v2545_v54 = vmax.f32 %v2498_v18, 0.0  ;;  %v3036_v59 = vadd.f32 %v3035_v56, %v6788_v37 }
 0x3a6   :  { %v3084_v0 = vpop.f32.mrf.mxu1  ;;  %3362 = vmatpush.bf16.msra.mxu3 %v4847_v36 }
 0x3a7   :  { %v3085_v1 = vadd.f32 %v3084_v0, %v3036_v59  ;;  %3230 = vmatmul.bf16.gmra.mxu0 %v7355_v28  ;;  %v6831_v47 = vpack.c.bf16 %v2545_v54, %v2541_v2 }
 0x3a9   :  { %3279 = vmatmul.bf16.gmra.mxu1 %v7356_v60  ;;  %3328 = vmatmul.bf16.gmra.mxu2 %v6286_v52 }
 0x3aa   :  { %3176 = vmatmul.bf16.gmra.mxu3 %v6831_v47  ;;  %v2500_v38 = vpop.f32.mrf.mxu3 }
 0x3ab   :  { %v2501_v50 = vadd.f32 %v2500_v38, %v6546_v48  ;;  %v5214_v48 = vld [vmem:[%s7160_s3 + $0x1b4] sm:$0xf] }
 0x3ac   :  { %v3133_v43 = vpop.f32.mrf.mxu2  ;;  %v3037_v3 = vpop.f32.mrf.mxu0 }
 0x3ad   :  { %v6842_v28 = vadd.f32 %v3133_v43, %v3085_v1  ;;  %v3038_v60 = vadd.f32 %v3037_v3, %v6788_v37  ;;  %v2549_v57 = vmax.f32 %v2501_v50, 0.0 }
 0x3ae   :  { %v3086_v52 = vpop.f32.mrf.mxu1 }
 0x3af   :  { %v3087_v20 = vadd.f32 %v3086_v52, %v3038_v60 }
 0x3b2   :  { %v2502_v12 = vpop.f32.mrf.mxu3 }
 0x3b3   :  { %v2503_v8 = vadd.f32 %v2502_v12, %v6554_v35  ;;  %v4836_v35 = vld [vmem:[%s7160_s3 + $0x1b8] sm:$0xf0] }
 0x3b4   :  { %v3135_v9 = vpop.f32.mrf.mxu2  ;;  %v3040_v26 = vpop.f32.mrf.mxu0  ;;  %v4839_v56 = vor.u32 %v5214_v48, %v4836_v35  ;;  %v5229_v35 = vld [vmem:[%s7162_s5 + $0x28] sm:$0xff] }
 0x3b5   :  { %v6847_v34 = vadd.f32 %v3135_v9, %v3087_v20  ;;  %v2553_v5 = vmax.f32 %v2503_v8, 0.0  ;;  %v3041_v6 = vadd.f32 %v3040_v26, %v6788_v37  ;;  %v5210_v8 = vld [vmem:[%s7160_s3 + $0x194] sm:$0xf] }
 0x3b6   :  { %v3089_v53 = vpop.f32.mrf.mxu1  ;;  %3363 = vmatpush.bf16.msra.mxu3 %v4839_v56 }
 0x3b7   :  { %v3090_v25 = vadd.f32 %v3089_v53, %v3041_v6  ;;  %3235 = vmatmul.bf16.gmra.mxu0 %v7358_v49  ;;  %v6851_v18 = vpack.c.bf16 %v2553_v5, %v2549_v57  ;;  %v5208_v6 = vld [vmem:[%s7160_s3 + $0x184] sm:$0xf] }
 0x3b9   :  { %3284 = vmatmul.bf16.gmra.mxu1 %v7359_v10  ;;  %3333 = vmatmul.bf16.gmra.mxu2 %v6334_v4 }
 0x3ba   :  { %3181 = vmatmul.bf16.gmra.mxu3 %v6851_v18  ;;  %v2505_v61 = vpop.f32.mrf.mxu3 }
 0x3bb   :  { %v2506_v0 = vadd.f32 %v2505_v61, %v6564_v32  ;;  %v5212_v32 = vld [vmem:[%s7160_s3 + $0x1a4] sm:$0xf] }
 0x3bc   :  { %v3138_v2 = vpop.f32.mrf.mxu2  ;;  %v3042_v54 = vpop.f32.mrf.mxu0 }
 0x3bd   :  { %v6862_v49 = vadd.f32 %v3138_v2, %v3090_v25  ;;  %v3043_v10 = vadd.f32 %v3042_v54, %v6788_v37  ;;  %v2557_v36 = vmax.f32 %v2506_v0, 0.0  ;;  %v5228_v54 = vld [vmem:[%s7162_s5 + $0x20] sm:$0xff] }
 0x3be   :  { %v3091_v4 = vpop.f32.mrf.mxu1 }
 0x3bf   :  { %v3092_v59 = vadd.f32 %v3091_v4, %v3043_v10 }
 0x3c2   :  { %v2507_v1 = vpop.f32.mrf.mxu3 }
 0x3c3   :  { %v2508_v15 = vadd.f32 %v2507_v1, %v6590_v58  ;;  %v4828_v58 = vld [vmem:[%s7160_s3 + $0x1a8] sm:$0xf0] }
 0x3c4   :  { %v3140_v17 = vpop.f32.mrf.mxu2  ;;  %v4831_v52 = vor.u32 %v5212_v32, %v4828_v58  ;;  %v5238_v32 = vld [vmem:[%s7162_s5 + $0x70] sm:$0xff] }
 0x3c5   :  { %v6867_v38 = vadd.f32 %v3140_v17, %v3092_v59  ;;  %v2561_v43 = vmax.f32 %v2508_v15, 0.0  ;;  %v6940_v59 = vpop.f32.mrf.mxu0  ;;  %v5224_v17 = vld [vmem:[%s7162_s5] sm:$0xff] }
 0x3c6   :  { %3364 = vmatpush.bf16.msra.mxu3 %v4831_v52 }
 0x3c7   :  { %3240 = vmatmul.bf16.gmra.mxu0 %v7361_v27  ;;  %v6870_v3 = vpack.c.bf16 %v2561_v43, %v2557_v36 }
 0x3c9   :  { %3289 = vmatmul.bf16.gmra.mxu1 %v7362_v22  ;;  %3338 = vmatmul.bf16.gmra.mxu2 %v6418_v45 }
 0x3ca   :  { %3186 = vmatmul.bf16.gmra.mxu3 %v6870_v3  ;;  %v2510_v60 = vpop.f32.mrf.mxu3 }
 0x3cb   :  { %v2511_v27 = vadd.f32 %v2510_v60, %v6636_v24  ;;  %v4820_v24 = vld [vmem:[%s7160_s3 + $0x198] sm:$0xf0] }
 0x3cc   :  { %v4823_v9 = vor.u32 %v5210_v8, %v4820_v24  ;;  %v5237_v24 = vld [vmem:[%s7162_s5 + $0x68] sm:$0xff] }
 0x3cd   :  { %v2565_v50 = vmax.f32 %v2511_v27, 0.0 }
 0x3ce   :  { %3365 = vmatpush.bf16.msra.mxu3 %v4823_v9 }
 0x3d2   :  { %v2512_v20 = vpop.f32.mrf.mxu3 }
 0x3d3   :  { %v2513_v22 = vadd.f32 %v2512_v20, %v6680_v19 }
 0x3d5   :  { %v2569_v45 = vmax.f32 %v2513_v22, 0.0 }
 0x3d7   :  { %3245 = vmatmul.bf16.gmra.mxu0 %v7364_v14  ;;  %v6884_v12 = vpack.c.bf16 %v2569_v45, %v2565_v50  ;;  %v3094_v50 = vpop.f32.mrf.mxu1 }
 0x3d9   :  { %3294 = vmatmul.bf16.gmra.mxu1 %v6218_v41  ;;  %3343 = vmatmul.bf16.gmra.mxu2 %v6466_v16 }
 0x3da   :  { %3191 = vmatmul.bf16.gmra.mxu3 %v6884_v12  ;;  %v2515_v19 = vpop.f32.mrf.mxu3 }
 0x3db   :  { %v2516_v14 = vadd.f32 %v2515_v19, %v6726_v23  ;;  %v4812_v23 = vld [vmem:[%s7160_s3 + $0x188] sm:$0xf0] }
 0x3dc   :  { %v4815_v53 = vor.u32 %v5208_v6, %v4812_v23  ;;  %v5236_v23 = vld [vmem:[%s7162_s5 + $0x60] sm:$0xff] }
 0x3dd   :  { %v2573_v57 = vmax.f32 %v2516_v14, 0.0 }
 0x3de   :  { %3366 = vmatpush.bf16.msra.mxu3 %v4815_v53 }
 0x3e2   :  { %v2517_v26 = vpop.f32.mrf.mxu3 }
 0x3e3   :  { %v2518_v41 = vadd.f32 %v2517_v26, %v6752_v39 }
 0x3e5   :  { %v2577_v16 = vmax.f32 %v2518_v41, 0.0 }
 0x3e7   :  { %3250 = vmatmul.bf16.gmra.mxu0 %v7365_v42  ;;  %v6898_v5 = vpack.c.bf16 %v2577_v16, %v2573_v57  ;;  %v5231_v42 = vld [vmem:[%s7162_s5 + $0x38] sm:$0xff] }
 0x3e8   :  { %3588 = vmatpush.bf16.msra.mxu0 %v5231_v42 }
 0x3e9   :  { %3299 = vmatmul.bf16.gmra.mxu1 %v6232_v30  ;;  %3348 = vmatmul.bf16.gmra.mxu2 %v6484_v11  ;;  %v5230_v30 = vld [vmem:[%s7162_s5 + $0x30] sm:$0xff] }
 0x3ea   :  { %3196 = vmatmul.bf16.gmra.mxu3 %v6898_v5  ;;  %v2520_v39 = vpop.f32.mrf.mxu3 }
 0x3eb   :  { %v2521_v11 = vadd.f32 %v2520_v39, %v6762_v29 }
 0x3ec   :  { %3589 = vmatpush.bf16.msra.mxu0 %v5230_v30 }
 0x3ed   :  { %v2581_v61 = vmax.f32 %v2521_v11, 0.0 }
 0x3f0   :  { %3590 = vmatpush.bf16.msra.mxu0 %v5229_v35 }
 0x3f2   :  { %v2522_v25 = vpop.f32.mrf.mxu3 }
 0x3f3   :  { %v2523_v48 = vadd.f32 %v2522_v25, %v6770_v21  ;;  %v5227_v21 = vld [vmem:[%s7162_s5 + $0x18] sm:$0xff] }
 0x3f4   :  { %3591 = vmatpush.bf16.msra.mxu0 %v5228_v54  ;;  %v5235_v54 = vld [vmem:[%s7162_s5 + $0x58] sm:$0xff] }
 0x3f5   :  { %v2585_v56 = vmax.f32 %v2523_v48, 0.0 }
 0x3f7   :  { %3255 = vmatmul.bf16.gmra.mxu0 %v7367_v33  ;;  %v6921_v2 = vpack.c.bf16 %v2585_v56, %v2581_v61  ;;  %v5226_v33 = vld [vmem:[%s7162_s5 + $0x10] sm:$0xff] }
 0x3f8   :  { %3592 = vmatpush.bf16.msra.mxu0 %v5227_v21 }
 0x3f9   :  { %3304 = vmatmul.bf16.gmra.mxu1 %v6245_v13  ;;  %3353 = vmatmul.bf16.gmra.mxu2 %v6506_v55  ;;  %v5225_v55 = vld [vmem:[%s7162_s5 + $0x8] sm:$0xff] }
 0x3fa   :  { %3201 = vmatmul.bf16.gmra.mxu3 %v6921_v2  ;;  %v2525_v29 = vpop.f32.mrf.mxu3 }
 0x3fb   :  { %v2526_v10 = vadd.f32 %v2525_v29, %v6785_v51  ;;  %v5239_v51 = vld [vmem:[%s7162_s5 + $0x78] sm:$0xff] }
 0x3fc   :  { %3593 = vmatpush.bf16.msra.mxu0 %v5226_v33  ;;  %3637 = vmatpush.bf16.msra.mxu1 %v5239_v51 }
 0x3fd   :  { %v2589_v0 = vmax.f32 %v2526_v10, 0.0 }
 0x400   :  { %3594 = vmatpush.bf16.msra.mxu0 %v5225_v55  ;;  %3638 = vmatpush.bf16.msra.mxu1 %v5238_v32  ;;  %v3046_v55 = vadd.f32 %v6940_v59, %v6788_v37 }
 0x402   :  { %v2527_v4 = vpop.f32.mrf.mxu3 }
 0x403   :  { %v2528_v13 = vadd.f32 %v2527_v4, %v6794_v62  ;;  %v6951_v62 = vpop.f32.mrf.mxu0 }
 0x404   :  { %3595 = vmatpush.bf16.msra.mxu0 %v5224_v17  ;;  %3639 = vmatpush.bf16.msra.mxu1 %v5237_v24  ;;  %v3048_v51 = vadd.f32 %v6951_v62, %v6788_v37 }
 0x405   :  { %v2593_v1 = vmax.f32 %v2528_v13, 0.0 }
 0x407   :  { %v6942_v15 = vpack.c.bf16 %v2593_v1, %v2589_v0 }
 0x408   :  { %3640 = vmatpush.bf16.msra.mxu1 %v5236_v23 }
 0x40a   :  { %3206 = vmatmul.bf16.gmra.mxu3 %v6942_v15 }
 0x40b   :  { %v6953_v36 = vpop.f32.mrf.mxu0 }
 0x40c   :  { %3641 = vmatpush.bf16.msra.mxu1 %v5235_v54  ;;  %v3051_v62 = vadd.f32 %v6953_v36, %v6788_v37 }
 0x413   :  { %v6959_v58 = vpop.f32.mrf.mxu0 }
 0x41a   :  { %3367 = vmatmul.bf16.vlgmr.msra.gmra.mxu3 %v6810_v7  ;;  %v3143_v7 = vpop.f32.mrf.mxu2 }
 0x41b   :  { %v6967_v19 = vpop.f32.mrf.mxu0 }
 0x41d   :  { %v3172_v43 = vpop.f32.mrf.mxu3 }
 0x41e   :  { %v3173_v60 = vadd.f32 %v3172_v43, %v6802_v63  ;;  %v3096_v63 = vpop.f32.mrf.mxu1 }
 0x41f   :  { %v3097_v32 = vadd.f32 %v3096_v63, %v3048_v51  ;;  %v3053_v63 = vadd.f32 %v6959_v58, %v6788_v37  ;;  %v3056_v58 = vadd.f32 %v6967_v19, %v6788_v37 }
 0x420   :  { %v3408_v20 = vmax.f32 %v3173_v60, 0.0 }
 0x423   :  { %v6971_v41 = vpop.f32.mrf.mxu0 }
 0x425   :  { %v3174_v52 = vpop.f32.mrf.mxu3 }
 0x426   :  { %v3175_v27 = vadd.f32 %v3174_v52, %v6807_v40  ;;  %v3145_v40 = vpop.f32.mrf.mxu2  ;;  %v3099_v39 = vpop.f32.mrf.mxu1 }
 0x427   :  { %v3146_v60 = vadd.f32 %v3145_v40, %v3097_v32  ;;  %v3100_v40 = vadd.f32 %v3099_v39, %v3051_v62  ;;  %v5232_v39 = vld [vmem:[%s7162_s5 + $0x40] sm:$0xff] }
 0x428   :  { %v3410_v22 = vmax.f32 %v3175_v27, 0.0 }
 0x42a   :  { %v3440_v45 = vpack.c.bf16 %v3410_v22, %v3408_v20  ;;  %3372 = vmatmul.bf16.gmra.mxu3 %v6831_v47 }
 0x42c   :  { %3596 = vmatmul.bf16.vlgmr.msra.gmra.mxu0 %v3440_v45 }
 0x42d   :  { %v3177_v8 = vpop.f32.mrf.mxu3 }
 0x42e   :  { %v3178_v9 = vadd.f32 %v3177_v8, %v6822_v31  ;;  %v3148_v53 = vpop.f32.mrf.mxu2  ;;  %v6977_v31 = vpop.f32.mrf.mxu0 }
 0x42f   :  { %v3101_v11 = vpop.f32.mrf.mxu1 }
 0x430   :  { %v3412_v47 = vmax.f32 %v3178_v9, 0.0 }
 0x435   :  { %v3179_v14 = vpop.f32.mrf.mxu3 }
 0x436   :  { %v3180_v26 = vadd.f32 %v3179_v14, %v6827_v46  ;;  %v3150_v48 = vpop.f32.mrf.mxu2  ;;  %v6982_v61 = vpop.f32.mrf.mxu0 }
 0x438   :  { %v3414_v57 = vmax.f32 %v3180_v26, 0.0 }
 0x43a   :  { %3377 = vmatmul.bf16.gmra.mxu3 %v6851_v18  ;;  %v3442_v16 = vpack.c.bf16 %v3414_v57, %v3412_v47  ;;  %v3149_v47 = vadd.f32 %v3148_v53, %v3100_v40  ;;  %v3102_v57 = vadd.f32 %v3101_v11, %v3053_v63  ;;  %v3058_v11 = vadd.f32 %v6971_v41, %v6788_v37 }
 0x43b   :  { %v3061_v41 = vadd.f32 %v6977_v31, %v6788_v37 }
 0x43c   :  { %3601 = vmatmul.bf16.gmra.mxu0 %v3442_v16  ;;  %v3151_v16 = vadd.f32 %v3150_v48, %v3102_v57 }
 0x43d   :  { %v3182_v6 = vpop.f32.mrf.mxu3 }
 0x43e   :  { %v3183_v46 = vadd.f32 %v3182_v6, %v6842_v28  ;;  %v3104_v28 = vpop.f32.mrf.mxu1  ;;  %v3153_v29 = vpop.f32.mrf.mxu2 }
 0x43f   :  { %v6988_v33 = vpop.f32.mrf.mxu0 }
 0x440   :  { %v3416_v25 = vmax.f32 %v3183_v46, 0.0 }
 0x445   :  { %v3184_v42 = vpop.f32.mrf.mxu3 }
 0x446   :  { %v3185_v30 = vadd.f32 %v3184_v42, %v6847_v34  ;;  %v3106_v0 = vpop.f32.mrf.mxu1  ;;  %v3155_v1 = vpop.f32.mrf.mxu2 }
 0x447   :  { %v6999_v43 = vpop.f32.mrf.mxu0  ;;  %v3107_v54 = vadd.f32 %v3106_v0, %v3058_v11 }
 0x448   :  { %v3418_v18 = vmax.f32 %v3185_v30, 0.0 }
 0x44a   :  { %3382 = vmatmul.bf16.gmra.mxu3 %v6870_v3  ;;  %v3444_v35 = vpack.c.bf16 %v3418_v18, %v3416_v25 }
 0x44c   :  { %3606 = vmatmul.bf16.gmra.mxu0 %v3444_v35  ;;  %v3105_v35 = vadd.f32 %v3104_v28, %v3056_v58 }
 0x44d   :  { %v3187_v56 = vpop.f32.mrf.mxu3 }
 0x44e   :  { %v3188_v34 = vadd.f32 %v3187_v56, %v6862_v49  ;;  %v5234_v49 = vld [vmem:[%s7162_s5 + $0x50] sm:$0xff]  ;;  %v3109_v27 = vpop.f32.mrf.mxu1  ;;  %v3158_v22 = vpop.f32.mrf.mxu2  ;;  %v3154_v56 = vadd.f32 %v3153_v29, %v3105_v35  ;;  %v3063_v29 = vadd.f32 %v6982_v61, %v6788_v37  ;;  %v5247_v37 = vld [vmem:[%s7164_s7 + $0x38] sm:$0xff] }
 0x44f   :  { %3642 = vmatpush.bf16.msra.mxu1 %v5234_v49  ;;  %v7001_v24 = vpop.f32.mrf.mxu0  ;;  %v3110_v49 = vadd.f32 %v3109_v27, %v3061_v41  ;;  %3778 = vmatpush.bf16.msra.mxu2 %v5247_v37 }
 0x450   :  { %v3420_v3 = vmax.f32 %v3188_v34, 0.0 }
 0x451   :  { %v3159_v51 = vadd.f32 %v3158_v22, %v3110_v49 }
 0x455   :  { %v3189_v21 = vpop.f32.mrf.mxu3 }
 0x456   :  { %v3190_v10 = vadd.f32 %v3189_v21, %v6867_v38  ;;  %v3095_v38 = vadd.f32 %v3094_v50, %v3046_v55  ;;  %v5233_v50 = vld [vmem:[%s7162_s5 + $0x48] sm:$0xff]  ;;  %v3111_v14 = vpop.f32.mrf.mxu1  ;;  %v3160_v26 = vpop.f32.mrf.mxu2 }
 0x457   :  { %3643 = vmatpush.bf16.msra.mxu1 %v5233_v50 }
 0x458   :  { %v3422_v4 = vmax.f32 %v3190_v10, 0.0 }
 0x45a   :  { %3387 = vmatmul.bf16.gmra.mxu3 %v6884_v12  ;;  %v3446_v13 = vpack.c.bf16 %v3422_v4, %v3420_v3  ;;  %v3144_v12 = vadd.f32 %v3143_v7, %v3095_v38  ;;  %v3112_v38 = vadd.f32 %v3111_v14, %v3063_v29 }
 0x45b   :  { %3644 = vmatpush.bf16.msra.mxu1 %v5232_v39 }
 0x45c   :  { %3611 = vmatmul.bf16.gmra.mxu0 %v3446_v13  ;;  %v3161_v32 = vadd.f32 %v3160_v26, %v3112_v38 }
 0x45d   :  { %v3192_v17 = vpop.f32.mrf.mxu3 }
 0x45e   :  { %v3193_v52 = vadd.f32 %v3192_v17, %v3144_v12  ;;  %v3270_v30 = vpop.f32.mrf.mxu1  ;;  %v3319_v18 = vpop.f32.mrf.mxu2 }
 0x460   :  { %v3424_v45 = vmax.f32 %v3193_v52, 0.0 }
 0x465   :  { %v3194_v59 = vpop.f32.mrf.mxu3 }
 0x466   :  { %v3195_v20 = vadd.f32 %v3194_v59, %v3146_v60  ;;  %v3272_v34 = vpop.f32.mrf.mxu1  ;;  %v3321_v10 = vpop.f32.mrf.mxu2 }
 0x468   :  { %v3426_v8 = vmax.f32 %v3195_v20, 0.0 }
 0x46a   :  { %v3448_v9 = vpack.c.bf16 %v3426_v8, %v3424_v45  ;;  %3392 = vmatmul.bf16.gmra.mxu3 %v6898_v5  ;;  %v7011_v5 = vpop.f32.mrf.mxu0 }
 0x46c   :  { %3616 = vmatmul.bf16.gmra.mxu0 %v3448_v9 }
 0x46d   :  { %v3197_v7 = vpop.f32.mrf.mxu3 }
 0x46e   :  { %v3198_v6 = vadd.f32 %v3197_v7, %v3149_v47  ;;  %v3275_v0 = vpop.f32.mrf.mxu1 }
 0x470   :  { %v3428_v46 = vmax.f32 %v3198_v6, 0.0 }
 0x472   :  { %v7021_v48 = vpop.f32.mrf.mxu0 }
 0x475   :  { %v3199_v36 = vpop.f32.mrf.mxu3 }
 0x476   :  { %v3200_v23 = vadd.f32 %v3199_v36, %v3151_v16  ;;  %v3277_v31 = vpop.f32.mrf.mxu1  ;;  %v5246_v36 = vld [vmem:[%s7164_s7 + $0x30] sm:$0xff] }
 0x477   :  { %3779 = vmatpush.bf16.msra.mxu2 %v5246_v36 }
 0x478   :  { %v3430_v42 = vmax.f32 %v3200_v23, 0.0 }
 0x47a   :  { %v3450_v25 = vpack.c.bf16 %v3430_v42, %v3428_v46  ;;  %3397 = vmatmul.bf16.gmra.mxu3 %v6921_v2  ;;  %v3156_v2 = vadd.f32 %v3155_v1, %v3107_v54  ;;  %v7023_v4 = vpop.f32.mrf.mxu0  ;;  %v3324_v1 = vpop.f32.mrf.mxu2 }
 0x47c   :  { %3621 = vmatmul.bf16.gmra.mxu0 %v3450_v25 }
 0x47d   :  { %v3202_v53 = vpop.f32.mrf.mxu3 }
 0x47e   :  { %v3203_v21 = vadd.f32 %v3202_v53, %v3154_v56  ;;  %v3280_v63 = vpop.f32.mrf.mxu1 }
 0x480   :  { %v3432_v13 = vmax.f32 %v3203_v21, 0.0 }
 0x482   :  { %v7030_v12 = vpop.f32.mrf.mxu0  ;;  %v3326_v8 = vpop.f32.mrf.mxu2 }
 0x485   :  { %v3204_v19 = vpop.f32.mrf.mxu3 }
 0x486   :  { %v3205_v3 = vadd.f32 %v3204_v19, %v3156_v2 }
 0x488   :  { %v3434_v55 = vmax.f32 %v3205_v3, 0.0 }
 0x48a   :  { %v3452_v17 = vpack.c.bf16 %v3434_v55, %v3432_v13  ;;  %3402 = vmatmul.bf16.gmra.mxu3 %v6942_v15  ;;  %v7033_v15 = vperm.slane %v6781_v44, 1  ;;  %v7040_v27 = vpop.f32.mrf.mxu0  ;;  %v3329_v40 = vpop.f32.mrf.mxu2 }
 0x48c   :  { %3626 = vmatmul.bf16.gmra.mxu0 %v3452_v17  ;;  %v3222_v61 = vadd.f32 %v6988_v33, %v7033_v15  ;;  %v3224_v44 = vadd.f32 %v6999_v43, %v7033_v15  ;;  %v3227_v23 = vadd.f32 %v7001_v24, %v7033_v15  ;;  %v3282_v43 = vpop.f32.mrf.mxu1  ;;  %v3234_v3 = vadd.f32 %v7023_v4, %v7033_v15 }
 0x48d   :  { %v3207_v28 = vpop.f32.mrf.mxu3  ;;  %v3237_v4 = vadd.f32 %v7030_v12, %v7033_v15 }
 0x48e   :  { %v3208_v60 = vadd.f32 %v3207_v28, %v3159_v51  ;;  %v3271_v62 = vadd.f32 %v3270_v30, %v3222_v61  ;;  %v3273_v7 = vadd.f32 %v3272_v34, %v3224_v44  ;;  %v3229_v30 = vadd.f32 %v7011_v5, %v7033_v15 }
 0x48f   :  { %v3276_v25 = vadd.f32 %v3275_v0, %v3227_v23  ;;  %v3232_v5 = vadd.f32 %v7021_v48, %v7033_v15  ;;  %v3283_v28 = vadd.f32 %v3282_v43, %v3234_v3 }
 0x490   :  { %v3436_v20 = vmax.f32 %v3208_v60, 0.0  ;;  %v3320_v50 = vadd.f32 %v3319_v18, %v3271_v62  ;;  %v3322_v14 = vadd.f32 %v3321_v10, %v3273_v7  ;;  %v3278_v58 = vadd.f32 %v3277_v31, %v3229_v30  ;;  %v5245_v10 = vld [vmem:[%s7164_s7 + $0x28] sm:$0xff] }
 0x491   :  { %v3325_v18 = vadd.f32 %v3324_v1, %v3276_v25  ;;  %3780 = vmatpush.bf16.msra.mxu2 %v5245_v10  ;;  %v3281_v13 = vadd.f32 %v3280_v63, %v3232_v5 }
 0x492   :  { %v3331_v46 = vpop.f32.mrf.mxu2  ;;  %v3327_v39 = vadd.f32 %v3326_v8, %v3278_v58  ;;  %v3241_v24 = vpop.f32.mrf.mxu0 }
 0x493   :  { %v3330_v41 = vadd.f32 %v3329_v40, %v3281_v13  ;;  %v3332_v0 = vadd.f32 %v3331_v46, %v3283_v28 }
 0x494   :  { %v3285_v35 = vpop.f32.mrf.mxu1 }
 0x495   :  { %v3209_v52 = vpop.f32.mrf.mxu3  ;;  %v3286_v8 = vadd.f32 %v3285_v35, %v3237_v4  ;;  %v5242_v35 = vld [vmem:[%s7164_s7 + $0x10] sm:$0xff] }
 0x496   :  { %v3210_v59 = vadd.f32 %v3209_v52, %v3161_v32  ;;  %v5244_v52 = vld [vmem:[%s7164_s7 + $0x20] sm:$0xff] }
 0x497   :  { %3781 = vmatpush.bf16.msra.mxu2 %v5244_v52 }
 0x498   :  { %v3438_v45 = vmax.f32 %v3210_v59, 0.0 }
 0x49a   :  { %v3454_v9 = vpack.c.bf16 %v3438_v45, %v3436_v20  ;;  %v3334_v54 = vpop.f32.mrf.mxu2  ;;  %v3243_v29 = vpop.f32.mrf.mxu0  ;;  %v3239_v45 = vadd.f32 %v7040_v27, %v7033_v15 }
 0x49c   :  { %3631 = vmatmul.bf16.gmra.mxu0 %v3454_v9  ;;  %v3287_v55 = vpop.f32.mrf.mxu1  ;;  %v3335_v9 = vadd.f32 %v3334_v54, %v3286_v8 }
 0x49d   :  { %v3368_v22 = vpop.f32.mrf.mxu3  ;;  %v3288_v37 = vadd.f32 %v3287_v55, %v3239_v45 }
 0x49e   :  { %v3369_v26 = vadd.f32 %v3368_v22, %v3320_v50 }
 0x4a0   :  { %v3409_v16 = vmax.f32 %v3369_v26, 0.0  ;;  %v5243_v26 = vld [vmem:[%s7164_s7 + $0x18] sm:$0xff] }
 0x4a1   :  { %3782 = vmatpush.bf16.msra.mxu2 %v5243_v26 }
 0x4a2   :  { %v3336_v17 = vpop.f32.mrf.mxu2  ;;  %v3246_v31 = vpop.f32.mrf.mxu0 }
 0x4a3   :  { %v3337_v61 = vadd.f32 %v3336_v17, %v3288_v37  ;;  %v3247_v54 = vadd.f32 %v3246_v31, %v7033_v15  ;;  %v5240_v31 = vld [vmem:[%s7164_s7] sm:$0xff] }
 0x4a4   :  { %v3290_v60 = vpop.f32.mrf.mxu1 }
 0x4a5   :  { %v3370_v47 = vpop.f32.mrf.mxu3  ;;  %3783 = vmatpush.bf16.msra.mxu2 %v5242_v35 }
 0x4a6   :  { %v3371_v57 = vadd.f32 %v3370_v47, %v3322_v14  ;;  %v3242_v47 = vadd.f32 %v3241_v24, %v7033_v15 }
 0x4a8   :  { %v3411_v6 = vmax.f32 %v3371_v57, 0.0  ;;  %v3244_v57 = vadd.f32 %v3243_v29, %v7033_v15 }
 0x4aa   :  { %v3441_v33 = vpack.c.bf16 %v3411_v6, %v3409_v16  ;;  %v3339_v59 = vpop.f32.mrf.mxu2  ;;  %v3248_v63 = vpop.f32.mrf.mxu0 }
 0x4ac   :  { %3645 = vmatmul.bf16.vlgmr.msra.gmra.mxu1 %v3441_v33  ;;  %v3292_v22 = vpop.f32.mrf.mxu1  ;;  %v3291_v33 = vadd.f32 %v3290_v60, %v3242_v47 }
 0x4ad   :  { %v3373_v42 = vpop.f32.mrf.mxu3  ;;  %v3293_v43 = vadd.f32 %v3292_v22, %v3244_v57 }
 0x4ae   :  { %v3374_v53 = vadd.f32 %v3373_v42, %v3325_v18  ;;  %v3340_v23 = vadd.f32 %v3339_v59, %v3291_v33 }
 0x4b0   :  { %v3413_v2 = vmax.f32 %v3374_v53, 0.0 }
 0x4b2   :  { %v3341_v62 = vpop.f32.mrf.mxu2  ;;  %v3251_v36 = vpop.f32.mrf.mxu0 }
 0x4b3   :  { %v3342_v46 = vadd.f32 %v3341_v62, %v3293_v43 }
 0x4b4   :  { %v3295_v16 = vpop.f32.mrf.mxu1 }
 0x4b5   :  { %v3375_v11 = vpop.f32.mrf.mxu3  ;;  %v3296_v24 = vadd.f32 %v3295_v16, %v3247_v54 }
 0x4b6   :  { %v3376_v56 = vadd.f32 %v3375_v11, %v3327_v39 }
 0x4b8   :  { %v3415_v34 = vmax.f32 %v3376_v56, 0.0 }
 0x4ba   :  { %v3443_v21 = vpack.c.bf16 %v3415_v34, %v3413_v2  ;;  %v3344_v6 = vpop.f32.mrf.mxu2  ;;  %v3253_v56 = vpop.f32.mrf.mxu0  ;;  %v3249_v34 = vadd.f32 %v3248_v63, %v7033_v15 }
 0x4bb   :  { %v3254_v60 = vadd.f32 %v3253_v56, %v7033_v15 }
 0x4bc   :  { %3650 = vmatmul.bf16.gmra.mxu1 %v3443_v21  ;;  %v3297_v18 = vpop.f32.mrf.mxu1  ;;  %v3345_v21 = vadd.f32 %v3344_v6, %v3296_v24 }
 0x4bd   :  { %v3378_v19 = vpop.f32.mrf.mxu3  ;;  %v3298_v10 = vadd.f32 %v3297_v18, %v3249_v34 }
 0x4be   :  { %v3379_v1 = vadd.f32 %v3378_v19, %v3330_v41 }
 0x4c0   :  { %v3417_v38 = vmax.f32 %v3379_v1, 0.0  ;;  %v5241_v1 = vld [vmem:[%s7164_s7 + $0x8] sm:$0xff] }
 0x4c1   :  { %3784 = vmatpush.bf16.msra.mxu2 %v5241_v1 }
 0x4c2   :  { %v3346_v53 = vpop.f32.mrf.mxu2  ;;  %v3256_v55 = vpop.f32.mrf.mxu0 }
 0x4c3   :  { %v3347_v3 = vadd.f32 %v3346_v53, %v3298_v10 }
 0x4c4   :  { %v3300_v5 = vpop.f32.mrf.mxu1 }
 0x4c5   :  { %v3380_v49 = vpop.f32.mrf.mxu3  ;;  %3785 = vmatpush.bf16.msra.mxu2 %v5240_v31 }
 0x4c6   :  { %v3381_v51 = vadd.f32 %v3380_v49, %v3332_v0  ;;  %v3252_v49 = vadd.f32 %v3251_v36, %v7033_v15 }
 0x4c8   :  { %v3419_v32 = vmax.f32 %v3381_v51, 0.0  ;;  %v3301_v52 = vadd.f32 %v3300_v5, %v3252_v49 }
 0x4ca   :  { %v3445_v48 = vpack.c.bf16 %v3419_v32, %v3417_v38  ;;  %v3349_v19 = vpop.f32.mrf.mxu2 }
 0x4cb   :  { %v3350_v59 = vadd.f32 %v3349_v19, %v3301_v52 }
 0x4cc   :  { %3655 = vmatmul.bf16.gmra.mxu1 %v3445_v48  ;;  %v3302_v51 = vpop.f32.mrf.mxu1  ;;  %v3258_v48 = vpop.f32.mrf.mxu0 }
 0x4cd   :  { %v3383_v20 = vpop.f32.mrf.mxu3  ;;  %v3303_v4 = vadd.f32 %v3302_v51, %v3254_v60 }
 0x4ce   :  { %v3384_v44 = vadd.f32 %v3383_v20, %v3335_v9 }
 0x4d0   :  { %v3421_v40 = vmax.f32 %v3384_v44, 0.0 }
 0x4d2   :  { %v3351_v38 = vpop.f32.mrf.mxu2 }
 0x4d3   :  { %v3352_v20 = vadd.f32 %v3351_v38, %v3303_v4 }
 0x4d4   :  { %v3305_v9 = vpop.f32.mrf.mxu1  ;;  %v3597_v22 = vpop.f32.mrf.mxu0 }
 0x4d5   :  { %v3385_v50 = vpop.f32.mrf.mxu3 }
 0x4d6   :  { %v3386_v7 = vadd.f32 %v3385_v50, %v3337_v61 }
 0x4d8   :  { %v3423_v14 = vmax.f32 %v3386_v7, 0.0  ;;  %v3257_v7 = vadd.f32 %v3256_v55, %v7033_v15 }
 0x4da   :  { %v3447_v12 = vpack.c.bf16 %v3423_v14, %v3421_v40  ;;  %v3354_v61 = vpop.f32.mrf.mxu2  ;;  %v3259_v40 = vadd.f32 %v3258_v48, %v7033_v15  ;;  %v3306_v14 = vadd.f32 %v3305_v9, %v3257_v7  ;;  %v7088_v15 = vld [vmem:[%s7163_s6] ss:$0 sm:$0xff] }
 0x4db   :  { %v3598_v18 = vadd.f32 %v7088_v15, %v3597_v22 }
 0x4dc   :  { %3660 = vmatmul.bf16.gmra.mxu1 %v3447_v12  ;;  %v3307_v12 = vpop.f32.mrf.mxu1  ;;  %v3599_v47 = vpop.f32.mrf.mxu0 }
 0x4dd   :  { %v3388_v27 = vpop.f32.mrf.mxu3  ;;  %v3308_v57 = vadd.f32 %v3307_v12, %v3259_v40 }
 0x4de   :  { %v3389_v42 = vadd.f32 %v3388_v27, %v3340_v23  ;;  %v3355_v27 = vadd.f32 %v3354_v61, %v3306_v14 }
 0x4e0   :  { %v3425_v58 = vmax.f32 %v3389_v42, 0.0 }
 0x4e2   :  { %v3356_v26 = vpop.f32.mrf.mxu2 }
 0x4e3   :  { %v3357_v16 = vadd.f32 %v3356_v26, %v3308_v57 }
 0x4e4   :  { %v3602_v42 = vpop.f32.mrf.mxu0 }
 0x4e5   :  { %v3390_v30 = vpop.f32.mrf.mxu3 }
 0x4e6   :  { %v3391_v25 = vadd.f32 %v3390_v30, %v3342_v46 }
 0x4e8   :  { %v3427_v39 = vmax.f32 %v3391_v25, 0.0 }
 0x4ea   :  { %v3449_v11 = vpack.c.bf16 %v3427_v39, %v3425_v58  ;;  %v3600_v39 = vadd.f32 %v7088_v15, %v3599_v47 }
 0x4ec   :  { %3665 = vmatmul.bf16.gmra.mxu1 %v3449_v11  ;;  %v3604_v30 = vpop.f32.mrf.mxu0 }
 0x4ed   :  { %v3393_v2 = vpop.f32.mrf.mxu3  ;;  %v3605_v10 = vadd.f32 %v7088_v15, %v3604_v30 }
 0x4ee   :  { %v3394_v13 = vadd.f32 %v3393_v2, %v3345_v21  ;;  %v3603_v21 = vadd.f32 %v7088_v15, %v3602_v42 }
 0x4f0   :  { %v3429_v28 = vmax.f32 %v3394_v13, 0.0 }
 0x4f4   :  { %v3607_v58 = vpop.f32.mrf.mxu0 }
 0x4f5   :  { %v3395_v17 = vpop.f32.mrf.mxu3 }
 0x4f6   :  { %v3396_v41 = vadd.f32 %v3395_v17, %v3347_v3 }
 0x4f8   :  { %v3431_v29 = vmax.f32 %v3396_v41, 0.0 }
 0x4fa   :  { %v3451_v0 = vpack.c.bf16 %v3431_v29, %v3429_v28 }
 0x4fc   :  { %3670 = vmatmul.bf16.gmra.mxu1 %v3451_v0  ;;  %v3609_v34 = vpop.f32.mrf.mxu0  ;;  %v3608_v0 = vadd.f32 %v7088_v15, %v3607_v58 }
 0x4fd   :  { %v3398_v32 = vpop.f32.mrf.mxu3  ;;  %v3610_v1 = vadd.f32 %v7088_v15, %v3609_v34 }
 0x4fe   :  { %v3399_v45 = vadd.f32 %v3398_v32, %v3350_v59 }
 0x500   :  { %v3433_v44 = vmax.f32 %v3399_v45, 0.0 }
 0x504   :  { %v3612_v13 = vpop.f32.mrf.mxu0 }
 0x505   :  { %v3400_v8 = vpop.f32.mrf.mxu3  ;;  %v3613_v4 = vadd.f32 %v7088_v15, %v3612_v13 }
 0x506   :  { %v3401_v37 = vadd.f32 %v3400_v8, %v3352_v20 }
 0x508   :  { %v3435_v62 = vmax.f32 %v3401_v37, 0.0 }
 0x50a   :  { %v3453_v50 = vpack.c.bf16 %v3435_v62, %v3433_v44 }
 0x50c   :  { %3675 = vmatmul.bf16.gmra.mxu1 %v3453_v50  ;;  %v3614_v29 = vpop.f32.mrf.mxu0 }
 0x50d   :  { %v3403_v63 = vpop.f32.mrf.mxu3  ;;  %v3615_v31 = vadd.f32 %v7088_v15, %v3614_v29 }
 0x50e   :  { %v3404_v6 = vadd.f32 %v3403_v63, %v3355_v27 }
 0x510   :  { %v3437_v23 = vmax.f32 %v3404_v6, 0.0 }
 0x514   :  { %v3617_v52 = vpop.f32.mrf.mxu0 }
 0x515   :  { %v3405_v33 = vpop.f32.mrf.mxu3  ;;  %v3618_v50 = vadd.f32 %v7088_v15, %v3617_v52 }
 0x516   :  { %v3406_v36 = vadd.f32 %v3405_v33, %v3357_v16 }
 0x518   :  { %v3439_v43 = vmax.f32 %v3406_v36, 0.0 }
 0x51a   :  { %v3455_v46 = vpack.c.bf16 %v3439_v43, %v3437_v23 }
 0x51c   :  { %3680 = vmatmul.bf16.gmra.mxu1 %v3455_v46  ;;  %v3619_v45 = vpop.f32.mrf.mxu0 }
 0x51d   :  { %v3620_v7 = vadd.f32 %v7088_v15, %v3619_v45 }
 0x524   :  { %v3622_v62 = vpop.f32.mrf.mxu0 }
 0x525   :  { %v3623_v16 = vadd.f32 %v7088_v15, %v3622_v62 }
 0x529   :  { %v3646_v25 = vpop.f32.mrf.mxu1 }
 0x52a   :  { %v3647_v53 = vadd.f32 %v3646_v25, %v3598_v18 }
 0x52c   :  { %v3686_v56 = vmax.f32 %v3647_v53, 0.0  ;;  %v3624_v47 = vpop.f32.mrf.mxu0 }
 0x52d   :  { %v3625_v33 = vadd.f32 %v7088_v15, %v3624_v47 }
 0x531   :  { %v3648_v11 = vpop.f32.mrf.mxu1 }
 0x532   :  { %v3649_v35 = vadd.f32 %v3648_v11, %v3600_v39 }
 0x534   :  { %v3687_v54 = vmax.f32 %v3649_v35, 0.0  ;;  %v3627_v6 = vpop.f32.mrf.mxu0 }
 0x535   :  { %v3628_v58 = vadd.f32 %v7088_v15, %v3627_v6 }
 0x536   :  { %v3702_v2 = vpack.c.bf16 %v3687_v54, %v3686_v56 }
 0x538   :  { %3786 = vmatmul.bf16.vlgmr.msra.gmra.mxu2 %v3702_v2 }
 0x539   :  { %v3651_v24 = vpop.f32.mrf.mxu1 }
 0x53a   :  { %v3652_v5 = vadd.f32 %v3651_v24, %v3603_v21 }
 0x53c   :  { %v3688_v55 = vmax.f32 %v3652_v5, 0.0  ;;  %v3629_v25 = vpop.f32.mrf.mxu0 }
 0x53d   :  { %v3630_v39 = vadd.f32 %v7088_v15, %v3629_v25 }
 0x541   :  { %v3653_v19 = vpop.f32.mrf.mxu1 }
 0x542   :  { %v3654_v3 = vadd.f32 %v3653_v19, %v3605_v10 }
 0x544   :  { %v3689_v17 = vmax.f32 %v3654_v3, 0.0  ;;  %v3632_v56 = vpop.f32.mrf.mxu0 }
 0x545   :  { %v3633_v10 = vadd.f32 %v7088_v15, %v3632_v56 }
 0x546   :  { %v3703_v41 = vpack.c.bf16 %v3689_v17, %v3688_v55 }
 0x548   :  { %3791 = vmatmul.bf16.gmra.mxu2 %v3703_v41 }
 0x549   :  { %v3656_v28 = vpop.f32.mrf.mxu1 }
 0x54a   :  { %v3657_v49 = vadd.f32 %v3656_v28, %v3608_v0  ;;  %v5276_v28 = vld [vmem:[%s7165_s8] ss:$0 sm:$0xff] }
 0x54c   :  { %v3690_v32 = vmax.f32 %v3657_v49, 0.0  ;;  %v3634_v21 = vpop.f32.mrf.mxu0 }
 0x54d   :  { %v3635_v5 = vadd.f32 %v7088_v15, %v3634_v21 }
 0x551   :  { %v3658_v51 = vpop.f32.mrf.mxu1 }
 0x552   :  { %v3659_v38 = vadd.f32 %v3658_v51, %v3610_v1 }
 0x554   :  { %v3691_v60 = vmax.f32 %v3659_v38, 0.0 }
 0x556   :  { %v3704_v48 = vpack.c.bf16 %v3691_v60, %v3690_v32 }
 0x558   :  { %3796 = vmatmul.bf16.gmra.mxu2 %v3704_v48 }
 0x559   :  { %v3661_v59 = vpop.f32.mrf.mxu1 }
 0x55a   :  { %v3662_v20 = vadd.f32 %v3661_v59, %v3613_v4 }
 0x55c   :  { %v3692_v37 = vmax.f32 %v3662_v20, 0.0 }
 0x561   :  { %v3663_v8 = vpop.f32.mrf.mxu1 }
 0x562   :  { %v3664_v9 = vadd.f32 %v3663_v8, %v3615_v31 }
 0x564   :  { %v3693_v61 = vmax.f32 %v3664_v9, 0.0 }
 0x566   :  { %v3705_v22 = vpack.c.bf16 %v3693_v61, %v3692_v37 }
 0x568   :  { %3801 = vmatmul.bf16.gmra.mxu2 %v3705_v22 }
 0x569   :  { %v3666_v44 = vpop.f32.mrf.mxu1 }
 0x56a   :  { %v3667_v63 = vadd.f32 %v3666_v44, %v3618_v50 }
 0x56c   :  { %v3694_v12 = vmax.f32 %v3667_v63, 0.0 }
 0x571   :  { %v3668_v40 = vpop.f32.mrf.mxu1 }
 0x572   :  { %v3669_v14 = vadd.f32 %v3668_v40, %v3620_v7 }
 0x574   :  { %v3695_v26 = vmax.f32 %v3669_v14, 0.0 }
 0x576   :  { %v3706_v27 = vpack.c.bf16 %v3695_v26, %v3694_v12 }
 0x578   :  { %3806 = vmatmul.bf16.gmra.mxu2 %v3706_v27 }
 0x579   :  { %v3671_v57 = vpop.f32.mrf.mxu1 }
 0x57a   :  { %v3672_v36 = vadd.f32 %v3671_v57, %v3623_v16 }
 0x57c   :  { %v3696_v46 = vmax.f32 %v3672_v36, 0.0 }
 0x581   :  { %v3673_v23 = vpop.f32.mrf.mxu1 }
 0x582   :  { %v3674_v43 = vadd.f32 %v3673_v23, %v3625_v33 }
 0x584   :  { %v3697_v42 = vmax.f32 %v3674_v43, 0.0 }
 0x586   :  { %v3707_v30 = vpack.c.bf16 %v3697_v42, %v3696_v46 }
 0x588   :  { %3811 = vmatmul.bf16.gmra.mxu2 %v3707_v30 }
 0x589   :  { %v3676_v18 = vpop.f32.mrf.mxu1 }
 0x58a   :  { %v3677_v53 = vadd.f32 %v3676_v18, %v3628_v58 }
 0x58c   :  { %v3698_v54 = vmax.f32 %v3677_v53, 0.0 }
 0x591   :  { %v3678_v11 = vpop.f32.mrf.mxu1 }
 0x592   :  { %v3679_v35 = vadd.f32 %v3678_v11, %v3630_v39 }
 0x594   :  { %v3699_v2 = vmax.f32 %v3679_v35, 0.0 }
 0x596   :  { %v3708_v34 = vpack.c.bf16 %v3699_v2, %v3698_v54 }
 0x598   :  { %3816 = vmatmul.bf16.gmra.mxu2 %v3708_v34 }
 0x599   :  { %v3681_v24 = vpop.f32.mrf.mxu1 }
 0x59a   :  { %v3682_v19 = vadd.f32 %v3681_v24, %v3633_v10 }
 0x59c   :  { %v3700_v55 = vmax.f32 %v3682_v19, 0.0 }
 0x5a1   :  { %v3683_v3 = vpop.f32.mrf.mxu1 }
 0x5a2   :  { %v3684_v13 = vadd.f32 %v3683_v3, %v3635_v5 }
 0x5a4   :  { %v3701_v17 = vmax.f32 %v3684_v13, 0.0 }
 0x5a6   :  { %v3709_v41 = vpack.c.bf16 %v3701_v17, %v3700_v55 }
 0x5a8   :  { %3821 = vmatmul.bf16.gmra.mxu2 %v3709_v41 }
 0x5bb   :  { %v3787_v29 = vpop.f32.mrf.mxu2 }
 0x5bc   :  { %v3788_v0 = vadd.f32 %v5276_v28, %v3787_v29 }
 0x5be   :  { %3827 = vst [vmem:[%s7166_s9] sm:$0xff] %v3788_v0 }
 0x5c3   :  { %v3789_v1 = vpop.f32.mrf.mxu2 }
 0x5c4   :  { %v3790_v49 = vadd.f32 %v5276_v28, %v3789_v1 }
 0x5c6   :  { %3828 = vst [vmem:[%s7166_s9 + $0x8] sm:$0xff] %v3790_v49 }
 0x5cb   :  { %v3792_v15 = vpop.f32.mrf.mxu2 }
 0x5cc   :  { %v3793_v51 = vadd.f32 %v5276_v28, %v3792_v15 }
 0x5ce   :  { %3829 = vst [vmem:[%s7166_s9 + $0x10] sm:$0xff] %v3793_v51 }
 0x5d3   :  { %v3794_v38 = vpop.f32.mrf.mxu2 }
 0x5d4   :  { %v3795_v32 = vadd.f32 %v5276_v28, %v3794_v38 }
 0x5d6   :  { %3830 = vst [vmem:[%s7166_s9 + $0x18] sm:$0xff] %v3795_v32 }
 0x5db   :  { %v3797_v60 = vpop.f32.mrf.mxu2 }
 0x5dc   :  { %v3798_v48 = vadd.f32 %v5276_v28, %v3797_v60 }
 0x5de   :  { %3831 = vst [vmem:[%s7166_s9 + $0x20] sm:$0xff] %v3798_v48 }
 0x5e3   :  { %v3799_v52 = vpop.f32.mrf.mxu2 }
 0x5e4   :  { %v3800_v59 = vadd.f32 %v5276_v28, %v3799_v52 }
 0x5e6   :  { %3832 = vst [vmem:[%s7166_s9 + $0x28] sm:$0xff] %v3800_v59 }
 0x5eb   :  { %v3802_v4 = vpop.f32.mrf.mxu2 }
 0x5ec   :  { %v3803_v31 = vadd.f32 %v5276_v28, %v3802_v4 }
 0x5ee   :  { %3833 = vst [vmem:[%s7166_s9 + $0x30] sm:$0xff] %v3803_v31 }
 0x5f3   :  { %v3804_v20 = vpop.f32.mrf.mxu2 }
 0x5f4   :  { %v3805_v45 = vadd.f32 %v5276_v28, %v3804_v20 }
 0x5f6   :  { %3834 = vst [vmem:[%s7166_s9 + $0x38] sm:$0xff] %v3805_v45 }
 0x5fb   :  { %v3807_v8 = vpop.f32.mrf.mxu2 }
 0x5fc   :  { %v3808_v9 = vadd.f32 %v5276_v28, %v3807_v8 }
 0x5fe   :  { %3835 = vst [vmem:[%s7166_s9 + $0x40] sm:$0xff] %v3808_v9 }
 0x603   :  { %v3809_v37 = vpop.f32.mrf.mxu2 }
 0x604   :  { %v3810_v61 = vadd.f32 %v5276_v28, %v3809_v37 }
 0x606   :  { %3836 = vst [vmem:[%s7166_s9 + $0x48] sm:$0xff] %v3810_v61 }
 0x60b   :  { %v3812_v22 = vpop.f32.mrf.mxu2 }
 0x60c   :  { %v3813_v44 = vadd.f32 %v5276_v28, %v3812_v22 }
 0x60e   :  { %3837 = vst [vmem:[%s7166_s9 + $0x50] sm:$0xff] %v3813_v44 }
 0x613   :  { %v3814_v62 = vpop.f32.mrf.mxu2 }
 0x614   :  { %v3815_v50 = vadd.f32 %v5276_v28, %v3814_v62 }
 0x616   :  { %3838 = vst [vmem:[%s7166_s9 + $0x58] sm:$0xff] %v3815_v50 }
 0x61b   :  { %v3817_v7 = vpop.f32.mrf.mxu2 }
 0x61c   :  { %v3818_v63 = vadd.f32 %v5276_v28, %v3817_v7 }
 0x61e   :  { %3839 = vst [vmem:[%s7166_s9 + $0x60] sm:$0xff] %v3818_v63 }
 0x623   :  { %v3819_v40 = vpop.f32.mrf.mxu2 }
 0x624   :  { %v3820_v14 = vadd.f32 %v5276_v28, %v3819_v40 }
 0x626   :  { %3840 = vst [vmem:[%s7166_s9 + $0x68] sm:$0xff] %v3820_v14 }
 0x62b   :  { %v3822_v12 = vpop.f32.mrf.mxu2 }
 0x62c   :  { %v3823_v26 = vadd.f32 %v5276_v28, %v3822_v12 }
 0x62e   :  { %3841 = vst [vmem:[%s7166_s9 + $0x70] sm:$0xff] %v3823_v26 }
 0x633   :  { %v3824_v47 = vpop.f32.mrf.mxu2 }
 0x634   :  { %v3825_v27 = vadd.f32 %v5276_v28, %v3824_v47 }
 0x636   :  { %3842 = vst [vmem:[%s7166_s9 + $0x78] sm:$0xff] %v3825_v27 }
 0x637   :  { %3847 = vsyncpa [#allocation3], 1 }

</bundles_post_ra>
